<compile_context>
chip_gen: v7x
topology: tpu7x:2x2x1
jax: 0.10.0
libtpu: 0.0.40
codegen_flags: <defaults>
</compile_context>

<pallas_src>
import functools

import numpy as np
import jax
import jax.numpy as jnp
from jax import lax
from jax.experimental import pallas as pl
from jax.experimental.pallas import tpu as pltpu


def _out_size(n, k, s, p):
    return (n + 2 * p - k) // s + 1


# ----------------------- hoisted parameter preparation -----------------------
def _banded_matrices(w_eff, bias, w_in, n_out, stride, pad):
    """Per-kernel-row block-banded GEMM matrices for a stride-s conv.

    w_eff: [Cout, Cin, kh, kw] with kh applied along the input's first spatial
    axis and kw along the second.  Returns:
      A         [kh, w_in*Cin, n_out*Cout]
      bias_tile [1,  n_out*Cout]
    """
    cout, cin, kh, kw = w_eff.shape
    w_np = np.asarray(w_eff, dtype=np.float32)
    a = np.zeros((kh, w_in * cin, n_out * cout), np.float32)
    for p in range(kh):
        for wo in range(n_out):
            for q in range(kw):
                w = stride * wo + q - pad
                if 0 <= w < w_in:
                    a[p, w * cin:(w + 1) * cin, wo * cout:(wo + 1) * cout] = w_np[:, :, p, q].T
    bias_t = np.tile(np.asarray(bias, np.float32), n_out)[None, :]
    return jnp.asarray(a), jnp.asarray(bias_t)


def init_params(key, num_channels, num_conv_channels):
    """PyTorch Conv2d default init (uniform +-1/sqrt(fan_in))."""
    def conv_init(k, cout, cin, ksize):
        kw_, kb_ = jax.random.split(k)
        bound = 1.0 / float(np.sqrt(cin * ksize * ksize))
        w = jax.random.uniform(kw_, (cout, cin, ksize, ksize), jnp.float32, -bound, bound)
        b = jax.random.uniform(kb_, (cout,), jnp.float32, -bound, bound)
        return w, b

    k1, k2, k3 = jax.random.split(key, 3)
    return {
        "conv1": conv_init(k1, num_conv_channels, num_channels, 5),
        "conv2": conv_init(k2, num_conv_channels, num_conv_channels, 3),
        "conv3": conv_init(k3, num_conv_channels, num_conv_channels, 3),
    }


def prepare_params(params, image_width, num_channels, num_conv_channels):
    """Build banded weight matrices / tiled biases once (hoisted out of forward)."""
    (w1, b1), (w2, b2), (w3, b3) = params["conv1"], params["conv2"], params["conv3"]
    W0 = image_width
    W1 = _out_size(W0, 5, 5, 0)
    W2 = _out_size(W1, 3, 3, 0)
    W3 = _out_size(W2, 3, 3, 1)
    # PyTorch feeds the conv stack with input.transpose(1, 3), which also swaps
    # the two spatial axes; running the convs directly on the un-transposed
    # NHWC input is exactly equivalent when kh/kw of every kernel are swapped.
    sw = lambda w: jnp.swapaxes(w, 2, 3)
    a1, b1t = _banded_matrices(sw(w1), b1, W0, W1, 5, 0)
    a2, b2t = _banded_matrices(sw(w2), b2, W1, W2, 3, 0)
    a3, b3t = _banded_matrices(sw(w3), b3, W2, W3, 3, 1)
    dims = dict(W0=W0, W1=W1, W2=W2, W3=W3, C0=num_channels, C=num_conv_channels)
    return (a1, b1t, a2, b2t, a3, b3t), dims


# ------------------------------ fused kernel ---------------------------------
def _make_kernel(dims):
    W0, W1, W2, W3 = dims["W0"], dims["W1"], dims["W2"], dims["W3"]
    C0, C = dims["C0"], dims["C"]
    N1, N2, N3 = W1 * C, W2 * C, W3 * C

    def kernel(x_ref, a1_ref, b1_ref, a2_ref, b2_ref, a3_ref, b3_ref, o_ref):
        # x_ref: [1, W0, W0*C0]; rows pre-grouped as (p1, p2, h2) so each conv1
        # LHS below is a contiguous W2-row slice.
        # TODO(synk): training-mode Dropout2d (stochastic channel zeroing) not implemented.
        acc2 = jnp.zeros((W2, N2), jnp.float32)
        for p2 in range(3):                       # conv2 kernel-row offset
            acc1 = jnp.zeros((W2, N1), jnp.float32)
            for p1 in range(5):                   # conv1 kernel-row offset
                r0 = (p1 * 3 + p2) * W2
                acc1 = acc1 + jnp.dot(
                    x_ref[0, r0:r0 + W2, :], a1_ref[p1],
                    preferred_element_type=jnp.float32)
            y1 = jnp.maximum(acc1 + b1_ref[...], 0.0)   # conv1 rows h1 = 3*h2 + p2
            acc2 = acc2 + jnp.dot(y1, a2_ref[p2],
                                  preferred_element_type=jnp.float32)
        y2 = jnp.maximum(acc2 + b2_ref[...], 0.0)        # [W2, W2*C]

        # conv3 (k=3, s=3, padding=1) + ReLU.  Column padding is folded into
        # the banded a3 matrices; row padding shows up as skipped zero terms.
        for ho in range(W3):
            acc3 = b3_ref[...]                           # [1, N3]
            for p3 in range(3):
                r = 3 * ho + p3 - 1
                if 0 <= r < W2:
                    acc3 = acc3 + jnp.dot(
                        y2[r:r + 1, :], a3_ref[p3],
                        preferred_element_type=jnp.float32)
            o_ref[0, ho:ho + 1, :] = jnp.maximum(acc3, 0.0)

    return kernel


# -------------------------------- forward ------------------------------------
def downsampling_net_forward(prep, dims, input_images):
    """input_images: [B, W, W, C] -> [B, D, D, num_conv_channels] (D = 2 here)."""
    a1, b1t, a2, b2t, a3, b3t = prep
    W0, W1, W2, W3 = dims["W0"], dims["W1"], dims["W2"], dims["W3"]
    C0, C = dims["C0"], dims["C"]
    B = input_images.shape[0]
    assert W0 == 15 * W2 and W1 == 3 * W2, "spatial sizes must chain as W0 = 5*W1 = 15*W2"

    x = input_images.astype(jnp.float32)
    # One cheap XLA reshuffle: per-batch input rows h = 15*h2 + 5*p2 + p1 are
    # regrouped as (p1, p2, h2) so all in-kernel LHS slices are contiguous.
    x = x.reshape(B, W0, W0 * C0)
    x = x.reshape(B, W2, 3, 5, W0 * C0)          # h -> (h2, p2, p1)
    x = jnp.transpose(x, (0, 3, 2, 1, 4))        # -> (b, p1, p2, h2, :)
    x = x.reshape(B, W0, W0 * C0)

    flops = 2 * B * (W1 * W1 * (C0 * 25) * C
                     + W2 * W2 * (C * 9) * C
                     + W3 * W3 * (C * 9) * C)
    bytes_accessed = 4 * (x.size + a1.size + a2.size + a3.size
                          + b1t.size + b2t.size + b3t.size + B * W3 * W3 * C)

    out = pl.pallas_call(
        _make_kernel(dims),
        out_shape=jax.ShapeDtypeStruct((B, W3, W3 * C), jnp.float32),
        grid=(B,),
        in_specs=[
            pl.BlockSpec((1, W0, W0 * C0), lambda b: (b, 0, 0)),
            pl.BlockSpec(a1.shape, lambda b: (0, 0, 0)),
            pl.BlockSpec(b1t.shape, lambda b: (0, 0)),
            pl.BlockSpec(a2.shape, lambda b: (0, 0, 0)),
            pl.BlockSpec(b2t.shape, lambda b: (0, 0)),
            pl.BlockSpec(a3.shape, lambda b: (0, 0, 0)),
            pl.BlockSpec(b3t.shape, lambda b: (0, 0)),
        ],
        out_specs=pl.BlockSpec((1, W3, W3 * C), lambda b: (b, 0, 0)),
        compiler_params=pltpu.CompilerParams(
            dimension_semantics=("parallel",)),
        cost_estimate=pl.CostEstimate(
            flops=int(flops), transcendentals=0, bytes_accessed=int(bytes_accessed)),
    )(x, a1, b1t, a2, b2t, a3, b3t)

    # rows = (b, h_out), cols = (w_out, co)  ->  [B, D, D, C]
    return out.reshape(B, W3, W3, C)


# ------------------------- pure-JAX faithful reference -----------------------
def _reference_forward(params, input_images):
    """Mirrors the PyTorch module op-for-op (NCHW convs, same transposes)."""
    x = jnp.transpose(input_images.astype(jnp.float32), (0, 3, 2, 1))   # .transpose(1, 3)
    for (w, b), (s, p) in zip(
        [params["conv1"], params["conv2"], params["conv3"]],
        [(5, 0), (3, 0), (3, 1)],
    ):
        x = lax.conv_general_dilated(
            x, w, (s, s), [(p, p), (p, p)],
            dimension_numbers=("NCHW", "OIHW", "NCHW"),
            precision=lax.Precision.HIGHEST)
        x = jnp.maximum(x + b[None, :, None, None], 0.0)
    feats = jnp.transpose(x, (0, 3, 2, 1))                              # .transpose(1, 3)
    B, d1, _, c = feats.shape
    return feats.reshape(B, d1, d1, c)


if __name__ == "__main__":
    key = jax.random.PRNGKey(0)
    batch, image_width, num_channels, num_conv_channels = 2, 90, 4, 8

    k_params, k_img = jax.random.split(key)
    params = init_params(k_params, num_channels, num_conv_channels)
    images = jax.random.normal(
        k_img, (batch, image_width, image_width, num_channels), dtype=jnp.float32)

    prep, dims = prepare_params(params, image_width, num_channels, num_conv_channels)
    fwd = jax.jit(functools.partial(downsampling_net_forward, prep, dims))

    out = jax.block_until_ready(fwd(images))
    ref = jax.block_until_ready(_reference_forward(params, images))

    assert out.shape == ref.shape, (out.shape, ref.shape)
    err = float(jnp.max(jnp.abs(out - ref)))
    assert jnp.allclose(out, ref, rtol=1e-3, atol=1e-3), f"mismatch vs reference, max abs err {err}"

    print("KERNEL_OK")
</pallas_src>

<mosaic_0001>
module attributes {stable_mosaic.version = 11 : i64} {
  func.func @kernel(%arg0: i32, %arg1: memref<1x90x360xf32, #tpu.memory_space<vmem>>, %arg2: memref<5x360x144xf32, #tpu.memory_space<vmem>>, %arg3: memref<1x144xf32, #tpu.memory_space<vmem>>, %arg4: memref<3x144x48xf32, #tpu.memory_space<vmem>>, %arg5: memref<1x48xf32, #tpu.memory_space<vmem>>, %arg6: memref<3x48x16xf32, #tpu.memory_space<vmem>>, %arg7: memref<1x16xf32, #tpu.memory_space<vmem>>, %arg8: memref<1x2x16xf32, #tpu.memory_space<vmem>>) attributes {dimension_semantics = [#tpu.dimension_semantics<parallel>], iteration_bounds = array<i64: 2>, scalar_prefetch = 0 : i64, scratch_operands = 0 : i64, tpu.core_type = #tpu.core_type<tc>, window_params = [{transform_indices = @transform_0, window_bounds = array<i64: 1, 90, 360>}, {pipeline_mode = #tpu.pipeline_mode<synchronous>, transform_indices = @transform_1, window_bounds = array<i64: 5, 360, 144>}, {pipeline_mode = #tpu.pipeline_mode<synchronous>, transform_indices = @transform_2, window_bounds = array<i64: 1, 144>}, {pipeline_mode = #tpu.pipeline_mode<synchronous>, transform_indices = @transform_3, window_bounds = array<i64: 3, 144, 48>}, {pipeline_mode = #tpu.pipeline_mode<synchronous>, transform_indices = @transform_4, window_bounds = array<i64: 1, 48>}, {pipeline_mode = #tpu.pipeline_mode<synchronous>, transform_indices = @transform_5, window_bounds = array<i64: 3, 48, 16>}, {pipeline_mode = #tpu.pipeline_mode<synchronous>, transform_indices = @transform_6, window_bounds = array<i64: 1, 16>}, {transform_indices = @transform_7, window_bounds = array<i64: 1, 2, 16>}]} {
    %cst = arith.constant 0.000000e+00 : f32
    %0 = vector.broadcast %cst : f32 to vector<6x48xf32>
    %cst_0 = arith.constant 0.000000e+00 : f32
    %1 = vector.broadcast %cst_0 : f32 to vector<6x144xf32>
    %c0 = arith.constant 0 : index
    %c0_1 = arith.constant 0 : index
    %c0_2 = arith.constant 0 : index
    %2 = vector.load %arg1[%c0, %c0_1, %c0_2] : memref<1x90x360xf32, #tpu.memory_space<vmem>>, vector<1x6x360xf32>
    %3 = vector.shape_cast %2 : vector<1x6x360xf32> to vector<6x360xf32>
    %c0_3 = arith.constant 0 : index
    %c0_4 = arith.constant 0 : index
    %c0_5 = arith.constant 0 : index
    %4 = vector.load %arg2[%c0_3, %c0_4, %c0_5] : memref<5x360x144xf32, #tpu.memory_space<vmem>>, vector<1x360x144xf32>
    %5 = vector.shape_cast %4 : vector<1x360x144xf32> to vector<360x144xf32>
    %cst_6 = arith.constant dense<0.000000e+00> : vector<6x144xf32>
    %6 = tpu.matmul %3, %5, %cst_6 {dimension_numbers = #tpu.dot_dimension_numbers<[1], [0], [0], [1], [0, 0, 1, 1], [], []>} : vector<6x360xf32>, vector<360x144xf32>, vector<6x144xf32> -> vector<6x144xf32>
    %7 = arith.addf %1, %6 : vector<6x144xf32>
    %c0_7 = arith.constant 0 : index
    %c18 = arith.constant 18 : index
    %c0_8 = arith.constant 0 : index
    %8 = vector.load %arg1[%c0_7, %c18, %c0_8] : memref<1x90x360xf32, #tpu.memory_space<vmem>>, vector<1x6x360xf32>
    %9 = vector.shape_cast %8 : vector<1x6x360xf32> to vector<6x360xf32>
    %c1 = arith.constant 1 : index
    %c0_9 = arith.constant 0 : index
    %c0_10 = arith.constant 0 : index
    %10 = vector.load %arg2[%c1, %c0_9, %c0_10] : memref<5x360x144xf32, #tpu.memory_space<vmem>>, vector<1x360x144xf32>
    %11 = vector.shape_cast %10 : vector<1x360x144xf32> to vector<360x144xf32>
    %cst_11 = arith.constant dense<0.000000e+00> : vector<6x144xf32>
    %12 = tpu.matmul %9, %11, %cst_11 {dimension_numbers = #tpu.dot_dimension_numbers<[1], [0], [0], [1], [0, 0, 1, 1], [], []>} : vector<6x360xf32>, vector<360x144xf32>, vector<6x144xf32> -> vector<6x144xf32>
    %13 = arith.addf %7, %12 : vector<6x144xf32>
    %c0_12 = arith.constant 0 : index
    %c36 = arith.constant 36 : index
    %c0_13 = arith.constant 0 : index
    %14 = vector.load %arg1[%c0_12, %c36, %c0_13] : memref<1x90x360xf32, #tpu.memory_space<vmem>>, vector<1x6x360xf32>
    %15 = vector.shape_cast %14 : vector<1x6x360xf32> to vector<6x360xf32>
    %c2 = arith.constant 2 : index
    %c0_14 = arith.constant 0 : index
    %c0_15 = arith.constant 0 : index
    %16 = vector.load %arg2[%c2, %c0_14, %c0_15] : memref<5x360x144xf32, #tpu.memory_space<vmem>>, vector<1x360x144xf32>
    %17 = vector.shape_cast %16 : vector<1x360x144xf32> to vector<360x144xf32>
    %cst_16 = arith.constant dense<0.000000e+00> : vector<6x144xf32>
    %18 = tpu.matmul %15, %17, %cst_16 {dimension_numbers = #tpu.dot_dimension_numbers<[1], [0], [0], [1], [0, 0, 1, 1], [], []>} : vector<6x360xf32>, vector<360x144xf32>, vector<6x144xf32> -> vector<6x144xf32>
    %19 = arith.addf %13, %18 : vector<6x144xf32>
    %c0_17 = arith.constant 0 : index
    %c54 = arith.constant 54 : index
    %c0_18 = arith.constant 0 : index
    %20 = vector.load %arg1[%c0_17, %c54, %c0_18] : memref<1x90x360xf32, #tpu.memory_space<vmem>>, vector<1x6x360xf32>
    %21 = vector.shape_cast %20 : vector<1x6x360xf32> to vector<6x360xf32>
    %c3 = arith.constant 3 : index
    %c0_19 = arith.constant 0 : index
    %c0_20 = arith.constant 0 : index
    %22 = vector.load %arg2[%c3, %c0_19, %c0_20] : memref<5x360x144xf32, #tpu.memory_space<vmem>>, vector<1x360x144xf32>
    %23 = vector.shape_cast %22 : vector<1x360x144xf32> to vector<360x144xf32>
    %cst_21 = arith.constant dense<0.000000e+00> : vector<6x144xf32>
    %24 = tpu.matmul %21, %23, %cst_21 {dimension_numbers = #tpu.dot_dimension_numbers<[1], [0], [0], [1], [0, 0, 1, 1], [], []>} : vector<6x360xf32>, vector<360x144xf32>, vector<6x144xf32> -> vector<6x144xf32>
    %25 = arith.addf %19, %24 : vector<6x144xf32>
    %c0_22 = arith.constant 0 : index
    %c72 = arith.constant 72 : index
    %c0_23 = arith.constant 0 : index
    %26 = vector.load %arg1[%c0_22, %c72, %c0_23] : memref<1x90x360xf32, #tpu.memory_space<vmem>>, vector<1x6x360xf32>
    %27 = vector.shape_cast %26 : vector<1x6x360xf32> to vector<6x360xf32>
    %c4 = arith.constant 4 : index
    %c0_24 = arith.constant 0 : index
    %c0_25 = arith.constant 0 : index
    %28 = vector.load %arg2[%c4, %c0_24, %c0_25] : memref<5x360x144xf32, #tpu.memory_space<vmem>>, vector<1x360x144xf32>
    %29 = vector.shape_cast %28 : vector<1x360x144xf32> to vector<360x144xf32>
    %cst_26 = arith.constant dense<0.000000e+00> : vector<6x144xf32>
    %30 = tpu.matmul %27, %29, %cst_26 {dimension_numbers = #tpu.dot_dimension_numbers<[1], [0], [0], [1], [0, 0, 1, 1], [], []>} : vector<6x360xf32>, vector<360x144xf32>, vector<6x144xf32> -> vector<6x144xf32>
    %31 = arith.addf %25, %30 : vector<6x144xf32>
    %c0_27 = arith.constant 0 : index
    %c0_28 = arith.constant 0 : index
    %32 = vector.load %arg3[%c0_27, %c0_28] : memref<1x144xf32, #tpu.memory_space<vmem>>, vector<1x144xf32>
    %33 = vector.broadcast %32 : vector<1x144xf32> to vector<6x144xf32>
    %34 = arith.addf %31, %33 : vector<6x144xf32>
    %cst_29 = arith.constant 0.000000e+00 : f32
    %35 = vector.broadcast %cst_29 : f32 to vector<6x144xf32>
    %36 = arith.maximumf %34, %35 : vector<6x144xf32>
    %c0_30 = arith.constant 0 : index
    %c0_31 = arith.constant 0 : index
    %c0_32 = arith.constant 0 : index
    %37 = vector.load %arg4[%c0_30, %c0_31, %c0_32] : memref<3x144x48xf32, #tpu.memory_space<vmem>>, vector<1x144x48xf32>
    %38 = vector.shape_cast %37 : vector<1x144x48xf32> to vector<144x48xf32>
    %cst_33 = arith.constant dense<0.000000e+00> : vector<6x48xf32>
    %39 = tpu.matmul %36, %38, %cst_33 {dimension_numbers = #tpu.dot_dimension_numbers<[1], [0], [0], [1], [0, 0, 1, 1], [], []>} : vector<6x144xf32>, vector<144x48xf32>, vector<6x48xf32> -> vector<6x48xf32>
    %40 = arith.addf %0, %39 : vector<6x48xf32>
    %cst_34 = arith.constant 0.000000e+00 : f32
    %41 = vector.broadcast %cst_34 : f32 to vector<6x144xf32>
    %c0_35 = arith.constant 0 : index
    %c6 = arith.constant 6 : index
    %c0_36 = arith.constant 0 : index
    %42 = vector.load %arg1[%c0_35, %c6, %c0_36] : memref<1x90x360xf32, #tpu.memory_space<vmem>>, vector<1x6x360xf32>
    %43 = vector.shape_cast %42 : vector<1x6x360xf32> to vector<6x360xf32>
    %c0_37 = arith.constant 0 : index
    %c0_38 = arith.constant 0 : index
    %c0_39 = arith.constant 0 : index
    %44 = vector.load %arg2[%c0_37, %c0_38, %c0_39] : memref<5x360x144xf32, #tpu.memory_space<vmem>>, vector<1x360x144xf32>
    %45 = vector.shape_cast %44 : vector<1x360x144xf32> to vector<360x144xf32>
    %cst_40 = arith.constant dense<0.000000e+00> : vector<6x144xf32>
    %46 = tpu.matmul %43, %45, %cst_40 {dimension_numbers = #tpu.dot_dimension_numbers<[1], [0], [0], [1], [0, 0, 1, 1], [], []>} : vector<6x360xf32>, vector<360x144xf32>, vector<6x144xf32> -> vector<6x144xf32>
    %47 = arith.addf %41, %46 : vector<6x144xf32>
    %c0_41 = arith.constant 0 : index
    %c24 = arith.constant 24 : index
    %c0_42 = arith.constant 0 : index
    %48 = vector.load %arg1[%c0_41, %c24, %c0_42] : memref<1x90x360xf32, #tpu.memory_space<vmem>>, vector<1x6x360xf32>
    %49 = vector.shape_cast %48 : vector<1x6x360xf32> to vector<6x360xf32>
    %c1_43 = arith.constant 1 : index
    %c0_44 = arith.constant 0 : index
    %c0_45 = arith.constant 0 : index
    %50 = vector.load %arg2[%c1_43, %c0_44, %c0_45] : memref<5x360x144xf32, #tpu.memory_space<vmem>>, vector<1x360x144xf32>
    %51 = vector.shape_cast %50 : vector<1x360x144xf32> to vector<360x144xf32>
    %cst_46 = arith.constant dense<0.000000e+00> : vector<6x144xf32>
    %52 = tpu.matmul %49, %51, %cst_46 {dimension_numbers = #tpu.dot_dimension_numbers<[1], [0], [0], [1], [0, 0, 1, 1], [], []>} : vector<6x360xf32>, vector<360x144xf32>, vector<6x144xf32> -> vector<6x144xf32>
    %53 = arith.addf %47, %52 : vector<6x144xf32>
    %c0_47 = arith.constant 0 : index
    %c42 = arith.constant 42 : index
    %c0_48 = arith.constant 0 : index
    %54 = vector.load %arg1[%c0_47, %c42, %c0_48] : memref<1x90x360xf32, #tpu.memory_space<vmem>>, vector<1x6x360xf32>
    %55 = vector.shape_cast %54 : vector<1x6x360xf32> to vector<6x360xf32>
    %c2_49 = arith.constant 2 : index
    %c0_50 = arith.constant 0 : index
    %c0_51 = arith.constant 0 : index
    %56 = vector.load %arg2[%c2_49, %c0_50, %c0_51] : memref<5x360x144xf32, #tpu.memory_space<vmem>>, vector<1x360x144xf32>
    %57 = vector.shape_cast %56 : vector<1x360x144xf32> to vector<360x144xf32>
    %cst_52 = arith.constant dense<0.000000e+00> : vector<6x144xf32>
    %58 = tpu.matmul %55, %57, %cst_52 {dimension_numbers = #tpu.dot_dimension_numbers<[1], [0], [0], [1], [0, 0, 1, 1], [], []>} : vector<6x360xf32>, vector<360x144xf32>, vector<6x144xf32> -> vector<6x144xf32>
    %59 = arith.addf %53, %58 : vector<6x144xf32>
    %c0_53 = arith.constant 0 : index
    %c60 = arith.constant 60 : index
    %c0_54 = arith.constant 0 : index
    %60 = vector.load %arg1[%c0_53, %c60, %c0_54] : memref<1x90x360xf32, #tpu.memory_space<vmem>>, vector<1x6x360xf32>
    %61 = vector.shape_cast %60 : vector<1x6x360xf32> to vector<6x360xf32>
    %c3_55 = arith.constant 3 : index
    %c0_56 = arith.constant 0 : index
    %c0_57 = arith.constant 0 : index
    %62 = vector.load %arg2[%c3_55, %c0_56, %c0_57] : memref<5x360x144xf32, #tpu.memory_space<vmem>>, vector<1x360x144xf32>
    %63 = vector.shape_cast %62 : vector<1x360x144xf32> to vector<360x144xf32>
    %cst_58 = arith.constant dense<0.000000e+00> : vector<6x144xf32>
    %64 = tpu.matmul %61, %63, %cst_58 {dimension_numbers = #tpu.dot_dimension_numbers<[1], [0], [0], [1], [0, 0, 1, 1], [], []>} : vector<6x360xf32>, vector<360x144xf32>, vector<6x144xf32> -> vector<6x144xf32>
    %65 = arith.addf %59, %64 : vector<6x144xf32>
    %c0_59 = arith.constant 0 : index
    %c78 = arith.constant 78 : index
    %c0_60 = arith.constant 0 : index
    %66 = vector.load %arg1[%c0_59, %c78, %c0_60] : memref<1x90x360xf32, #tpu.memory_space<vmem>>, vector<1x6x360xf32>
    %67 = vector.shape_cast %66 : vector<1x6x360xf32> to vector<6x360xf32>
    %c4_61 = arith.constant 4 : index
    %c0_62 = arith.constant 0 : index
    %c0_63 = arith.constant 0 : index
    %68 = vector.load %arg2[%c4_61, %c0_62, %c0_63] : memref<5x360x144xf32, #tpu.memory_space<vmem>>, vector<1x360x144xf32>
    %69 = vector.shape_cast %68 : vector<1x360x144xf32> to vector<360x144xf32>
    %cst_64 = arith.constant dense<0.000000e+00> : vector<6x144xf32>
    %70 = tpu.matmul %67, %69, %cst_64 {dimension_numbers = #tpu.dot_dimension_numbers<[1], [0], [0], [1], [0, 0, 1, 1], [], []>} : vector<6x360xf32>, vector<360x144xf32>, vector<6x144xf32> -> vector<6x144xf32>
    %71 = arith.addf %65, %70 : vector<6x144xf32>
    %c0_65 = arith.constant 0 : index
    %c0_66 = arith.constant 0 : index
    %72 = vector.load %arg3[%c0_65, %c0_66] : memref<1x144xf32, #tpu.memory_space<vmem>>, vector<1x144xf32>
    %73 = vector.broadcast %72 : vector<1x144xf32> to vector<6x144xf32>
    %74 = arith.addf %71, %73 : vector<6x144xf32>
    %cst_67 = arith.constant 0.000000e+00 : f32
    %75 = vector.broadcast %cst_67 : f32 to vector<6x144xf32>
    %76 = arith.maximumf %74, %75 : vector<6x144xf32>
    %c1_68 = arith.constant 1 : index
    %c0_69 = arith.constant 0 : index
    %c0_70 = arith.constant 0 : index
    %77 = vector.load %arg4[%c1_68, %c0_69, %c0_70] : memref<3x144x48xf32, #tpu.memory_space<vmem>>, vector<1x144x48xf32>
    %78 = vector.shape_cast %77 : vector<1x144x48xf32> to vector<144x48xf32>
    %cst_71 = arith.constant dense<0.000000e+00> : vector<6x48xf32>
    %79 = tpu.matmul %76, %78, %cst_71 {dimension_numbers = #tpu.dot_dimension_numbers<[1], [0], [0], [1], [0, 0, 1, 1], [], []>} : vector<6x144xf32>, vector<144x48xf32>, vector<6x48xf32> -> vector<6x48xf32>
    %80 = arith.addf %40, %79 : vector<6x48xf32>
    %cst_72 = arith.constant 0.000000e+00 : f32
    %81 = vector.broadcast %cst_72 : f32 to vector<6x144xf32>
    %c0_73 = arith.constant 0 : index
    %c12 = arith.constant 12 : index
    %c0_74 = arith.constant 0 : index
    %82 = vector.load %arg1[%c0_73, %c12, %c0_74] : memref<1x90x360xf32, #tpu.memory_space<vmem>>, vector<1x6x360xf32>
    %83 = vector.shape_cast %82 : vector<1x6x360xf32> to vector<6x360xf32>
    %c0_75 = arith.constant 0 : index
    %c0_76 = arith.constant 0 : index
    %c0_77 = arith.constant 0 : index
    %84 = vector.load %arg2[%c0_75, %c0_76, %c0_77] : memref<5x360x144xf32, #tpu.memory_space<vmem>>, vector<1x360x144xf32>
    %85 = vector.shape_cast %84 : vector<1x360x144xf32> to vector<360x144xf32>
    %cst_78 = arith.constant dense<0.000000e+00> : vector<6x144xf32>
    %86 = tpu.matmul %83, %85, %cst_78 {dimension_numbers = #tpu.dot_dimension_numbers<[1], [0], [0], [1], [0, 0, 1, 1], [], []>} : vector<6x360xf32>, vector<360x144xf32>, vector<6x144xf32> -> vector<6x144xf32>
    %87 = arith.addf %81, %86 : vector<6x144xf32>
    %c0_79 = arith.constant 0 : index
    %c30 = arith.constant 30 : index
    %c0_80 = arith.constant 0 : index
    %88 = vector.load %arg1[%c0_79, %c30, %c0_80] : memref<1x90x360xf32, #tpu.memory_space<vmem>>, vector<1x6x360xf32>
    %89 = vector.shape_cast %88 : vector<1x6x360xf32> to vector<6x360xf32>
    %c1_81 = arith.constant 1 : index
    %c0_82 = arith.constant 0 : index
    %c0_83 = arith.constant 0 : index
    %90 = vector.load %arg2[%c1_81, %c0_82, %c0_83] : memref<5x360x144xf32, #tpu.memory_space<vmem>>, vector<1x360x144xf32>
    %91 = vector.shape_cast %90 : vector<1x360x144xf32> to vector<360x144xf32>
    %cst_84 = arith.constant dense<0.000000e+00> : vector<6x144xf32>
    %92 = tpu.matmul %89, %91, %cst_84 {dimension_numbers = #tpu.dot_dimension_numbers<[1], [0], [0], [1], [0, 0, 1, 1], [], []>} : vector<6x360xf32>, vector<360x144xf32>, vector<6x144xf32> -> vector<6x144xf32>
    %93 = arith.addf %87, %92 : vector<6x144xf32>
    %c0_85 = arith.constant 0 : index
    %c48 = arith.constant 48 : index
    %c0_86 = arith.constant 0 : index
    %94 = vector.load %arg1[%c0_85, %c48, %c0_86] : memref<1x90x360xf32, #tpu.memory_space<vmem>>, vector<1x6x360xf32>
    %95 = vector.shape_cast %94 : vector<1x6x360xf32> to vector<6x360xf32>
    %c2_87 = arith.constant 2 : index
    %c0_88 = arith.constant 0 : index
    %c0_89 = arith.constant 0 : index
    %96 = vector.load %arg2[%c2_87, %c0_88, %c0_89] : memref<5x360x144xf32, #tpu.memory_space<vmem>>, vector<1x360x144xf32>
    %97 = vector.shape_cast %96 : vector<1x360x144xf32> to vector<360x144xf32>
    %cst_90 = arith.constant dense<0.000000e+00> : vector<6x144xf32>
    %98 = tpu.matmul %95, %97, %cst_90 {dimension_numbers = #tpu.dot_dimension_numbers<[1], [0], [0], [1], [0, 0, 1, 1], [], []>} : vector<6x360xf32>, vector<360x144xf32>, vector<6x144xf32> -> vector<6x144xf32>
    %99 = arith.addf %93, %98 : vector<6x144xf32>
    %c0_91 = arith.constant 0 : index
    %c66 = arith.constant 66 : index
    %c0_92 = arith.constant 0 : index
    %100 = vector.load %arg1[%c0_91, %c66, %c0_92] : memref<1x90x360xf32, #tpu.memory_space<vmem>>, vector<1x6x360xf32>
    %101 = vector.shape_cast %100 : vector<1x6x360xf32> to vector<6x360xf32>
    %c3_93 = arith.constant 3 : index
    %c0_94 = arith.constant 0 : index
    %c0_95 = arith.constant 0 : index
    %102 = vector.load %arg2[%c3_93, %c0_94, %c0_95] : memref<5x360x144xf32, #tpu.memory_space<vmem>>, vector<1x360x144xf32>
    %103 = vector.shape_cast %102 : vector<1x360x144xf32> to vector<360x144xf32>
    %cst_96 = arith.constant dense<0.000000e+00> : vector<6x144xf32>
    %104 = tpu.matmul %101, %103, %cst_96 {dimension_numbers = #tpu.dot_dimension_numbers<[1], [0], [0], [1], [0, 0, 1, 1], [], []>} : vector<6x360xf32>, vector<360x144xf32>, vector<6x144xf32> -> vector<6x144xf32>
    %105 = arith.addf %99, %104 : vector<6x144xf32>
    %c0_97 = arith.constant 0 : index
    %c84 = arith.constant 84 : index
    %c0_98 = arith.constant 0 : index
    %106 = vector.load %arg1[%c0_97, %c84, %c0_98] : memref<1x90x360xf32, #tpu.memory_space<vmem>>, vector<1x6x360xf32>
    %107 = vector.shape_cast %106 : vector<1x6x360xf32> to vector<6x360xf32>
    %c4_99 = arith.constant 4 : index
    %c0_100 = arith.constant 0 : index
    %c0_101 = arith.constant 0 : index
    %108 = vector.load %arg2[%c4_99, %c0_100, %c0_101] : memref<5x360x144xf32, #tpu.memory_space<vmem>>, vector<1x360x144xf32>
    %109 = vector.shape_cast %108 : vector<1x360x144xf32> to vector<360x144xf32>
    %cst_102 = arith.constant dense<0.000000e+00> : vector<6x144xf32>
    %110 = tpu.matmul %107, %109, %cst_102 {dimension_numbers = #tpu.dot_dimension_numbers<[1], [0], [0], [1], [0, 0, 1, 1], [], []>} : vector<6x360xf32>, vector<360x144xf32>, vector<6x144xf32> -> vector<6x144xf32>
    %111 = arith.addf %105, %110 : vector<6x144xf32>
    %c0_103 = arith.constant 0 : index
    %c0_104 = arith.constant 0 : index
    %112 = vector.load %arg3[%c0_103, %c0_104] : memref<1x144xf32, #tpu.memory_space<vmem>>, vector<1x144xf32>
    %113 = vector.broadcast %112 : vector<1x144xf32> to vector<6x144xf32>
    %114 = arith.addf %111, %113 : vector<6x144xf32>
    %cst_105 = arith.constant 0.000000e+00 : f32
    %115 = vector.broadcast %cst_105 : f32 to vector<6x144xf32>
    %116 = arith.maximumf %114, %115 : vector<6x144xf32>
    %c2_106 = arith.constant 2 : index
    %c0_107 = arith.constant 0 : index
    %c0_108 = arith.constant 0 : index
    %117 = vector.load %arg4[%c2_106, %c0_107, %c0_108] : memref<3x144x48xf32, #tpu.memory_space<vmem>>, vector<1x144x48xf32>
    %118 = vector.shape_cast %117 : vector<1x144x48xf32> to vector<144x48xf32>
    %cst_109 = arith.constant dense<0.000000e+00> : vector<6x48xf32>
    %119 = tpu.matmul %116, %118, %cst_109 {dimension_numbers = #tpu.dot_dimension_numbers<[1], [0], [0], [1], [0, 0, 1, 1], [], []>} : vector<6x144xf32>, vector<144x48xf32>, vector<6x48xf32> -> vector<6x48xf32>
    %120 = arith.addf %80, %119 : vector<6x48xf32>
    %c0_110 = arith.constant 0 : index
    %c0_111 = arith.constant 0 : index
    %121 = vector.load %arg5[%c0_110, %c0_111] : memref<1x48xf32, #tpu.memory_space<vmem>>, vector<1x48xf32>
    %122 = vector.broadcast %121 : vector<1x48xf32> to vector<6x48xf32>
    %123 = arith.addf %120, %122 : vector<6x48xf32>
    %cst_112 = arith.constant 0.000000e+00 : f32
    %124 = vector.broadcast %cst_112 : f32 to vector<6x48xf32>
    %125 = arith.maximumf %123, %124 : vector<6x48xf32>
    %c0_113 = arith.constant 0 : index
    %c0_114 = arith.constant 0 : index
    %126 = vector.load %arg7[%c0_113, %c0_114] : memref<1x16xf32, #tpu.memory_space<vmem>>, vector<1x16xf32>
    %127 = vector.extract_strided_slice %125 {offsets = [0, 0], sizes = [1, 48], strides = [1, 1]} : vector<6x48xf32> to vector<1x48xf32>
    %c1_115 = arith.constant 1 : index
    %c0_116 = arith.constant 0 : index
    %c0_117 = arith.constant 0 : index
    %128 = vector.load %arg6[%c1_115, %c0_116, %c0_117] : memref<3x48x16xf32, #tpu.memory_space<vmem>>, vector<1x48x16xf32>
    %129 = vector.shape_cast %128 : vector<1x48x16xf32> to vector<48x16xf32>
    %cst_118 = arith.constant dense<0.000000e+00> : vector<1x16xf32>
    %130 = tpu.matmul %127, %129, %cst_118 {dimension_numbers = #tpu.dot_dimension_numbers<[1], [0], [0], [1], [0, 0, 1, 1], [], []>} : vector<1x48xf32>, vector<48x16xf32>, vector<1x16xf32> -> vector<1x16xf32>
    %131 = arith.addf %126, %130 : vector<1x16xf32>
    %132 = vector.extract_strided_slice %125 {offsets = [1, 0], sizes = [1, 48], strides = [1, 1]} : vector<6x48xf32> to vector<1x48xf32>
    %c2_119 = arith.constant 2 : index
    %c0_120 = arith.constant 0 : index
    %c0_121 = arith.constant 0 : index
    %133 = vector.load %arg6[%c2_119, %c0_120, %c0_121] : memref<3x48x16xf32, #tpu.memory_space<vmem>>, vector<1x48x16xf32>
    %134 = vector.shape_cast %133 : vector<1x48x16xf32> to vector<48x16xf32>
    %cst_122 = arith.constant dense<0.000000e+00> : vector<1x16xf32>
    %135 = tpu.matmul %132, %134, %cst_122 {dimension_numbers = #tpu.dot_dimension_numbers<[1], [0], [0], [1], [0, 0, 1, 1], [], []>} : vector<1x48xf32>, vector<48x16xf32>, vector<1x16xf32> -> vector<1x16xf32>
    %136 = arith.addf %131, %135 : vector<1x16xf32>
    %cst_123 = arith.constant 0.000000e+00 : f32
    %137 = vector.broadcast %cst_123 : f32 to vector<1x16xf32>
    %138 = arith.maximumf %136, %137 : vector<1x16xf32>
    %c0_124 = arith.constant 0 : index
    %c0_125 = arith.constant 0 : index
    %c0_126 = arith.constant 0 : index
    %139 = vector.load %arg8[%c0_124, %c0_125, %c0_126] : memref<1x2x16xf32, #tpu.memory_space<vmem>>, vector<1x1x16xf32>
    %140 = vector.shape_cast %139 : vector<1x1x16xf32> to vector<1x16xf32>
    %141 = vector.shape_cast %138 : vector<1x16xf32> to vector<1x1x16xf32>
    tpu.vector_store %arg8[%c0_124, %c0_125, %c0_126], %141 {strides = array<i32>} : memref<1x2x16xf32, #tpu.memory_space<vmem>>, vector<1x1x16xf32>,
    %c0_127 = arith.constant 0 : index
    %c0_128 = arith.constant 0 : index
    %142 = vector.load %arg7[%c0_127, %c0_128] : memref<1x16xf32, #tpu.memory_space<vmem>>, vector<1x16xf32>
    %143 = vector.extract_strided_slice %125 {offsets = [2, 0], sizes = [1, 48], strides = [1, 1]} : vector<6x48xf32> to vector<1x48xf32>
    %c0_129 = arith.constant 0 : index
    %c0_130 = arith.constant 0 : index
    %c0_131 = arith.constant 0 : index
    %144 = vector.load %arg6[%c0_129, %c0_130, %c0_131] : memref<3x48x16xf32, #tpu.memory_space<vmem>>, vector<1x48x16xf32>
    %145 = vector.shape_cast %144 : vector<1x48x16xf32> to vector<48x16xf32>
    %cst_132 = arith.constant dense<0.000000e+00> : vector<1x16xf32>
    %146 = tpu.matmul %143, %145, %cst_132 {dimension_numbers = #tpu.dot_dimension_numbers<[1], [0], [0], [1], [0, 0, 1, 1], [], []>} : vector<1x48xf32>, vector<48x16xf32>, vector<1x16xf32> -> vector<1x16xf32>
    %147 = arith.addf %142, %146 : vector<1x16xf32>
    %148 = vector.extract_strided_slice %125 {offsets = [3, 0], sizes = [1, 48], strides = [1, 1]} : vector<6x48xf32> to vector<1x48xf32>
    %c1_133 = arith.constant 1 : index
    %c0_134 = arith.constant 0 : index
    %c0_135 = arith.constant 0 : index
    %149 = vector.load %arg6[%c1_133, %c0_134, %c0_135] : memref<3x48x16xf32, #tpu.memory_space<vmem>>, vector<1x48x16xf32>
    %150 = vector.shape_cast %149 : vector<1x48x16xf32> to vector<48x16xf32>
    %cst_136 = arith.constant dense<0.000000e+00> : vector<1x16xf32>
    %151 = tpu.matmul %148, %150, %cst_136 {dimension_numbers = #tpu.dot_dimension_numbers<[1], [0], [0], [1], [0, 0, 1, 1], [], []>} : vector<1x48xf32>, vector<48x16xf32>, vector<1x16xf32> -> vector<1x16xf32>
    %152 = arith.addf %147, %151 : vector<1x16xf32>
    %153 = vector.extract_strided_slice %125 {offsets = [4, 0], sizes = [1, 48], strides = [1, 1]} : vector<6x48xf32> to vector<1x48xf32>
    %c2_137 = arith.constant 2 : index
    %c0_138 = arith.constant 0 : index
    %c0_139 = arith.constant 0 : index
    %154 = vector.load %arg6[%c2_137, %c0_138, %c0_139] : memref<3x48x16xf32, #tpu.memory_space<vmem>>, vector<1x48x16xf32>
    %155 = vector.shape_cast %154 : vector<1x48x16xf32> to vector<48x16xf32>
    %cst_140 = arith.constant dense<0.000000e+00> : vector<1x16xf32>
    %156 = tpu.matmul %153, %155, %cst_140 {dimension_numbers = #tpu.dot_dimension_numbers<[1], [0], [0], [1], [0, 0, 1, 1], [], []>} : vector<1x48xf32>, vector<48x16xf32>, vector<1x16xf32> -> vector<1x16xf32>
    %157 = arith.addf %152, %156 : vector<1x16xf32>
    %cst_141 = arith.constant 0.000000e+00 : f32
    %158 = vector.broadcast %cst_141 : f32 to vector<1x16xf32>
    %159 = arith.maximumf %157, %158 : vector<1x16xf32>
    %c0_142 = arith.constant 0 : index
    %c1_143 = arith.constant 1 : index
    %c0_144 = arith.constant 0 : index
    %160 = vector.load %arg8[%c0_142, %c1_143, %c0_144] : memref<1x2x16xf32, #tpu.memory_space<vmem>>, vector<1x1x16xf32>
    %161 = vector.shape_cast %160 : vector<1x1x16xf32> to vector<1x16xf32>
    %162 = vector.shape_cast %159 : vector<1x16xf32> to vector<1x1x16xf32>
    tpu.vector_store %arg8[%c0_142, %c1_143, %c0_144], %162 {strides = array<i32>} : memref<1x2x16xf32, #tpu.memory_space<vmem>>, vector<1x1x16xf32>,
    return
  }
  func.func @transform_0(%arg0: i32) -> (i32, i32, i32) {
    %c0_i32 = arith.constant 0 : i32
    %c0_i32_0 = arith.constant 0 : i32
    %c0_i32_1 = arith.constant 0 : i32
    return %arg0, %c0_i32, %c0_i32_0 : i32, i32, i32
  }
  func.func @transform_1(%arg0: i32) -> (i32, i32, i32) {
    %c0_i32 = arith.constant 0 : i32
    %c0_i32_0 = arith.constant 0 : i32
    %c0_i32_1 = arith.constant 0 : i32
    %c0_i32_2 = arith.constant 0 : i32
    return %c0_i32, %c0_i32_0, %c0_i32_1 : i32, i32, i32
  }
  func.func @transform_2(%arg0: i32) -> (i32, i32) {
    %c0_i32 = arith.constant 0 : i32
    %c0_i32_0 = arith.constant 0 : i32
    %c0_i32_1 = arith.constant 0 : i32
    return %c0_i32, %c0_i32_0 : i32, i32
  }
  func.func @transform_3(%arg0: i32) -> (i32, i32, i32) {
    %c0_i32 = arith.constant 0 : i32
    %c0_i32_0 = arith.constant 0 : i32
    %c0_i32_1 = arith.constant 0 : i32
    %c0_i32_2 = arith.constant 0 : i32
    return %c0_i32, %c0_i32_0, %c0_i32_1 : i32, i32, i32
  }
  func.func @transform_4(%arg0: i32) -> (i32, i32) {
    %c0_i32 = arith.constant 0 : i32
    %c0_i32_0 = arith.constant 0 : i32
    %c0_i32_1 = arith.constant 0 : i32
    return %c0_i32, %c0_i32_0 : i32, i32
  }
  func.func @transform_5(%arg0: i32) -> (i32, i32, i32) {
    %c0_i32 = arith.constant 0 : i32
    %c0_i32_0 = arith.constant 0 : i32
    %c0_i32_1 = arith.constant 0 : i32
    %c0_i32_2 = arith.constant 0 : i32
    return %c0_i32, %c0_i32_0, %c0_i32_1 : i32, i32, i32
  }
  func.func @transform_6(%arg0: i32) -> (i32, i32) {
    %c0_i32 = arith.constant 0 : i32
    %c0_i32_0 = arith.constant 0 : i32
    %c0_i32_1 = arith.constant 0 : i32
    return %c0_i32, %c0_i32_0 : i32, i32
  }
  func.func @transform_7(%arg0: i32) -> (i32, i32, i32) {
    %c0_i32 = arith.constant 0 : i32
    %c0_i32_0 = arith.constant 0 : i32
    %c0_i32_1 = arith.constant 0 : i32
    return %arg0, %c0_i32, %c0_i32_0 : i32, i32, i32
  }
}

</mosaic_0001>

<bundles_post_ra>
// kernel: downsampling_net_forward.1
= control target key start
LH: loop header
LB: loop body
LE: loop exit
PB: predicated region body
PF: predicated region fallthrough
CT: control target
= control target key end

     0   :  { %s6062_s24 = smov 0   ;;  %s9064_s0 = inlined_call_operand.vmem [shape: f32[2,90,360], index: 0, kind: input, shape index: {}]   ;;  %s9065_s1 = inlined_call_operand.vmem [shape: f32[5,360,144], index: 1, kind: input, shape index: {}]   ;;  %s9066_s2 = inlined_call_operand.vmem [shape: f32[1,144], index: 2, kind: input, shape index: {}]   ;;  %s9067_s3 = inlined_call_operand.vmem [shape: f32[3,144,48], index: 3, kind: input, shape index: {}]   ;;  %s9068_s4 = inlined_call_operand.vmem [shape: f32[1,48], index: 4, kind: input, shape index: {}]   ;;  %s9069_s5 = inlined_call_operand.vmem [shape: f32[3,48,16], index: 5, kind: input, shape index: {}]   ;;  %s9070_s6 = inlined_call_operand.vmem [shape: f32[1,16], index: 6, kind: input, shape index: {}]   ;;  %s9071_s7 = inlined_call_operand.vmem [shape: f32[2,2,16], index: 7, kind: output, shape index: {}]  }
   0x1 LB: > { %s3918_s25 = sadd.s32 4294967295, %s6017_s24   ;;  %p3922_p0 = scmp.ge.s32.totalorder %s6017_s24, 1  ;;  %s6017_s24 = sphi %s6062_s24, %s17_s24  }
   0x2   : > { %p237_p1 = scmp.lt.s32.totalorder %s6017_s24, 3 }
   0x4   : > { %p238_p2 = pnand %p3922_p0, %p237_p1 }
   0x6   : > { %241 = sbr.rel (%p238_p2) target bundleno = 1491 (0x5d3), region = 48 }
   0xd   : > { %v3926_v0 = vld [vmem:[%s9065_s1 + $0x2d8] sm:$0xff]  ;;  %v3928_v1 = vld [vmem:[%s9065_s1 + $0x2e8] sm:$0xff]  ;;  %v3925_v5 = vld [vmem:[%s9065_s1 + $0x2d0] sm:$0xff]  ;;  %v9072_v7 = vmov 0.0   ;;  %p6183_p3 = scmp.lt.s32.totalorder %s3918_s25, 1  ;;  %vm472_vm0 = vcmask 850944  }
   0xe   : > { %v3990_v2 = vld [vmem:[%s9065_s1 + $0x4d8] sm:$0xff]  ;;  %v6079_v3 = vpack.c.bf16 %v3928_v1, %v3926_v0  ;;  %v3992_v4 = vld [vmem:[%s9065_s1 + $0x4e8] sm:$0xff]  ;;  %v3927_v6 = vld [vmem:[%s9065_s1 + $0x2e0] sm:$0xff]  ;;  %610 = vmatprep.mubr.f32.mxu0 %v9072_v7  ;;  %vm865_vm1 = vcmask 1043456   ;;  %vm1126_vm2 = vcmask 1041408   ;;  %vm2392_vm3 = vcmask 130048  }
   0xf   : > { %v6091_v8 = vpack.c.bf16 %v3992_v4, %v3990_v2  ;;  %v6093_v9 = vpack.c.bf16 %v3927_v6, %v3925_v5  ;;  %v3989_v10 = vld [vmem:[%s9065_s1 + $0x4d0] sm:$0xff]  ;;  %v3991_v11 = vld [vmem:[%s9065_s1 + $0x4e0] sm:$0xff]  ;;  %v3930_v12 = vld [vmem:[%s9065_s1 + $0x2f8] sm:$0xff]  ;;  %s9892_s25 = smov (!%p6183_p3, %s3918_s25), 1  ;;  %vm6021_vm4 = vmmov 0   ;;  %vm3463_vm5 = vcmask 392192  }
  0x10   : > { %9426 = vst [vmem:[#allocation2_spill] sm:$0xff] %v6079_v3  ;;  %4482 = vmatprep.subr.bf16.mxu1 %v6079_v3  ;;  %v6105_v13 = vpack.c.bf16 %v3991_v11, %v3989_v10  ;;  %v3932_v14 = vld [vmem:[%s9065_s1 + $0x308] sm:$0xff]  ;;  %v3994_v15 = vld [vmem:[%s9065_s1 + $0x4f8] sm:$0xff]  ;;  %v3929_v19 = vld [vmem:[%s9065_s1 + $0x2f0] sm:$0xff]  ;;  %s5989_s8 = smul.u32 288, %s9892_s25  ;;  %s3924_s30 = sshll.u32 %s9892_s25, 1 }
  0x11   : > { %9427 = vst [vmem:[#allocation3_spill] sm:$0xff] %v6093_v9  ;;  %v3996_v16 = vld [vmem:[%s9065_s1 + $0x508] sm:$0xff]  ;;  %4546 = vmatprep.subr.bf16.mxu0 %v6091_v8  ;;  %4484 = vmatpush1.bf16.msra.mxu1 %v6093_v9  ;;  %v6118_v17 = vpack.c.bf16 %v3932_v14, %v3930_v12  ;;  %v3931_v20 = vld [vmem:[%s9065_s1 + $0x300] sm:$0xff]  ;;  %v3993_v21 = vld [vmem:[%s9065_s1 + $0x4f0] sm:$0xff]  ;;  %s276_s10 = scalar_lea.vmem %s9071_s7, %s3924_s30  ;;  %vm3620_vm6 = vcmask 122880  }
  0x12   : > { %v6120_v18 = vpack.c.bf16 %v3996_v16, %v3994_v15  ;;  %4548 = vmatpush1.bf16.msra.mxu0 %v6105_v13  ;;  %v6132_v22 = vpack.c.bf16 %v3931_v20, %v3929_v19  ;;  %v3995_v23 = vld [vmem:[%s9065_s1 + $0x500] sm:$0xff]  ;;  %v3934_v24 = vld [vmem:[%s9065_s1 + $0x318] sm:$0xff]  ;;  %v3936_v25 = vld [vmem:[%s9065_s1 + $0x328] sm:$0xff]  ;;  %s6302_s23 = scalar_lea.vmem %s9064_s0, %s5989_s8 }
  0x13   : > { %9428 = vst [vmem:[#allocation4_spill] sm:$0xff] %v6118_v17  ;;  %4486 = vmatprep.subr.bf16.mxu1 %v6118_v17  ;;  %v6145_v26 = vpack.c.bf16 %v3995_v23, %v3993_v21  ;;  %v6147_v27 = vpack.c.bf16 %v3936_v25, %v3934_v24  ;;  %v3998_v28 = vld [vmem:[%s9065_s1 + $0x518] sm:$0xff]  ;;  %v4000_v29 = vld [vmem:[%s9065_s1 + $0x528] sm:$0xff]  ;;  %v3933_v30 = vld [vmem:[%s9065_s1 + $0x310] sm:$0xff] }
  0x14   : > { %9429 = vst [vmem:[#allocation5_spill] sm:$0xff] %v6132_v22  ;;  %4550 = vmatprep.subr.bf16.mxu0 %v6120_v18  ;;  %v6158_v31 = vpack.c.bf16 %v4000_v29, %v3998_v28  ;;  %v3935_v32 = vld [vmem:[%s9065_s1 + $0x320] sm:$0xff]  ;;  %v3997_v33 = vld [vmem:[%s9065_s1 + $0x510] sm:$0xff]  ;;  %v3938_v36 = vld [vmem:[%s9065_s1 + $0x338] sm:$0xff] }
  0x15   : > { %9430 = vst [vmem:[#allocation6_spill] sm:$0xff] %v6147_v27  ;;  %v3999_v34 = vld [vmem:[%s9065_s1 + $0x520] sm:$0xff]  ;;  %4488 = vmatpush1.bf16.msra.mxu1 %v6132_v22  ;;  %v6170_v35 = vpack.c.bf16 %v3935_v32, %v3933_v30  ;;  %v3940_v37 = vld [vmem:[%s9065_s1 + $0x348] sm:$0xff]  ;;  %v4002_v38 = vld [vmem:[%s9065_s1 + $0x538] sm:$0xff] }
  0x16   : > { %4552 = vmatpush1.bf16.msra.mxu0 %v6145_v26  ;;  %4490 = vmatprep.subr.bf16.mxu1 %v6147_v27  ;;  %v6189_v39 = vpack.c.bf16 %v3999_v34, %v3997_v33  ;;  %v6191_v40 = vpack.c.bf16 %v3940_v37, %v3938_v36  ;;  %v4004_v41 = vld [vmem:[%s9065_s1 + $0x548] sm:$0xff]  ;;  %v3937_v42 = vld [vmem:[%s9065_s1 + $0x330] sm:$0xff]  ;;  %v3939_v43 = vld [vmem:[%s9065_s1 + $0x340] sm:$0xff] }
  0x17   : > { %9431 = vst [vmem:[#allocation7_spill] sm:$0xff] %v6170_v35  ;;  %4554 = vmatprep.subr.bf16.mxu0 %v6158_v31  ;;  %v6203_v44 = vpack.c.bf16 %v4004_v41, %v4002_v38  ;;  %v4001_v45 = vld [vmem:[%s9065_s1 + $0x530] sm:$0xff]  ;;  %v4003_v46 = vld [vmem:[%s9065_s1 + $0x540] sm:$0xff]  ;;  %v3942_v47 = vld [vmem:[%s9065_s1 + $0x358] sm:$0xff]  ;;  %v6224_v51 = vpack.c.bf16 %v3939_v43, %v3937_v42 }
  0x18   : > { %9433 = vst [vmem:[#allocation8_spill] sm:$0xff] %v6191_v40  ;;  %v3944_v48 = vld [vmem:[%s9065_s1 + $0x368] sm:$0xff]  ;;  %v4006_v49 = vld [vmem:[%s9065_s1 + $0x558] sm:$0xff]  ;;  %v6234_v52 = vpack.c.bf16 %v4003_v46, %v4001_v45  ;;  %v3941_v54 = vld [vmem:[%s9065_s1 + $0x350] sm:$0xff] }
  0x19   : > { %v4008_v50 = vld [vmem:[%s9065_s1 + $0x568] sm:$0xff]  ;;  %4492 = vmatpush1.bf16.msra.mxu1 %v6170_v35  ;;  %v6236_v53 = vpack.c.bf16 %v3944_v48, %v3942_v47  ;;  %v3943_v55 = vld [vmem:[%s9065_s1 + $0x360] sm:$0xff]  ;;  %v4005_v56 = vld [vmem:[%s9065_s1 + $0x550] sm:$0xff] }
  0x1a   : > { %4556 = vmatpush1.bf16.msra.mxu0 %v6189_v39  ;;  %4494 = vmatprep.subr.bf16.mxu1 %v6191_v40  ;;  %v6248_v57 = vpack.c.bf16 %v4008_v50, %v4006_v49  ;;  %v4007_v58 = vld [vmem:[%s9065_s1 + $0x560] sm:$0xff]  ;;  %v3946_v59 = vld [vmem:[%s9065_s1 + $0x378] sm:$0xff]  ;;  %v3948_v60 = vld [vmem:[%s9065_s1 + $0x388] sm:$0xff]  ;;  %v6266_v63 = vpack.c.bf16 %v3943_v55, %v3941_v54 }
  0x1b   : > { %4558 = vmatprep.subr.bf16.mxu0 %v6203_v44  ;;  %v4010_v61 = vld [vmem:[%s9065_s1 + $0x578] sm:$0xff]  ;;  %v4012_v62 = vld [vmem:[%s9065_s1 + $0x588] sm:$0xff]  ;;  %v6271_v0 = vpack.c.bf16 %v4007_v58, %v4005_v56  ;;  %v6273_v1 = vpack.c.bf16 %v3948_v60, %v3946_v59  ;;  %v3945_v2 = vld [vmem:[%s9065_s1 + $0x370] sm:$0xff] }
  0x1c   : > { %v3947_v4 = vld [vmem:[%s9065_s1 + $0x380] sm:$0xff]  ;;  %v4009_v5 = vld [vmem:[%s9065_s1 + $0x570] sm:$0xff]  ;;  %v6285_v6 = vpack.c.bf16 %v4012_v62, %v4010_v61  ;;  %v3950_v11 = vld [vmem:[%s9065_s1 + $0x398] sm:$0xff] }
  0x1d   : > { %4496 = vmatpush1.bf16.msra.mxu1 %v6224_v51  ;;  %v4011_v10 = vld [vmem:[%s9065_s1 + $0x580] sm:$0xff]  ;;  %v3952_v12 = vld [vmem:[%s9065_s1 + $0x3a8] sm:$0xff]  ;;  %v6297_v14 = vpack.c.bf16 %v3947_v4, %v3945_v2  ;;  %v3949_v19 = vld [vmem:[%s9065_s1 + $0x390] sm:$0xff] }
  0x1e   : > { %4560 = vmatpush1.bf16.msra.mxu0 %v6234_v52  ;;  %4498 = vmatprep.subr.bf16.mxu1 %v6236_v53  ;;  %9434 = vst [vmem:[#allocation9_spill] sm:$0xff] %v6285_v6  ;;  %v6306_v15 = vpack.c.bf16 %v4011_v10, %v4009_v5  ;;  %v6308_v16 = vpack.c.bf16 %v3952_v12, %v3950_v11  ;;  %v3951_v20 = vld [vmem:[%s9065_s1 + $0x3a0] sm:$0xff]  ;;  %v4014_v21 = vld [vmem:[%s9065_s1 + $0x598] sm:$0xff]  ;;  %v3956_v24 = vld [vmem:[%s9065_s1 + $0x3c8] sm:$0xff] }
  0x1f   : > { %4562 = vmatprep.subr.bf16.mxu0 %v6248_v57  ;;  %v3954_v23 = vld [vmem:[%s9065_s1 + $0x3b8] sm:$0xff]  ;;  %v372_v25 = vld [vmem:[%s6302_s23 + $0x40] sm:$0xfc]  ;;  %v345_v28 = vld [vmem:[%s9065_s1 + $0x208] sm:$0xff]  ;;  %v6334_v30 = vpack.c.bf16 %v3951_v20, %v3949_v19 }
  0x20   : > { %9435 = vst [vmem:[#allocation10_spill] sm:$0xff] %v6306_v15  ;;  %v347_v29 = vld [vmem:[%s9065_s1 + $0x218] sm:$0xff]  ;;  %v344_v32 = vld [vmem:[%s9065_s1 + $0x200] sm:$0xff]  ;;  %v346_v33 = vld [vmem:[%s9065_s1 + $0x210] sm:$0xff]  ;;  %v6347_v36 = vpack.c.bf16 %v3956_v24, %v3954_v23  ;;  %v469_v43 = vrot.slane %v372_v25, 2 }
  0x21   : > { %4500 = vmatpush1.bf16.msra.mxu1 %v6266_v63  ;;  %v3953_v34 = vld [vmem:[%s9065_s1 + $0x3b0] sm:$0xff]  ;;  %v3955_v37 = vld [vmem:[%s9065_s1 + $0x3c0] sm:$0xff]  ;;  %v349_v38 = vld [vmem:[%s9065_s1 + $0x228] sm:$0xff]  ;;  %v6361_v45 = vpack.c.bf16 %v347_v29, %v345_v28  ;;  %v6369_v48 = vpack.c.bf16 %v346_v33, %v344_v32 }
  0x22   : > { %4564 = vmatpush1.bf16.msra.mxu0 %v6271_v0  ;;  %4502 = vmatprep.subr.bf16.mxu1 %v6273_v1  ;;  %v351_v41 = vld [vmem:[%s9065_s1 + $0x238] sm:$0xff]  ;;  %v4013_v42 = vld [vmem:[%s9065_s1 + $0x590] sm:$0xff]  ;;  %v3960_v47 = vld [vmem:[%s9065_s1 + $0x3e8] sm:$0xff]  ;;  %v6372_v49 = vpack.c.bf16 %v3955_v37, %v3953_v34 }
  0x23   : > { %4566 = vmatprep.subr.bf16.mxu0 %v6285_v6  ;;  %9436 = vst [vmem:[#allocation11_spill] sm:$0xff] %v6361_v45  ;;  %v3958_v46 = vld [vmem:[%s9065_s1 + $0x3d8] sm:$0xff]  ;;  %9437 = vst [vmem:[#allocation12_spill] sm:$0xff] %v6369_v48  ;;  %v6374_v50 = vpack.c.bf16 %v351_v41, %v349_v38  ;;  %v348_v54 = vld [vmem:[%s9065_s1 + $0x220] sm:$0xff] }
  0x24   : > { %v350_v55 = vld [vmem:[%s9065_s1 + $0x230] sm:$0xff]  ;;  %v6386_v58 = vpack.c.bf16 %v3960_v47, %v3958_v46  ;;  %v3959_v59 = vld [vmem:[%s9065_s1 + $0x3e0] sm:$0xff]  ;;  %v353_v60 = vld [vmem:[%s9065_s1 + $0x248] sm:$0xff] }
  0x25   : > { %4504 = vmatpush1.bf16.msra.mxu1 %v6297_v14  ;;  %9438 = vst [vmem:[#allocation13_spill] sm:$0xff] %v6374_v50  ;;  %v3957_v56 = vld [vmem:[%s9065_s1 + $0x3d0] sm:$0xff]  ;;  %v355_v61 = vld [vmem:[%s9065_s1 + $0x258] sm:$0xff]  ;;  %v3964_v2 = vld [vmem:[%s9065_s1 + $0x408] sm:$0xff]  ;;  %v6406_v4 = vpack.c.bf16 %v350_v55, %v348_v54 }
  0x26   : > { %4568 = vmatpush1.bf16.msra.mxu0 %v6306_v15  ;;  %4506 = vmatprep.subr.bf16.mxu1 %v6308_v16  ;;  %v3962_v62 = vld [vmem:[%s9065_s1 + $0x3f8] sm:$0xff]  ;;  %v6411_v5 = vpack.c.bf16 %v3959_v59, %v3957_v56  ;;  %v6413_v10 = vpack.c.bf16 %v355_v61, %v353_v60  ;;  %v352_v11 = vld [vmem:[%s9065_s1 + $0x240] sm:$0xff]  ;;  %v354_v12 = vld [vmem:[%s9065_s1 + $0x250] sm:$0xff] }
  0x27   : > { %570 = vmatprep.subr.mxu0 %v4014_v21  ;;  %9439 = vst [vmem:[#allocation14_spill] sm:$0xff] %v6406_v4  ;;  %v3961_v19 = vld [vmem:[%s9065_s1 + $0x3f0] sm:$0xff]  ;;  %v6425_v20 = vpack.c.bf16 %v3964_v2, %v3962_v62  ;;  %v3963_v21 = vld [vmem:[%s9065_s1 + $0x400] sm:$0xff]  ;;  %v357_v23 = vld [vmem:[%s9065_s1 + $0x268] sm:$0xff]  ;;  %v6443_v29 = vpack.c.bf16 %v354_v12, %v352_v11 }
  0x28   : > { %9440 = vst [vmem:[#allocation15_spill] sm:$0xff] %v6413_v10  ;;  %v359_v24 = vld [vmem:[%s9065_s1 + $0x278] sm:$0xff]  ;;  %v3968_v28 = vld [vmem:[%s9065_s1 + $0x428] sm:$0xff]  ;;  %v6447_v32 = vpack.c.bf16 %v3963_v21, %v3961_v19  ;;  %v356_v34 = vld [vmem:[%s9065_s1 + $0x260] sm:$0xff] }
  0x29   : > { %4508 = vmatpush1.bf16.msra.mxu1 %v6334_v30  ;;  %v3966_v25 = vld [vmem:[%s9065_s1 + $0x418] sm:$0xff]  ;;  %9441 = vst [vmem:[#allocation16_spill] sm:$0xff] %v6443_v29  ;;  %v6449_v33 = vpack.c.bf16 %v359_v24, %v357_v23  ;;  %v358_v37 = vld [vmem:[%s9065_s1 + $0x270] sm:$0xff]  ;;  %v3972_v54 = vld [vmem:[%s9065_s1 + $0x448] sm:$0xff] }
  0x2a   : > { %571 = vmatpush1.msra.mxu0 %v4013_v42  ;;  %4510 = vmatprep.subr.bf16.mxu1 %v6347_v36  ;;  %v3965_v38 = vld [vmem:[%s9065_s1 + $0x410] sm:$0xff]  ;;  %v6461_v41 = vpack.c.bf16 %v3968_v28, %v3966_v25  ;;  %v3967_v42 = vld [vmem:[%s9065_s1 + $0x420] sm:$0xff]  ;;  %v363_v46 = vld [vmem:[%s9065_s1 + $0x298] sm:$0xff]  ;;  %v6479_v55 = vpack.c.bf16 %v358_v37, %v356_v34 }
  0x2b   : > { %4015 = vmatmul.mubr.msk.f32.vlgmr.msra.gmra.mrb[0].mxu0 %vm472_vm0, %v469_v43  ;;  %4634 = vmatprep.subr.bf16.mxu0 %v6361_v45  ;;  %9442 = vst [vmem:[#allocation17_spill] sm:$0xff] %v6449_v33  ;;  %v361_v43 = vld [vmem:[%s9065_s1 + $0x288] sm:$0xff]  ;;  %v3970_v47 = vld [vmem:[%s9065_s1 + $0x438] sm:$0xff]  ;;  %v6483_v56 = vpack.c.bf16 %v3967_v42, %v3965_v38  ;;  %v360_v60 = vld [vmem:[%s9065_s1 + $0x280] sm:$0xff] }
  0x2c   : > { %4636 = vmatpush1.bf16.msra.mxu0 %v6369_v48  ;;  %755 = vmatprep.mubr.f32.mxu0 %v9072_v7  ;;  %9443 = vst [vmem:[#allocation18_spill] sm:$0xff] %v6479_v55  ;;  %v6485_v59 = vpack.c.bf16 %v363_v46, %v361_v43  ;;  %v362_v61 = vld [vmem:[%s9065_s1 + $0x290] sm:$0xff]  ;;  %v6497_v2 = vpack.c.bf16 %v3972_v54, %v3970_v47  ;;  %v3971_v11 = vld [vmem:[%s9065_s1 + $0x440] sm:$0xff]  ;;  %v365_v12 = vld [vmem:[%s9065_s1 + $0x2a8] sm:$0xff] }
  0x2d   : > { %4512 = vmatpush1.bf16.msra.mxu1 %v6372_v49  ;;  %4638 = vmatprep.subr.bf16.mxu0 %v6374_v50  ;;  %v3969_v62 = vld [vmem:[%s9065_s1 + $0x430] sm:$0xff]  ;;  %v367_v19 = vld [vmem:[%s9065_s1 + $0x2b8] sm:$0xff]  ;;  %v3976_v23 = vld [vmem:[%s9065_s1 + $0x468] sm:$0xff]  ;;  %v6515_v24 = vpack.c.bf16 %v362_v61, %v360_v60 }
  0x2e   : > { %4514 = vmatprep.subr.bf16.mxu1 %v6386_v58  ;;  %9444 = vst [vmem:[#allocation19_spill] sm:$0xff] %v6485_v59  ;;  %v3974_v21 = vld [vmem:[%s9065_s1 + $0x458] sm:$0xff]  ;;  %v6520_v28 = vpack.c.bf16 %v3971_v11, %v3969_v62  ;;  %v6522_v34 = vpack.c.bf16 %v367_v19, %v365_v12  ;;  %v364_v37 = vld [vmem:[%s9065_s1 + $0x2a0] sm:$0xff]  ;;  %v366_v38 = vld [vmem:[%s9065_s1 + $0x2b0] sm:$0xff] }
  0x2f   : > { %9445 = vst [vmem:[#allocation20_spill] sm:$0xff] %v6515_v24  ;;  %v371_v25 = vld [vmem:[%s6302_s23 + $0x38] sm:$0xfc]  ;;  %v6531_v43 = vpack.c.bf16 %v3976_v23, %v3974_v21  ;;  %v3973_v46 = vld [vmem:[%s9065_s1 + $0x450] sm:$0xff]  ;;  %v3975_v47 = vld [vmem:[%s9065_s1 + $0x460] sm:$0xff]  ;;  %v6546_v61 = vpack.c.bf16 %v366_v38, %v364_v37 }
  0x30   : > { %4640 = vmatpush1.bf16.msra.mxu0 %v6406_v4  ;;  %9446 = vst [vmem:[#allocation21_spill] sm:$0xff] %v6522_v34  ;;  %v468_v42 = vrot.slane %v371_v25, 2  ;;  %v3978_v54 = vld [vmem:[%s9065_s1 + $0x478] sm:$0xff]  ;;  %v3980_v60 = vld [vmem:[%s9065_s1 + $0x488] sm:$0xff]  ;;  %v6550_v62 = vpack.c.bf16 %v3975_v47, %v3973_v46  ;;  %v3977_v23 = vld [vmem:[%s9065_s1 + $0x470] sm:$0xff] }
  0x31   : > { %4516 = vmatpush1.bf16.msra.mxu1 %v6411_v5  ;;  %4642 = vmatprep.subr.bf16.mxu0 %v6413_v10  ;;  %9447 = vst [vmem:[#allocation22_spill] sm:$0xff] %v6546_v61  ;;  %v369_v11 = vld [vmem:[%s9065_s1 + $0x2c8] sm:$0xff]  ;;  %v6559_v19 = vpack.c.bf16 %v3980_v60, %v3978_v54  ;;  %v4020_v21 = vld [vmem:[%s9065_s1 + $0x5b8] sm:$0xff]  ;;  %v3979_v25 = vld [vmem:[%s9065_s1 + $0x480] sm:$0xff] }
  0x32   : > { %4518 = vmatprep.subr.bf16.mxu1 %v6425_v20  ;;  %539 = vmatprep.mubr.f32.mxu1 %v468_v42  ;;  %v4018_v12 = vld [vmem:[%s9065_s1 + $0x5a8] sm:$0xff]  ;;  %v3982_v37 = vld [vmem:[%s9065_s1 + $0x498] sm:$0xff]  ;;  %v4017_v42 = vld [vmem:[%s9065_s1 + $0x5a0] sm:$0xff]  ;;  %v6589_v60 = vpack.c.bf16 %v3979_v25, %v3977_v23 }
  0x33   : > { %v3984_v38 = vld [vmem:[%s9065_s1 + $0x4a8] sm:$0xff]  ;;  %v4019_v46 = vld [vmem:[%s9065_s1 + $0x5b0] sm:$0xff]  ;;  %v368_v47 = vld [vmem:[%s9065_s1 + $0x2c0] sm:$0xff]  ;;  %v6587_v54 = vpack.c.bf16 %v4020_v21, %v4018_v12 }
  0x34   : > { %4644 = vmatpush1.bf16.msra.mxu0 %v6443_v29  ;;  %v4022_v7 = vld [vmem:[%s9065_s1 + $0x5c8] sm:$0xff]  ;;  %v3983_v12 = vld [vmem:[%s9065_s1 + $0x4a0] sm:$0xff]  ;;  %v279_v21 = vld [vmem:[%s6302_s23 + $0x10] sm:$0x3f]  ;;  %v6607_v23 = vpack.c.bf16 %v4019_v46, %v4017_v42 }
  0x35   : > { %4520 = vmatpush1.bf16.msra.mxu1 %v6447_v32  ;;  %4646 = vmatprep.subr.bf16.mxu0 %v6449_v33  ;;  %9448 = vst [vmem:[#allocation23_spill] sm:$0xff] %v6587_v54  ;;  %v3986_v25 = vld [vmem:[%s9065_s1 + $0x4b8] sm:$0xff]  ;;  %v4023_v42 = vld [vmem:[%s9065_s1 + $0x5d0] sm:$0xff]  ;;  %v285_v33 = vld [vmem:[%s9065_s1 + $0x28] sm:$0xff] }
  0x36   : > { %4522 = vmatprep.subr.bf16.mxu1 %v6461_v41  ;;  %9449 = vst [vmem:[#allocation24_spill] sm:$0xff] %v6607_v23  ;;  %v4029_v10 = vld [vmem:[%s9065_s1 + $0x600] sm:$0xff]  ;;  %v297_v48 = vld [vmem:[%s9065_s1 + $0x88] sm:$0xff] }
  0x37   : > { %v4033_v4 = vld [vmem:[%s9065_s1 + $0x620] sm:$0xff] }
  0x38   : > { %4648 = vmatpush1.bf16.msra.mxu0 %v6479_v55  ;;  %v4030_v55 = vld [vmem:[%s9065_s1 + $0x608] sm:$0xff]  ;;  %v4037_v50 = vld [vmem:[%s9065_s1 + $0x640] sm:$0xff] }
  0x39   : > { %4524 = vmatpush1.bf16.msra.mxu1 %v6483_v56  ;;  %4650 = vmatprep.subr.bf16.mxu0 %v6485_v59  ;;  %v4025_v59 = vld [vmem:[%s9065_s1 + $0x5e0] sm:$0xff] }
  0x3a   : > { %4526 = vmatprep.subr.bf16.mxu1 %v6497_v2  ;;  %v4041_v45 = vld [vmem:[%s9065_s1 + $0x660] sm:$0xff] }
  0x3c   : > { %4652 = vmatpush1.bf16.msra.mxu0 %v6515_v24  ;;  %v4021_v24 = vld [vmem:[%s9065_s1 + $0x5c0] sm:$0xff] }
  0x3d   : > { %4528 = vmatpush1.bf16.msra.mxu1 %v6520_v28  ;;  %4654 = vmatprep.subr.bf16.mxu0 %v6522_v34  ;;  %v6598_v34 = vpack.c.bf16 %v3984_v38, %v3982_v37  ;;  %v3988_v37 = vld [vmem:[%s9065_s1 + $0x4c8] sm:$0xff] }
  0x3e   : > { %4530 = vmatprep.subr.bf16.mxu1 %v6531_v43 }
  0x40   : > { %4656 = vmatpush1.bf16.msra.mxu0 %v6546_v61  ;;  %v4024_v61 = vld [vmem:[%s9065_s1 + $0x5d8] sm:$0xff] }
  0x41   : > { %4532 = vmatpush1.bf16.msra.mxu1 %v6550_v62  ;;  %715 = vmatprep.subr.mxu0 %v369_v11  ;;  %v3981_v11 = vld [vmem:[%s9065_s1 + $0x490] sm:$0xff]  ;;  %v6615_v38 = vpack.c.bf16 %v4024_v61, %v4022_v7  ;;  %v4028_v7 = vld [vmem:[%s9065_s1 + $0x5f8] sm:$0xff]  ;;  %v6635_v61 = vpack.c.bf16 %v3988_v37, %v3986_v25 }
  0x42   : > { %4534 = vmatprep.subr.bf16.mxu1 %v6559_v19  ;;  %v6625_v46 = vpack.c.bf16 %v3983_v12, %v3981_v11  ;;  %v3985_v11 = vld [vmem:[%s9065_s1 + $0x4b0] sm:$0xff]  ;;  %v3987_v12 = vld [vmem:[%s9065_s1 + $0x4c0] sm:$0xff]  ;;  %v283_v25 = vld [vmem:[%s9065_s1 + $0x18] sm:$0xff] }
  0x43   : > { %9450 = vst [vmem:[#allocation25_spill] sm:$0xff] %v6615_v38 }
  0x44   : > { %716 = vmatpush1.msra.mxu0 %v368_v47  ;;  %v4026_v47 = vld [vmem:[%s9065_s1 + $0x5e8] sm:$0xff] }
  0x45   : > { %4658 = vmatprep.subr.bf16.mxu0 %v6587_v54  ;;  %4536 = vmatpush1.bf16.msra.mxu1 %v6589_v60  ;;  %v6644_v54 = vpack.c.bf16 %v4023_v42, %v4021_v24  ;;  %v6653_v37 = vpack.c.bf16 %v4028_v7, %v4026_v47  ;;  %v4027_v24 = vld [vmem:[%s9065_s1 + $0x5f0] sm:$0xff]  ;;  %v6662_v42 = vpack.c.bf16 %v3987_v12, %v3985_v11  ;;  %v4032_v47 = vld [vmem:[%s9065_s1 + $0x618] sm:$0xff] }
  0x46   : > { %4016 = vmatmul.mubr.msk.f32.vlgmr.msra.gmra.mrb[2].mxu0 %vm472_vm0, %v279_v21  ;;  %4538 = vmatprep.subr.bf16.mxu1 %v6598_v34  ;;  %v281_v21 = vld [vmem:[%s9065_s1 + $0x8] sm:$0xff]  ;;  %v282_v11 = vld [vmem:[%s9065_s1 + $0x10] sm:$0xff]  ;;  %v6681_v12 = vpack.c.bf16 %v4027_v24, %v4025_v59  ;;  %v6690_v29 = vpack.c.bf16 %v4032_v47, %v4030_v55  ;;  %v4036_v55 = vld [vmem:[%s9065_s1 + $0x638] sm:$0xff] }
  0x47   : > { %4660 = vmatpush1.bf16.msra.mxu0 %v6607_v23  ;;  %9451 = vst [vmem:[#allocation26_spill] sm:$0xff] %v6644_v54  ;;  %9452 = vst [vmem:[#allocation27_spill] sm:$0xff] %v6653_v37  ;;  %v370_v23 = vld [vmem:[%s6302_s23 + $0x30] sm:$0xfc]  ;;  %v6672_v7 = vpack.c.bf16 %v283_v25, %v281_v21  ;;  %v287_v21 = vld [vmem:[%s9065_s1 + $0x38] sm:$0xff] }
  0x48   : > { %4662 = vmatprep.subr.bf16.mxu0 %v6615_v38  ;;  %v280_v38 = vld [vmem:[%s9065_s1] sm:$0xff]  ;;  %9454 = vst [vmem:[#allocation29_spill] sm:$0xff] %v6681_v12  ;;  %v467_v25 = vrot.slane %v370_v23, 2  ;;  %9455 = vst [vmem:[#allocation30_spill] sm:$0xff] %v6690_v29  ;;  %v4031_v59 = vld [vmem:[%s9065_s1 + $0x610] sm:$0xff]  ;;  %v6708_v23 = vpack.c.bf16 %v287_v21, %v285_v33 }
  0x49   : > { %4540 = vmatpush1.bf16.msra.mxu1 %v6625_v46  ;;  %9453 = vst [vmem:[#allocation28_spill] sm:$0xff] %v6672_v7  ;;  %v6699_v24 = vpack.c.bf16 %v282_v11, %v280_v38  ;;  %v284_v47 = vld [vmem:[%s9065_s1 + $0x20] sm:$0xff]  ;;  %v286_v38 = vld [vmem:[%s9065_s1 + $0x30] sm:$0xff]  ;;  %v6717_v11 = vpack.c.bf16 %v4031_v59, %v4029_v10  ;;  %v291_v33 = vld [vmem:[%s9065_s1 + $0x58] sm:$0xff] }
  0x4a   : > { %4542 = vmatprep.subr.bf16.mxu1 %v6635_v61  ;;  %9457 = vst [vmem:[#allocation32_spill] sm:$0xff] %v6708_v23  ;;  %v4035_v10 = vld [vmem:[%s9065_s1 + $0x630] sm:$0xff]  ;;  %v6735_v59 = vpack.c.bf16 %v286_v38, %v284_v47 }
  0x4b   : > { %4664 = vmatpush1.bf16.msra.mxu0 %v6644_v54  ;;  %9456 = vst [vmem:[#allocation31_spill] sm:$0xff] %v6699_v24  ;;  %v4034_v54 = vld [vmem:[%s9065_s1 + $0x628] sm:$0xff]  ;;  %9458 = vst [vmem:[#allocation33_spill] sm:$0xff] %v6717_v11  ;;  %v290_v47 = vld [vmem:[%s9065_s1 + $0x50] sm:$0xff]  ;;  %v6753_v38 = vpack.c.bf16 %v4035_v10, %v4033_v4 }
  0x4c   : > { %4666 = vmatprep.subr.bf16.mxu0 %v6653_v37  ;;  %v289_v37 = vld [vmem:[%s9065_s1 + $0x48] sm:$0xff]  ;;  %v6726_v21 = vpack.c.bf16 %v4036_v55, %v4034_v54  ;;  %9460 = vst [vmem:[#allocation35_spill] sm:$0xff] %v6735_v59  ;;  %v4040_v54 = vld [vmem:[%s9065_s1 + $0x658] sm:$0xff]  ;;  %v4039_v4 = vld [vmem:[%s9065_s1 + $0x650] sm:$0xff] }
  0x4d   : > { %4544 = vmatpush1.bf16.msra.mxu1 %v6662_v42  ;;  %v6744_v55 = vpack.c.bf16 %v291_v33, %v289_v37  ;;  %9462 = vst [vmem:[#allocation37_spill] sm:$0xff] %v6753_v38  ;;  %v295_v37 = vld [vmem:[%s9065_s1 + $0x78] sm:$0xff] }
  0x4e   : > { %4570 = vmatprep.subr.bf16.mxu1 %v6672_v7  ;;  %9459 = vst [vmem:[#allocation34_spill] sm:$0xff] %v6726_v21 }
  0x4f   : > { %4668 = vmatpush1.bf16.msra.mxu0 %v6681_v12  ;;  %9461 = vst [vmem:[#allocation36_spill] sm:$0xff] %v6744_v55  ;;  %v293_v12 = vld [vmem:[%s9065_s1 + $0x68] sm:$0xff] }
  0x50   : > { %540 = vmatmul.mubr.f32.vlgmr.msra.gmra.mrb[0].mxu1 %v467_v25  ;;  %4670 = vmatprep.subr.bf16.mxu0 %v6690_v29  ;;  %v4038_v25 = vld [vmem:[%s9065_s1 + $0x648] sm:$0xff]  ;;  %v288_v29 = vld [vmem:[%s9065_s1 + $0x40] sm:$0xff] }
  0x51   : > { %4572 = vmatpush1.bf16.msra.mxu1 %v6699_v24  ;;  %v6762_v33 = vpack.c.bf16 %v4040_v54, %v4038_v25  ;;  %v6771_v10 = vpack.c.bf16 %v290_v47, %v288_v29  ;;  %v4044_v25 = vld [vmem:[%s9065_s1 + $0x678] sm:$0xff]  ;;  %v6780_v54 = vpack.c.bf16 %v295_v37, %v293_v12  ;;  %v294_v29 = vld [vmem:[%s9065_s1 + $0x70] sm:$0xff]  ;;  %v6789_v47 = vpack.c.bf16 %v4039_v4, %v4037_v50 }
  0x52   : > { %4574 = vmatprep.subr.bf16.mxu1 %v6708_v23  ;;  %v299_v12 = vld [vmem:[%s9065_s1 + $0x98] sm:$0xff]  ;;  %v4043_v50 = vld [vmem:[%s9065_s1 + $0x670] sm:$0xff] }
  0x53   : > { %4672 = vmatpush1.bf16.msra.mxu0 %v6717_v11  ;;  %9463 = vst [vmem:[#allocation38_spill] sm:$0xff] %v6762_v33  ;;  %9464 = vst [vmem:[#allocation39_spill] sm:$0xff] %v6771_v10  ;;  %v4042_v11 = vld [vmem:[%s9065_s1 + $0x668] sm:$0xff] }
  0x54   : > { %4674 = vmatprep.subr.bf16.mxu0 %v6726_v21  ;;  %9465 = vst [vmem:[#allocation40_spill] sm:$0xff] %v6780_v54  ;;  %v292_v21 = vld [vmem:[%s9065_s1 + $0x60] sm:$0xff]  ;;  %9466 = vst [vmem:[#allocation41_spill] sm:$0xff] %v6789_v47  ;;  %v6798_v37 = vpack.c.bf16 %v4044_v25, %v4042_v11  ;;  %v4048_v11 = vld [vmem:[%s9065_s1 + $0x698] sm:$0xff]  ;;  %v6816_v25 = vpack.c.bf16 %v299_v12, %v297_v48 }
  0x55   : > { %4576 = vmatpush1.bf16.msra.mxu1 %v6735_v59  ;;  %v6807_v4 = vpack.c.bf16 %v294_v29, %v292_v21  ;;  %v298_v21 = vld [vmem:[%s9065_s1 + $0x90] sm:$0xff]  ;;  %v6825_v29 = vpack.c.bf16 %v4043_v50, %v4041_v45  ;;  %v301_v48 = vld [vmem:[%s9065_s1 + $0xa8] sm:$0xff]  ;;  %v303_v12 = vld [vmem:[%s9065_s1 + $0xb8] sm:$0xff] }
  0x56   : > { %4578 = vmatprep.subr.bf16.mxu1 %v6744_v55  ;;  %9467 = vst [vmem:[#allocation42_spill] sm:$0xff] %v6798_v37  ;;  %9469 = vst [vmem:[#allocation44_spill] sm:$0xff] %v6816_v25  ;;  %v4047_v45 = vld [vmem:[%s9065_s1 + $0x690] sm:$0xff]  ;;  %v763_v50 = vld [vmem:[%s6302_s23 + $0x68] sm:$0xf0]  ;;  %v6854_v23 = vpack.c.bf16 %v303_v12, %v301_v48 }
  0x57   : > { %4676 = vmatpush1.bf16.msra.mxu0 %v6753_v38  ;;  %9468 = vst [vmem:[#allocation43_spill] sm:$0xff] %v6807_v4  ;;  %v296_v38 = vld [vmem:[%s9065_s1 + $0x80] sm:$0xff]  ;;  %9470 = vst [vmem:[#allocation45_spill] sm:$0xff] %v6825_v29  ;;  %v4050_v59 = vld [vmem:[%s9065_s1 + $0x6a8] sm:$0xff] }
  0x58   : > { %4678 = vmatprep.subr.bf16.mxu0 %v6762_v33  ;;  %v4046_v33 = vld [vmem:[%s9065_s1 + $0x688] sm:$0xff]  ;;  %v6845_v55 = vpack.c.bf16 %v298_v21, %v296_v38  ;;  %9473 = vst [vmem:[#allocation48_spill] sm:$0xff] %v6854_v23  ;;  %v302_v38 = vld [vmem:[%s9065_s1 + $0xb0] sm:$0xff]  ;;  %v307_v48 = vld [vmem:[%s9065_s1 + $0xd8] sm:$0xff] }
  0x59   : > { %4580 = vmatpush1.bf16.msra.mxu1 %v6771_v10  ;;  %v4045_v10 = vld [vmem:[%s9065_s1 + $0x680] sm:$0xff] }
  0x5a   : > { %4582 = vmatprep.subr.bf16.mxu1 %v6780_v54  ;;  %v6837_v54 = vpack.c.bf16 %v4048_v11, %v4046_v33  ;;  %9472 = vst [vmem:[#allocation47_spill] sm:$0xff] %v6845_v55  ;;  %v4052_v33 = vld [vmem:[%s9065_s1 + $0x6b8] sm:$0xff]  ;;  %v869_v11 = vrot.slane %v763_v50, 4  ;;  %v6863_v21 = vpack.c.bf16 %v4047_v45, %v4045_v10  ;;  %v4051_v10 = vld [vmem:[%s9065_s1 + $0x6b0] sm:$0xff] }
  0x5b   : > { %4680 = vmatpush1.bf16.msra.mxu0 %v6789_v47  ;;  %v766_v47 = vld [vmem:[%s6302_s23 + $0x80] sm:$0x3]  ;;  %v6873_v50 = vpack.c.bf16 %v4052_v33, %v4050_v59  ;;  %v4056_v59 = vld [vmem:[%s9065_s1 + $0x6d8] sm:$0xff] }
  0x5c   : > { %4682 = vmatprep.subr.bf16.mxu0 %v6798_v37  ;;  %9471 = vst [vmem:[#allocation46_spill] sm:$0xff] %v6837_v54  ;;  %v870_v37 = vrot.slane %v766_v47, 4  ;;  %9474 = vst [vmem:[#allocation49_spill] sm:$0xff] %v6863_v21  ;;  %v305_v47 = vld [vmem:[%s9065_s1 + $0xc8] sm:$0xff] }
  0x5d   : > { %4584 = vmatpush1.bf16.msra.mxu1 %v6807_v4  ;;  %v300_v4 = vld [vmem:[%s9065_s1 + $0xa0] sm:$0xff]  ;;  %9475 = vst [vmem:[#allocation50_spill] sm:$0xff] %v6873_v50  ;;  %v6891_v33 = vpack.c.bf16 %v307_v48, %v305_v47  ;;  %v311_v47 = vld [vmem:[%s9065_s1 + $0xf8] sm:$0xff] }
  0x5e   : > { %4586 = vmatprep.subr.bf16.mxu1 %v6816_v25  ;;  %v871_v12 = vsel %vm865_vm1, %v869_v11, %v870_v37  ;;  %v6882_v45 = vpack.c.bf16 %v302_v38, %v300_v4  ;;  %v4054_v37 = vld [vmem:[%s9065_s1 + $0x6c8] sm:$0xff]  ;;  %v304_v11 = vld [vmem:[%s9065_s1 + $0xc0] sm:$0xff]  ;;  %v306_v4 = vld [vmem:[%s9065_s1 + $0xd0] sm:$0xff] }
  0x5f   : > { %4684 = vmatpush1.bf16.msra.mxu0 %v6825_v29  ;;  %v4049_v29 = vld [vmem:[%s9065_s1 + $0x6a0] sm:$0xff]  ;;  %943 = vmatprep.mubr.f32.mxu0 %v871_v12  ;;  %9477 = vst [vmem:[#allocation52_spill] sm:$0xff] %v6891_v33  ;;  %v309_v12 = vld [vmem:[%s9065_s1 + $0xe8] sm:$0xff]  ;;  %v6909_v48 = vpack.c.bf16 %v4056_v59, %v4054_v37  ;;  %v4060_v37 = vld [vmem:[%s9065_s1 + $0x6f8] sm:$0xff] }
  0x60   : > { %4686 = vmatprep.subr.bf16.mxu0 %v6837_v54  ;;  %9476 = vst [vmem:[#allocation51_spill] sm:$0xff] %v6882_v45  ;;  %v6900_v38 = vpack.c.bf16 %v4051_v10, %v4049_v29  ;;  %v4053_v54 = vld [vmem:[%s9065_s1 + $0x6c0] sm:$0xff]  ;;  %v4055_v29 = vld [vmem:[%s9065_s1 + $0x6d0] sm:$0xff]  ;;  %v6918_v10 = vpack.c.bf16 %v306_v4, %v304_v11  ;;  %v278_v59 = vld [vmem:[%s6302_s23 + $0x8] sm:$0x3f] }
  0x61   : > { %4588 = vmatpush1.bf16.msra.mxu1 %v6845_v55  ;;  %9479 = vst [vmem:[#allocation54_spill] sm:$0xff] %v6909_v48  ;;  %v310_v11 = vld [vmem:[%s9065_s1 + $0xf0] sm:$0xff]  ;;  %684 = vmatprep.mubr.f32.mxu1 %v278_v59  ;;  %v6937_v4 = vpack.c.bf16 %v4055_v29, %v4053_v54  ;;  %v4057_v59 = vld [vmem:[%s9065_s1 + $0x6e0] sm:$0xff]  ;;  %v4082_v55 = vld [vmem:[%s9065_s1 + $0x7a8] sm:$0xff] }
  0x62   : > { %4590 = vmatprep.subr.bf16.mxu1 %v6854_v23  ;;  %9478 = vst [vmem:[#allocation53_spill] sm:$0xff] %v6900_v38  ;;  %9480 = vst [vmem:[#allocation55_spill] sm:$0xff] %v6918_v10  ;;  %v308_v23 = vld [vmem:[%s9065_s1 + $0xe0] sm:$0xff]  ;;  %v4059_v54 = vld [vmem:[%s9065_s1 + $0x6f0] sm:$0xff] }
  0x63   : > { %4688 = vmatpush1.bf16.msra.mxu0 %v6863_v21  ;;  %v4058_v21 = vld [vmem:[%s9065_s1 + $0x6e8] sm:$0xff]  ;;  %9482 = vst [vmem:[#allocation57_spill] sm:$0xff] %v6937_v4  ;;  %v6955_v29 = vpack.c.bf16 %v310_v11, %v308_v23  ;;  %v314_v23 = vld [vmem:[%s9065_s1 + $0x110] sm:$0xff]  ;;  %v6973_v11 = vpack.c.bf16 %v4059_v54, %v4057_v59 }
  0x64   : > { %4690 = vmatprep.subr.bf16.mxu0 %v6873_v50  ;;  %v6928_v50 = vpack.c.bf16 %v311_v47, %v309_v12  ;;  %v315_v12 = vld [vmem:[%s9065_s1 + $0x118] sm:$0xff]  ;;  %v6946_v47 = vpack.c.bf16 %v4060_v37, %v4058_v21  ;;  %v4063_v59 = vld [vmem:[%s9065_s1 + $0x710] sm:$0xff] }
  0x65   : > { %4592 = vmatpush1.bf16.msra.mxu1 %v6882_v45  ;;  %v313_v45 = vld [vmem:[%s9065_s1 + $0x108] sm:$0xff]  ;;  %9484 = vst [vmem:[#allocation59_spill] sm:$0xff] %v6955_v29  ;;  %v4064_v21 = vld [vmem:[%s9065_s1 + $0x718] sm:$0xff]  ;;  %9486 = vst [vmem:[#allocation61_spill] sm:$0xff] %v6973_v11 }
  0x66   : > { %4594 = vmatprep.subr.bf16.mxu1 %v6891_v33  ;;  %9481 = vst [vmem:[#allocation56_spill] sm:$0xff] %v6928_v50  ;;  %9483 = vst [vmem:[#allocation58_spill] sm:$0xff] %v6946_v47  ;;  %v6964_v37 = vpack.c.bf16 %v315_v12, %v313_v45  ;;  %v319_v45 = vld [vmem:[%s9065_s1 + $0x138] sm:$0xff] }
  0x67   : > { %4692 = vmatpush1.bf16.msra.mxu0 %v6900_v38  ;;  %v4062_v38 = vld [vmem:[%s9065_s1 + $0x708] sm:$0xff] }
  0x68   : > { %4694 = vmatprep.subr.bf16.mxu0 %v6909_v48  ;;  %9485 = vst [vmem:[#allocation60_spill] sm:$0xff] %v6964_v37  ;;  %v312_v48 = vld [vmem:[%s9065_s1 + $0x100] sm:$0xff]  ;;  %v6982_v12 = vpack.c.bf16 %v4064_v21, %v4062_v38  ;;  %v4068_v38 = vld [vmem:[%s9065_s1 + $0x738] sm:$0xff] }
  0x69   : > { %4596 = vmatpush1.bf16.msra.mxu1 %v6918_v10  ;;  %v317_v10 = vld [vmem:[%s9065_s1 + $0x128] sm:$0xff]  ;;  %v6991_v54 = vpack.c.bf16 %v314_v23, %v312_v48  ;;  %v318_v48 = vld [vmem:[%s9065_s1 + $0x130] sm:$0xff] }
  0x6a   : > { %4598 = vmatprep.subr.bf16.mxu1 %v6928_v50  ;;  %9487 = vst [vmem:[#allocation62_spill] sm:$0xff] %v6982_v12  ;;  %v4061_v50 = vld [vmem:[%s9065_s1 + $0x700] sm:$0xff]  ;;  %v7000_v21 = vpack.c.bf16 %v319_v45, %v317_v10  ;;  %v323_v10 = vld [vmem:[%s9065_s1 + $0x158] sm:$0xff] }
  0x6b   : > { %4696 = vmatpush1.bf16.msra.mxu0 %v6937_v4  ;;  %9488 = vst [vmem:[#allocation63_spill] sm:$0xff] %v6991_v54  ;;  %v4066_v4 = vld [vmem:[%s9065_s1 + $0x728] sm:$0xff]  ;;  %v7009_v23 = vpack.c.bf16 %v4063_v59, %v4061_v50  ;;  %v4067_v50 = vld [vmem:[%s9065_s1 + $0x730] sm:$0xff] }
  0x6c   : > { %4698 = vmatprep.subr.bf16.mxu0 %v6946_v47  ;;  %9489 = vst [vmem:[#allocation64_spill] sm:$0xff] %v7000_v21  ;;  %v316_v47 = vld [vmem:[%s9065_s1 + $0x120] sm:$0xff]  ;;  %v7018_v45 = vpack.c.bf16 %v4068_v38, %v4066_v4  ;;  %v4072_v4 = vld [vmem:[%s9065_s1 + $0x758] sm:$0xff] }
  0x6d   : > { %4600 = vmatpush1.bf16.msra.mxu1 %v6955_v29  ;;  %9490 = vst [vmem:[#allocation65_spill] sm:$0xff] %v7009_v23  ;;  %v321_v29 = vld [vmem:[%s9065_s1 + $0x148] sm:$0xff]  ;;  %v7027_v59 = vpack.c.bf16 %v318_v48, %v316_v47  ;;  %v322_v47 = vld [vmem:[%s9065_s1 + $0x150] sm:$0xff] }
  0x6e   : > { %4602 = vmatprep.subr.bf16.mxu1 %v6964_v37  ;;  %9491 = vst [vmem:[#allocation66_spill] sm:$0xff] %v7018_v45  ;;  %v4065_v37 = vld [vmem:[%s9065_s1 + $0x720] sm:$0xff]  ;;  %v7036_v38 = vpack.c.bf16 %v323_v10, %v321_v29  ;;  %v327_v29 = vld [vmem:[%s9065_s1 + $0x178] sm:$0xff] }
  0x6f   : > { %4700 = vmatpush1.bf16.msra.mxu0 %v6973_v11  ;;  %9492 = vst [vmem:[#allocation67_spill] sm:$0xff] %v7027_v59  ;;  %v4070_v11 = vld [vmem:[%s9065_s1 + $0x748] sm:$0xff]  ;;  %v7045_v48 = vpack.c.bf16 %v4067_v50, %v4065_v37  ;;  %v4071_v37 = vld [vmem:[%s9065_s1 + $0x750] sm:$0xff] }
  0x70   : > { %4702 = vmatprep.subr.bf16.mxu0 %v6982_v12  ;;  %9493 = vst [vmem:[#allocation68_spill] sm:$0xff] %v7036_v38  ;;  %v320_v12 = vld [vmem:[%s9065_s1 + $0x140] sm:$0xff]  ;;  %v7054_v10 = vpack.c.bf16 %v4072_v4, %v4070_v11  ;;  %v4076_v11 = vld [vmem:[%s9065_s1 + $0x778] sm:$0xff] }
  0x71   : > { %4604 = vmatpush1.bf16.msra.mxu1 %v6991_v54  ;;  %9494 = vst [vmem:[#allocation69_spill] sm:$0xff] %v7045_v48  ;;  %v325_v54 = vld [vmem:[%s9065_s1 + $0x168] sm:$0xff]  ;;  %v7063_v50 = vpack.c.bf16 %v322_v47, %v320_v12  ;;  %v326_v12 = vld [vmem:[%s9065_s1 + $0x170] sm:$0xff] }
  0x72   : > { %4606 = vmatprep.subr.bf16.mxu1 %v7000_v21  ;;  %9495 = vst [vmem:[#allocation70_spill] sm:$0xff] %v7054_v10  ;;  %v4069_v21 = vld [vmem:[%s9065_s1 + $0x740] sm:$0xff]  ;;  %v7072_v4 = vpack.c.bf16 %v327_v29, %v325_v54  ;;  %v331_v54 = vld [vmem:[%s9065_s1 + $0x198] sm:$0xff] }
  0x73   : > { %4704 = vmatpush1.bf16.msra.mxu0 %v7009_v23  ;;  %9496 = vst [vmem:[#allocation71_spill] sm:$0xff] %v7063_v50  ;;  %v4074_v23 = vld [vmem:[%s9065_s1 + $0x768] sm:$0xff]  ;;  %v7081_v47 = vpack.c.bf16 %v4071_v37, %v4069_v21  ;;  %v4075_v21 = vld [vmem:[%s9065_s1 + $0x770] sm:$0xff] }
  0x74   : > { %4706 = vmatprep.subr.bf16.mxu0 %v7018_v45  ;;  %9497 = vst [vmem:[#allocation72_spill] sm:$0xff] %v7072_v4  ;;  %v324_v45 = vld [vmem:[%s9065_s1 + $0x160] sm:$0xff]  ;;  %v7090_v29 = vpack.c.bf16 %v4076_v11, %v4074_v23  ;;  %v4080_v23 = vld [vmem:[%s9065_s1 + $0x798] sm:$0xff] }
  0x75   : > { %4608 = vmatpush1.bf16.msra.mxu1 %v7027_v59  ;;  %9498 = vst [vmem:[#allocation73_spill] sm:$0xff] %v7081_v47  ;;  %v329_v59 = vld [vmem:[%s9065_s1 + $0x188] sm:$0xff]  ;;  %v7099_v37 = vpack.c.bf16 %v326_v12, %v324_v45  ;;  %v330_v45 = vld [vmem:[%s9065_s1 + $0x190] sm:$0xff] }
  0x76   : > { %4610 = vmatprep.subr.bf16.mxu1 %v7036_v38  ;;  %9499 = vst [vmem:[#allocation74_spill] sm:$0xff] %v7090_v29  ;;  %v4073_v38 = vld [vmem:[%s9065_s1 + $0x760] sm:$0xff]  ;;  %v7108_v11 = vpack.c.bf16 %v331_v54, %v329_v59  ;;  %v333_v59 = vld [vmem:[%s9065_s1 + $0x1a8] sm:$0xff]  ;;  %v335_v54 = vld [vmem:[%s9065_s1 + $0x1b8] sm:$0xff] }
  0x77   : > { %4708 = vmatpush1.bf16.msra.mxu0 %v7045_v48  ;;  %9500 = vst [vmem:[#allocation75_spill] sm:$0xff] %v7099_v37  ;;  %v328_v48 = vld [vmem:[%s9065_s1 + $0x180] sm:$0xff]  ;;  %v7117_v12 = vpack.c.bf16 %v4075_v21, %v4073_v38  ;;  %v4079_v38 = vld [vmem:[%s9065_s1 + $0x790] sm:$0xff] }
  0x78   : > { %4710 = vmatprep.subr.bf16.mxu0 %v7054_v10  ;;  %v4078_v10 = vld [vmem:[%s9065_s1 + $0x788] sm:$0xff]  ;;  %9501 = vst [vmem:[#allocation76_spill] sm:$0xff] %v7108_v11  ;;  %v762_v21 = vld [vmem:[%s6302_s23 + $0x60] sm:$0xf0]  ;;  %v7137_v33 = vpack.c.bf16 %v330_v45, %v328_v48  ;;  %v334_v48 = vld [vmem:[%s9065_s1 + $0x1b0] sm:$0xff] }
  0x79   : > { %4612 = vmatpush1.bf16.msra.mxu1 %v7063_v50  ;;  %9502 = vst [vmem:[#allocation77_spill] sm:$0xff] %v7117_v12  ;;  %v4077_v50 = vld [vmem:[%s9065_s1 + $0x780] sm:$0xff] }
  0x7a   : > { %4614 = vmatprep.subr.bf16.mxu1 %v7072_v4  ;;  %v7129_v4 = vpack.c.bf16 %v4080_v23, %v4078_v10  ;;  %9504 = vst [vmem:[#allocation79_spill] sm:$0xff] %v7137_v33  ;;  %v7146_v10 = vpack.c.bf16 %v335_v54, %v333_v59  ;;  %v332_v23 = vld [vmem:[%s9065_s1 + $0x1a0] sm:$0xff]  ;;  %v7155_v45 = vpack.c.bf16 %v4079_v38, %v4077_v50  ;;  %v339_v59 = vld [vmem:[%s9065_s1 + $0x1d8] sm:$0xff]  ;;  %v4083_v50 = vld [vmem:[%s9065_s1 + $0x7b0] sm:$0xff] }
  0x7b   : > { %4712 = vmatpush1.bf16.msra.mxu0 %v7081_v47  ;;  %v765_v47 = vld [vmem:[%s6302_s23 + $0x78] sm:$0x3]  ;;  %v4086_v38 = vld [vmem:[%s9065_s1 + $0x7c8] sm:$0xff] }
  0x7c   : > { %4714 = vmatprep.subr.bf16.mxu0 %v7090_v29  ;;  %9503 = vst [vmem:[#allocation78_spill] sm:$0xff] %v7129_v4  ;;  %v4084_v29 = vld [vmem:[%s9065_s1 + $0x7b8] sm:$0xff]  ;;  %9505 = vst [vmem:[#allocation80_spill] sm:$0xff] %v7146_v10  ;;  %v867_v25 = vrot.slane %v765_v47, 4  ;;  %v7173_v47 = vpack.c.bf16 %v334_v48, %v332_v23  ;;  %v338_v23 = vld [vmem:[%s9065_s1 + $0x1d0] sm:$0xff] }
  0x7d   : > { %4616 = vmatpush1.bf16.msra.mxu1 %v7099_v37  ;;  %9506 = vst [vmem:[#allocation81_spill] sm:$0xff] %v7155_v45  ;;  %v866_v37 = vrot.slane %v762_v21, 4  ;;  %v7164_v54 = vpack.c.bf16 %v4084_v29, %v4082_v55  ;;  %v4088_v55 = vld [vmem:[%s9065_s1 + $0x7d8] sm:$0xff]  ;;  %v336_v21 = vld [vmem:[%s9065_s1 + $0x1c0] sm:$0xff] }
  0x7e   : > { %4618 = vmatprep.subr.bf16.mxu1 %v7108_v11  ;;  %v337_v11 = vld [vmem:[%s9065_s1 + $0x1c8] sm:$0xff]  ;;  %9508 = vst [vmem:[#allocation83_spill] sm:$0xff] %v7173_v47 }
  0x7f   : > { %4716 = vmatpush1.bf16.msra.mxu0 %v7117_v12  ;;  %9507 = vst [vmem:[#allocation82_spill] sm:$0xff] %v7164_v54  ;;  %v4081_v12 = vld [vmem:[%s9065_s1 + $0x7a0] sm:$0xff]  ;;  %v7182_v29 = vpack.c.bf16 %v339_v59, %v337_v11  ;;  %v868_v48 = vsel %vm865_vm1, %v866_v37, %v867_v25  ;;  %v343_v11 = vld [vmem:[%s9065_s1 + $0x1f8] sm:$0xff]  ;;  %v7201_v59 = vpack.c.bf16 %v4088_v55, %v4086_v38  ;;  %v4087_v25 = vld [vmem:[%s9065_s1 + $0x7d0] sm:$0xff] }
  0x80   : > { %4718 = vmatprep.subr.bf16.mxu0 %v7129_v4  ;;  %v7192_v4 = vpack.c.bf16 %v4083_v50, %v4081_v12  ;;  %v7210_v37 = vpack.c.bf16 %v338_v23, %v336_v21  ;;  %v4090_v12 = vld [vmem:[%s9065_s1 + $0x7e8] sm:$0xff]  ;;  %v4092_v50 = vld [vmem:[%s9065_s1 + $0x7f8] sm:$0xff]  ;;  %v340_v55 = vld [vmem:[%s9065_s1 + $0x1e0] sm:$0xff] }
  0x81   : > { %4620 = vmatpush1.bf16.msra.mxu1 %v7137_v33  ;;  %9509 = vst [vmem:[#allocation84_spill] sm:$0xff] %v7182_v29  ;;  %9511 = vst [vmem:[#allocation86_spill] sm:$0xff] %v7201_v59  ;;  %v342_v21 = vld [vmem:[%s9065_s1 + $0x1f0] sm:$0xff] }
  0x82   : > { %4622 = vmatprep.subr.bf16.mxu1 %v7146_v10  ;;  %9510 = vst [vmem:[#allocation85_spill] sm:$0xff] %v7192_v4  ;;  %v341_v10 = vld [vmem:[%s9065_s1 + $0x1e8] sm:$0xff] }
  0x83   : > { %4720 = vmatpush1.bf16.msra.mxu0 %v7155_v45  ;;  %v4085_v45 = vld [vmem:[%s9065_s1 + $0x7c0] sm:$0xff]  ;;  %v7219_v38 = vpack.c.bf16 %v343_v11, %v341_v10  ;;  %v4091_v11 = vld [vmem:[%s9065_s1 + $0x7f0] sm:$0xff] }
  0x84   : > { %4722 = vmatprep.subr.bf16.mxu0 %v7164_v54  ;;  %v7228_v23 = vpack.c.bf16 %v4087_v25, %v4085_v45  ;;  %v9513_v54 = vmov 0.0   ;;  %v4089_v10 = vld [vmem:[%s9065_s1 + $0x7e0] sm:$0xff]  ;;  %v7241_v45 = vpack.c.bf16 %v342_v21, %v340_v55  ;;  %v4094_v25 = vld [vmem:[%s9065_s1 + $0x808] sm:$0xff]  ;;  %v4095_v21 = vld [vmem:[%s9065_s1 + $0x810] sm:$0xff] }
  0x85   : > { %4624 = vmatpush1.bf16.msra.mxu1 %v7173_v47  ;;  %v4093_v55 = vld [vmem:[%s9065_s1 + $0x800] sm:$0xff] }
  0x86   : > { %944 = vmatmul.mubr.f32.vlgmr.msra.gmra.mrb[2].mxu0 %v868_v48  ;;  %4626 = vmatprep.subr.bf16.mxu1 %v7182_v29  ;;  %9512 = vst [vmem:[#allocation87_spill] sm:$0xff] %v7228_v23  ;;  %v7232_v48 = vpack.c.bf16 %v4092_v50, %v4090_v12  ;;  %9515 = vst [vmem:[#allocation89_spill] sm:$0xff] %v7241_v45  ;;  %v4096_v12 = vld [vmem:[%s9065_s1 + $0x818] sm:$0xff]  ;;  %v7251_v50 = vpack.c.bf16 %v4091_v11, %v4089_v10  ;;  %v4098_v10 = vld [vmem:[%s9065_s1 + $0x828] sm:$0xff] }
  0x87   : > { %4724 = vmatpush1.bf16.msra.mxu0 %v7192_v4  ;;  %1014 = vmatprep.mubr.f32.mxu0 %v9513_v54  ;;  %v277_v4 = vld [vmem:[%s6302_s23] sm:$0x3f]  ;;  %v4100_v11 = vld [vmem:[%s9065_s1 + $0x838] sm:$0xff] }
  0x88   : > { %4726 = vmatprep.subr.bf16.mxu0 %v7201_v59  ;;  %9514 = vst [vmem:[#allocation88_spill] sm:$0xff] %v7232_v48  ;;  %9516 = vst [vmem:[#allocation90_spill] sm:$0xff] %v7251_v50  ;;  %v7254_v59 = vpack.c.bf16 %v4096_v12, %v4094_v25  ;;  %v1566_v25 = vld [vmem:[%s6302_s23 + $0x50] sm:$0x3f]  ;;  %v7273_v12 = vpack.c.bf16 %v4095_v21, %v4093_v55  ;;  %v4104_v55 = vld [vmem:[%s9065_s1 + $0x858] sm:$0xff] }
  0x89   : > { %4628 = vmatpush1.bf16.msra.mxu1 %v7210_v37 }
  0x8a   : > { %4630 = vmatprep.subr.bf16.mxu1 %v7219_v38  ;;  %9517 = vst [vmem:[#allocation91_spill] sm:$0xff] %v7254_v59  ;;  %9518 = vst [vmem:[#allocation92_spill] sm:$0xff] %v7273_v12 }
  0x8b   : > { %4728 = vmatpush1.bf16.msra.mxu0 %v7228_v23  ;;  %v4097_v23 = vld [vmem:[%s9065_s1 + $0x820] sm:$0xff] }
  0x8c   : > { %4730 = vmatprep.subr.bf16.mxu0 %v7232_v48  ;;  %v7276_v48 = vpack.c.bf16 %v4100_v11, %v4098_v10  ;;  %v4101_v11 = vld [vmem:[%s9065_s1 + $0x840] sm:$0xff] }
  0x8d   : > { %4632 = vmatpush1.bf16.msra.mxu1 %v7241_v45 }
  0x8e   : > { %4922 = vmatprep.subr.bf16.mxu1 %v6079_v3  ;;  %9519 = vst [vmem:[#allocation93_spill] sm:$0xff] %v7276_v48  ;;  %v4099_v3 = vld [vmem:[%s9065_s1 + $0x830] sm:$0xff] }
  0x8f   : > { %4732 = vmatpush1.bf16.msra.mxu0 %v7251_v50  ;;  %v7293_v21 = vpack.c.bf16 %v4099_v3, %v4097_v23  ;;  %v764_v3 = vld [vmem:[%s6302_s23 + $0x70] sm:$0xf0]  ;;  %v767_v23 = vld [vmem:[%s6302_s23 + $0x88] sm:$0x3]  ;;  %v4110_v50 = vld [vmem:[%s9065_s1 + $0x880] sm:$0xff] }
  0x90   : > { %685 = vmatmul.mubr.f32.vlgmr.msra.gmra.mrb[2].mxu1 %v277_v4  ;;  %4734 = vmatprep.subr.bf16.mxu0 %v7254_v59  ;;  %v4102_v4 = vld [vmem:[%s9065_s1 + $0x848] sm:$0xff]  ;;  %v872_v59 = vrot.slane %v764_v3, 4 }
  0x91   : > { %4924 = vmatpush1.bf16.msra.mxu1 %v6093_v9  ;;  %1635 = vmatprep.mubr.f32.mxu1 %v1566_v25  ;;  %9520 = vst [vmem:[#allocation94_spill] sm:$0xff] %v7293_v21  ;;  %v7296_v10 = vpack.c.bf16 %v4104_v55, %v4102_v4  ;;  %v4103_v25 = vld [vmem:[%s9065_s1 + $0x850] sm:$0xff]  ;;  %v4106_v55 = vld [vmem:[%s9065_s1 + $0x868] sm:$0xff] }
  0x92   : > { %4926 = vmatprep.subr.bf16.mxu1 %v6118_v17  ;;  %v7309_v4 = vpack.c.bf16 %v4103_v25, %v4101_v11  ;;  %v1024_v11 = vld [vmem:[%s6302_s23 + $0x98] sm:$0xc0]  ;;  %v1027_v25 = vld [vmem:[%s6302_s23 + $0xb0] sm:$0xf]  ;;  %v4115_v3 = vld [vmem:[%s9065_s1 + $0x8a8] sm:$0xff] }
  0x93   : > { %4736 = vmatpush1.bf16.msra.mxu0 %v7273_v12  ;;  %9521 = vst [vmem:[#allocation95_spill] sm:$0xff] %v7296_v10  ;;  %v4111_v12 = vld [vmem:[%s9065_s1 + $0x888] sm:$0xff] }
  0x94   : > { %4738 = vmatprep.subr.bf16.mxu0 %v7276_v48  ;;  %9522 = vst [vmem:[#allocation96_spill] sm:$0xff] %v7309_v4  ;;  %v4109_v48 = vld [vmem:[%s9065_s1 + $0x878] sm:$0xff] }
  0x95   : > { %4928 = vmatpush1.bf16.msra.mxu1 %v6132_v22  ;;  %v1131_v22 = vrot.slane %v1027_v25, 6 }
  0x96   : > { %4930 = vmatprep.subr.bf16.mxu1 %v6147_v27  ;;  %v1130_v27 = vrot.slane %v1024_v11, 6 }
  0x97   : > { %4740 = vmatpush1.bf16.msra.mxu0 %v7293_v21  ;;  %v873_v21 = vrot.slane %v767_v23, 4  ;;  %v4105_v23 = vld [vmem:[%s9065_s1 + $0x860] sm:$0xff] }
  0x98   : > { %4742 = vmatprep.subr.bf16.mxu0 %v7296_v10  ;;  %v4108_v10 = vld [vmem:[%s9065_s1 + $0x870] sm:$0xff] }
  0x99   : > { %4932 = vmatpush1.bf16.msra.mxu1 %v6170_v35  ;;  %v4113_v35 = vld [vmem:[%s9065_s1 + $0x898] sm:$0xff]  ;;  %v7345_v17 = vpack.c.bf16 %v4110_v50, %v4108_v10  ;;  %v4119_v50 = vld [vmem:[%s9065_s1 + $0x8c8] sm:$0xff]  ;;  %v4116_v10 = vld [vmem:[%s9065_s1 + $0x8b0] sm:$0xff] }
  0x9a   : > { %4934 = vmatprep.subr.bf16.mxu1 %v6191_v40  ;;  %v7341_v40 = vpack.c.bf16 %v4111_v12, %v4109_v48  ;;  %v7348_v9 = vpack.c.bf16 %v4115_v3, %v4113_v35  ;;  %v4114_v48 = vld [vmem:[%s9065_s1 + $0x8a0] sm:$0xff]  ;;  %v1132_v35 = vsel %vm1126_vm2, %v1130_v27, %v1131_v22  ;;  %v4121_v27 = vld [vmem:[%s9065_s1 + $0x8d8] sm:$0xff]  ;;  %v4120_v3 = vld [vmem:[%s9065_s1 + $0x8d0] sm:$0xff] }
  0x9b   : > { %4744 = vmatpush1.bf16.msra.mxu0 %v7309_v4  ;;  %v874_v4 = vsel %vm865_vm1, %v872_v59, %v873_v21  ;;  %9523 = vst [vmem:[#allocation97_spill] sm:$0xff] %v7345_v17  ;;  %v4117_v59 = vld [vmem:[%s9065_s1 + $0x8b8] sm:$0xff]  ;;  %v4118_v22 = vld [vmem:[%s9065_s1 + $0x8c0] sm:$0xff] }
  0x9c   : > { %974 = vmatprep.subr.mxu0 %v4106_v55  ;;  %9524 = vst [vmem:[#allocation98_spill] sm:$0xff] %v7348_v9  ;;  %v4112_v55 = vld [vmem:[%s9065_s1 + $0x890] sm:$0xff]  ;;  %v7371_v21 = vpack.c.bf16 %v4119_v50, %v4117_v59  ;;  %v7387_v11 = vpack.c.bf16 %v4118_v22, %v4116_v10  ;;  %v4126_v10 = vld [vmem:[%s9065_s1 + $0x900] sm:$0xff]  ;;  %v4129_v22 = vld [vmem:[%s9065_s1 + $0x918] sm:$0xff] }
  0x9d   : > { %4936 = vmatpush1.bf16.msra.mxu1 %v6224_v51  ;;  %v7367_v12 = vpack.c.bf16 %v4114_v48, %v4112_v55  ;;  %v4125_v55 = vld [vmem:[%s9065_s1 + $0x8f8] sm:$0xff]  ;;  %v4127_v48 = vld [vmem:[%s9065_s1 + $0x908] sm:$0xff] }
  0x9e   : > { %4938 = vmatprep.subr.bf16.mxu1 %v6236_v53  ;;  %9526 = vst [vmem:[#allocation100_spill] sm:$0xff] %v7371_v21  ;;  %9527 = vst [vmem:[#allocation101_spill] sm:$0xff] %v7387_v11  ;;  %v7411_v50 = vpack.c.bf16 %v4127_v48, %v4125_v55  ;;  %v4130_v55 = vld [vmem:[%s9065_s1 + $0x920] sm:$0xff]  ;;  %v4133_v48 = vld [vmem:[%s9065_s1 + $0x938] sm:$0xff] }
  0x9f   : > { %975 = vmatpush1.msra.mxu0 %v4105_v23  ;;  %9525 = vst [vmem:[#allocation99_spill] sm:$0xff] %v7367_v12  ;;  %v4122_v23 = vld [vmem:[%s9065_s1 + $0x8e0] sm:$0xff] }
  0xa0   : > { %4746 = vmatprep.subr.bf16.mxu0 %v7341_v40  ;;  %4107 = vmatmul.mubr.msk.f32.vlgmr.msra.gmra.mrb[2].mxu0 %vm472_vm0, %v874_v4  ;;  %v4123_v4 = vld [vmem:[%s9065_s1 + $0x8e8] sm:$0xff]  ;;  %v7407_v59 = vpack.c.bf16 %v4122_v23, %v4120_v3  ;;  %9530 = vst [vmem:[#allocation104_spill] sm:$0xff] %v7411_v50  ;;  %v4128_v23 = vld [vmem:[%s9065_s1 + $0x910] sm:$0xff] }
  0xa1   : > { %4748 = vmatpush1.bf16.msra.mxu0 %v7345_v17  ;;  %4940 = vmatpush1.bf16.msra.mxu1 %v6266_v63  ;;  %v7391_v25 = vpack.c.bf16 %v4123_v4, %v4121_v27  ;;  %v4131_v27 = vld [vmem:[%s9065_s1 + $0x928] sm:$0xff] }
  0xa2   : > { %4750 = vmatprep.subr.bf16.mxu0 %v7348_v9  ;;  %4942 = vmatprep.subr.bf16.mxu1 %v6273_v1  ;;  %9529 = vst [vmem:[#allocation103_spill] sm:$0xff] %v7407_v59  ;;  %v7431_v3 = vpack.c.bf16 %v4131_v27, %v4129_v22  ;;  %v4132_v27 = vld [vmem:[%s9065_s1 + $0x930] sm:$0xff] }
  0xa3   : > { %1204 = vmatprep.mubr.f32.mxu0 %v1132_v35  ;;  %9528 = vst [vmem:[#allocation102_spill] sm:$0xff] %v7391_v25  ;;  %v4124_v35 = vld [vmem:[%s9065_s1 + $0x8f0] sm:$0xff] }
  0xa4   : > { %v7427_v4 = vpack.c.bf16 %v4126_v10, %v4124_v35  ;;  %9532 = vst [vmem:[#allocation106_spill] sm:$0xff] %v7431_v3  ;;  %v4135_v35 = vld [vmem:[%s9065_s1 + $0x948] sm:$0xff]  ;;  %v7447_v10 = vpack.c.bf16 %v4130_v55, %v4128_v23 }
  0xa5   : > { %4752 = vmatpush1.bf16.msra.mxu0 %v7367_v12  ;;  %4944 = vmatpush1.bf16.msra.mxu1 %v6297_v14  ;;  %v7451_v22 = vpack.c.bf16 %v4135_v35, %v4133_v48  ;;  %v4139_v23 = vld [vmem:[%s9065_s1 + $0x968] sm:$0xff]  ;;  %v4136_v35 = vld [vmem:[%s9065_s1 + $0x950] sm:$0xff] }
  0xa6   : > { %4754 = vmatprep.subr.bf16.mxu0 %v7371_v21  ;;  %4946 = vmatprep.subr.bf16.mxu1 %v6308_v16  ;;  %9531 = vst [vmem:[#allocation105_spill] sm:$0xff] %v7427_v4  ;;  %9533 = vst [vmem:[#allocation107_spill] sm:$0xff] %v7447_v10 }
  0xa7   : > { %9534 = vst [vmem:[#allocation108_spill] sm:$0xff] %v7451_v22 }
  0xa9   : > { %4756 = vmatpush1.bf16.msra.mxu0 %v7387_v11  ;;  %4948 = vmatpush1.bf16.msra.mxu1 %v6334_v30  ;;  %v4172_v11 = vld [vmem:[%s9065_s1 + $0xa70] sm:$0xff] }
  0xaa   : > { %4758 = vmatprep.subr.bf16.mxu0 %v7391_v25  ;;  %4950 = vmatprep.subr.bf16.mxu1 %v6347_v36 }
  0xad   : > { %4760 = vmatpush1.bf16.msra.mxu0 %v7407_v59  ;;  %4952 = vmatpush1.bf16.msra.mxu1 %v6372_v49  ;;  %v4162_v59 = vld [vmem:[%s9065_s1 + $0xa20] sm:$0xff] }
  0xae   : > { %4762 = vmatprep.subr.bf16.mxu0 %v7411_v50  ;;  %4954 = vmatprep.subr.bf16.mxu1 %v6386_v58  ;;  %v4134_v50 = vld [vmem:[%s9065_s1 + $0x940] sm:$0xff] }
  0xaf   : > { %v7467_v55 = vpack.c.bf16 %v4134_v50, %v4132_v27  ;;  %v4143_v50 = vld [vmem:[%s9065_s1 + $0x988] sm:$0xff] }
  0xb1   : > { %4764 = vmatpush1.bf16.msra.mxu0 %v7427_v4  ;;  %4956 = vmatpush1.bf16.msra.mxu1 %v6411_v5  ;;  %v4137_v4 = vld [vmem:[%s9065_s1 + $0x958] sm:$0xff]  ;;  %9535 = vst [vmem:[#allocation109_spill] sm:$0xff] %v7467_v55 }
  0xb2   : > { %4766 = vmatprep.subr.bf16.mxu0 %v7431_v3  ;;  %4958 = vmatprep.subr.bf16.mxu1 %v6425_v20  ;;  %v7471_v48 = vpack.c.bf16 %v4139_v23, %v4137_v4  ;;  %v4138_v3 = vld [vmem:[%s9065_s1 + $0x960] sm:$0xff]  ;;  %v4140_v23 = vld [vmem:[%s9065_s1 + $0x970] sm:$0xff] }
  0xb3   : > { %v7487_v4 = vpack.c.bf16 %v4138_v3, %v4136_v35  ;;  %v4147_v3 = vld [vmem:[%s9065_s1 + $0x9a8] sm:$0xff] }
  0xb4   : > { %9536 = vst [vmem:[#allocation110_spill] sm:$0xff] %v7471_v48 }
  0xb5   : > { %4768 = vmatpush1.bf16.msra.mxu0 %v7447_v10  ;;  %4960 = vmatpush1.bf16.msra.mxu1 %v6447_v32  ;;  %v4141_v10 = vld [vmem:[%s9065_s1 + $0x978] sm:$0xff]  ;;  %9537 = vst [vmem:[#allocation111_spill] sm:$0xff] %v7487_v4 }
  0xb6   : > { %4770 = vmatprep.subr.bf16.mxu0 %v7451_v22  ;;  %4962 = vmatprep.subr.bf16.mxu1 %v6461_v41  ;;  %v7491_v27 = vpack.c.bf16 %v4143_v50, %v4141_v10  ;;  %v4142_v22 = vld [vmem:[%s9065_s1 + $0x980] sm:$0xff]  ;;  %v4144_v50 = vld [vmem:[%s9065_s1 + $0x990] sm:$0xff] }
  0xb7   : > { %v7507_v10 = vpack.c.bf16 %v4142_v22, %v4140_v23  ;;  %v4151_v22 = vld [vmem:[%s9065_s1 + $0x9c8] sm:$0xff] }
  0xb8   : > { %9538 = vst [vmem:[#allocation112_spill] sm:$0xff] %v7491_v27 }
  0xb9   : > { %4772 = vmatpush1.bf16.msra.mxu0 %v7467_v55  ;;  %4964 = vmatpush1.bf16.msra.mxu1 %v6483_v56  ;;  %v4145_v55 = vld [vmem:[%s9065_s1 + $0x998] sm:$0xff]  ;;  %9539 = vst [vmem:[#allocation113_spill] sm:$0xff] %v7507_v10 }
  0xba   : > { %4774 = vmatprep.subr.bf16.mxu0 %v7471_v48  ;;  %4966 = vmatprep.subr.bf16.mxu1 %v6497_v2  ;;  %v7511_v35 = vpack.c.bf16 %v4147_v3, %v4145_v55  ;;  %v4146_v48 = vld [vmem:[%s9065_s1 + $0x9a0] sm:$0xff]  ;;  %v4148_v3 = vld [vmem:[%s9065_s1 + $0x9b0] sm:$0xff] }
  0xbb   : > { %v7527_v55 = vpack.c.bf16 %v4146_v48, %v4144_v50  ;;  %v4155_v48 = vld [vmem:[%s9065_s1 + $0x9e8] sm:$0xff] }
  0xbc   : > { %9540 = vst [vmem:[#allocation114_spill] sm:$0xff] %v7511_v35 }
  0xbd   : > { %4776 = vmatpush1.bf16.msra.mxu0 %v7487_v4  ;;  %4968 = vmatpush1.bf16.msra.mxu1 %v6520_v28  ;;  %v4149_v4 = vld [vmem:[%s9065_s1 + $0x9b8] sm:$0xff]  ;;  %9541 = vst [vmem:[#allocation115_spill] sm:$0xff] %v7527_v55 }
  0xbe   : > { %4778 = vmatprep.subr.bf16.mxu0 %v7491_v27  ;;  %4970 = vmatprep.subr.bf16.mxu1 %v6531_v43  ;;  %v7531_v23 = vpack.c.bf16 %v4151_v22, %v4149_v4  ;;  %v4150_v27 = vld [vmem:[%s9065_s1 + $0x9c0] sm:$0xff]  ;;  %v4152_v22 = vld [vmem:[%s9065_s1 + $0x9d0] sm:$0xff] }
  0xbf   : > { %v7547_v4 = vpack.c.bf16 %v4150_v27, %v4148_v3  ;;  %v4157_v27 = vld [vmem:[%s9065_s1 + $0x9f8] sm:$0xff]  ;;  %v4159_v3 = vld [vmem:[%s9065_s1 + $0xa08] sm:$0xff] }
  0xc0   : > { %9542 = vst [vmem:[#allocation116_spill] sm:$0xff] %v7531_v23 }
  0xc1   : > { %4780 = vmatpush1.bf16.msra.mxu0 %v7507_v10  ;;  %4972 = vmatpush1.bf16.msra.mxu1 %v6550_v62  ;;  %v4153_v10 = vld [vmem:[%s9065_s1 + $0x9d8] sm:$0xff]  ;;  %9543 = vst [vmem:[#allocation117_spill] sm:$0xff] %v7547_v4 }
  0xc2   : > { %4782 = vmatprep.subr.bf16.mxu0 %v7511_v35  ;;  %4974 = vmatprep.subr.bf16.mxu1 %v6559_v19  ;;  %v7551_v50 = vpack.c.bf16 %v4155_v48, %v4153_v10  ;;  %v4154_v35 = vld [vmem:[%s9065_s1 + $0x9e0] sm:$0xff]  ;;  %v7571_v48 = vpack.c.bf16 %v4159_v3, %v4157_v27  ;;  %v1565_v27 = vld [vmem:[%s6302_s23 + $0x48] sm:$0x3f] }
  0xc3   : > { %v7567_v10 = vpack.c.bf16 %v4154_v35, %v4152_v22  ;;  %v4163_v35 = vld [vmem:[%s9065_s1 + $0xa28] sm:$0xff] }
  0xc4   : > { %9544 = vst [vmem:[#allocation118_spill] sm:$0xff] %v7551_v50  ;;  %9546 = vst [vmem:[#allocation120_spill] sm:$0xff] %v7571_v48 }
  0xc5   : > { %4784 = vmatpush1.bf16.msra.mxu0 %v7527_v55  ;;  %4976 = vmatpush1.bf16.msra.mxu1 %v6589_v60  ;;  %9545 = vst [vmem:[#allocation119_spill] sm:$0xff] %v7567_v10  ;;  %v4158_v55 = vld [vmem:[%s9065_s1 + $0xa00] sm:$0xff] }
  0xc6   : > { %4786 = vmatprep.subr.bf16.mxu0 %v7531_v23  ;;  %4978 = vmatprep.subr.bf16.mxu1 %v6598_v34  ;;  %v4156_v23 = vld [vmem:[%s9065_s1 + $0x9f0] sm:$0xff] }
  0xc7   : > { %v7587_v22 = vpack.c.bf16 %v4158_v55, %v4156_v23  ;;  %v4165_v55 = vld [vmem:[%s9065_s1 + $0xa38] sm:$0xff]  ;;  %v4167_v23 = vld [vmem:[%s9065_s1 + $0xa48] sm:$0xff] }
  0xc9   : > { %4788 = vmatpush1.bf16.msra.mxu0 %v7547_v4  ;;  %4980 = vmatpush1.bf16.msra.mxu1 %v6625_v46  ;;  %v4161_v4 = vld [vmem:[%s9065_s1 + $0xa18] sm:$0xff]  ;;  %9547 = vst [vmem:[#allocation121_spill] sm:$0xff] %v7587_v22 }
  0xca   : > { %4790 = vmatprep.subr.bf16.mxu0 %v7551_v50  ;;  %4982 = vmatprep.subr.bf16.mxu1 %v6635_v61  ;;  %v7592_v3 = vpack.c.bf16 %v4163_v35, %v4161_v4  ;;  %v4160_v50 = vld [vmem:[%s9065_s1 + $0xa10] sm:$0xff]  ;;  %v7612_v35 = vpack.c.bf16 %v4167_v23, %v4165_v55 }
  0xcb   : > { %v7608_v4 = vpack.c.bf16 %v4162_v59, %v4160_v50  ;;  %v4169_v59 = vld [vmem:[%s9065_s1 + $0xa58] sm:$0xff]  ;;  %v4171_v50 = vld [vmem:[%s9065_s1 + $0xa68] sm:$0xff]  ;;  %v4168_v23 = vld [vmem:[%s9065_s1 + $0xa50] sm:$0xff] }
  0xcc   : > { %9548 = vst [vmem:[#allocation122_spill] sm:$0xff] %v7592_v3  ;;  %9550 = vst [vmem:[#allocation124_spill] sm:$0xff] %v7612_v35 }
  0xcd   : > { %4792 = vmatpush1.bf16.msra.mxu0 %v7567_v10  ;;  %4984 = vmatpush1.bf16.msra.mxu1 %v6662_v42  ;;  %9549 = vst [vmem:[#allocation123_spill] sm:$0xff] %v7608_v4  ;;  %v1023_v10 = vld [vmem:[%s6302_s23 + $0x90] sm:$0xc0] }
  0xce   : > { %4794 = vmatprep.subr.bf16.mxu0 %v7571_v48  ;;  %4986 = vmatprep.subr.bf16.mxu1 %v6091_v8  ;;  %v4164_v48 = vld [vmem:[%s9065_s1 + $0xa30] sm:$0xff] }
  0xd0   : > { %1636 = vmatmul.mubr.f32.vlgmr.msra.gmra.mrb[4].mxu1 %v1565_v27  ;;  %v4166_v27 = vld [vmem:[%s9065_s1 + $0xa40] sm:$0xff] }
  0xd1   : > { %4796 = vmatpush1.bf16.msra.mxu0 %v7587_v22  ;;  %4988 = vmatpush1.bf16.msra.mxu1 %v6105_v13  ;;  %v7629_v55 = vpack.c.bf16 %v4166_v27, %v4164_v48  ;;  %v4170_v22 = vld [vmem:[%s9065_s1 + $0xa60] sm:$0xff]  ;;  %v4173_v48 = vld [vmem:[%s9065_s1 + $0xa78] sm:$0xff]  ;;  %v4175_v27 = vld [vmem:[%s9065_s1 + $0xa88] sm:$0xff] }
  0xd2   : > { %4798 = vmatprep.subr.bf16.mxu0 %v7592_v3  ;;  %4990 = vmatprep.subr.bf16.mxu1 %v6120_v18  ;;  %v7636_v3 = vpack.c.bf16 %v4171_v50, %v4169_v59  ;;  %v7651_v59 = vpack.c.bf16 %v4170_v22, %v4168_v23  ;;  %v1127_v50 = vrot.slane %v1023_v10, 6  ;;  %v7655_v25 = vpack.c.bf16 %v4175_v27, %v4173_v48  ;;  %v4177_v22 = vld [vmem:[%s9065_s1 + $0xa98] sm:$0xff]  ;;  %v4179_v10 = vld [vmem:[%s9065_s1 + $0xaa8] sm:$0xff]  ;;  %v4176_v27 = vld [vmem:[%s9065_s1 + $0xa90] sm:$0xff] }
  0xd3   : > { %1706 = vmatprep.mubr.f32.mxu1 %v9513_v54  ;;  %9551 = vst [vmem:[#allocation125_spill] sm:$0xff] %v7629_v55  ;;  %v7676_v48 = vpack.c.bf16 %v4179_v10, %v4177_v22  ;;  %v4182_v10 = vld [vmem:[%s9065_s1 + $0xac0] sm:$0xff] }
  0xd4   : > { %9552 = vst [vmem:[#allocation126_spill] sm:$0xff] %v7636_v3  ;;  %9553 = vst [vmem:[#allocation127_spill] sm:$0xff] %v7651_v59 }
  0xd5   : > { %4800 = vmatpush1.bf16.msra.mxu0 %v7608_v4  ;;  %4992 = vmatpush1.bf16.msra.mxu1 %v6145_v26  ;;  %v1026_v4 = vld [vmem:[%s6302_s23 + $0xa8] sm:$0xf]  ;;  %9554 = vst [vmem:[#allocation128_spill] sm:$0xff] %v7655_v25  ;;  %9556 = vst [vmem:[#allocation130_spill] sm:$0xff] %v7676_v48 }
  0xd6   : > { %4802 = vmatprep.subr.bf16.mxu0 %v7612_v35  ;;  %4994 = vmatprep.subr.bf16.mxu1 %v6158_v31  ;;  %v1128_v35 = vrot.slane %v1026_v4, 6 }
  0xd8   : > { %v1129_v4 = vsel %vm1126_vm2, %v1127_v50, %v1128_v35  ;;  %v4183_v35 = vld [vmem:[%s9065_s1 + $0xac8] sm:$0xff]  ;;  %v4180_v50 = vld [vmem:[%s9065_s1 + $0xab0] sm:$0xff] }
  0xd9   : > { %4804 = vmatpush1.bf16.msra.mxu0 %v7629_v55  ;;  %4996 = vmatpush1.bf16.msra.mxu1 %v6189_v39  ;;  %v4174_v55 = vld [vmem:[%s9065_s1 + $0xa80] sm:$0xff] }
  0xda   : > { %4806 = vmatprep.subr.bf16.mxu0 %v7636_v3  ;;  %4998 = vmatprep.subr.bf16.mxu1 %v6203_v44  ;;  %v7672_v23 = vpack.c.bf16 %v4174_v55, %v4172_v11  ;;  %v4181_v11 = vld [vmem:[%s9065_s1 + $0xab8] sm:$0xff] }
  0xdb   : > { %v7699_v22 = vpack.c.bf16 %v4183_v35, %v4181_v11  ;;  %v7715_v11 = vpack.c.bf16 %v4182_v10, %v4180_v50  ;;  %v4186_v50 = vld [vmem:[%s9065_s1 + $0xae0] sm:$0xff]  ;;  %v4191_v10 = vld [vmem:[%s9065_s1 + $0xb08] sm:$0xff] }
  0xdc   : > { %9555 = vst [vmem:[#allocation129_spill] sm:$0xff] %v7672_v23 }
  0xdd   : > { %4808 = vmatpush1.bf16.msra.mxu0 %v7651_v59  ;;  %5000 = vmatpush1.bf16.msra.mxu1 %v6234_v52  ;;  %v4178_v59 = vld [vmem:[%s9065_s1 + $0xaa0] sm:$0xff]  ;;  %9558 = vst [vmem:[#allocation132_spill] sm:$0xff] %v7699_v22  ;;  %9559 = vst [vmem:[#allocation133_spill] sm:$0xff] %v7715_v11 }
  0xde   : > { %4810 = vmatprep.subr.bf16.mxu0 %v7655_v25  ;;  %5002 = vmatprep.subr.bf16.mxu1 %v6248_v57  ;;  %v7692_v55 = vpack.c.bf16 %v4178_v59, %v4176_v27  ;;  %v4185_v59 = vld [vmem:[%s9065_s1 + $0xad8] sm:$0xff]  ;;  %v4187_v27 = vld [vmem:[%s9065_s1 + $0xae8] sm:$0xff] }
  0xdf   : > { %v7721_v25 = vld [vmem:[%s9065_s1 + $0x598] sm:$0xff]  ;;  %v7724_v3 = vpack.c.bf16 %v4187_v27, %v4185_v59  ;;  %v7743_v59 = vld [vmem:[%s9065_s1 + $0x590] sm:$0xff] }
  0xe0   : > { %1205 = vmatmul.mubr.f32.vlgmr.msra.gmra.mrb[2].mxu0 %v1129_v4  ;;  %9557 = vst [vmem:[#allocation131_spill] sm:$0xff] %v7692_v55  ;;  %v1560_v4 = vld [vmem:[%s6302_s23 + $0x8] sm:$0xc0]  ;;  %9560 = vst [vmem:[#allocation134_spill] sm:$0xff] %v7721_v25 }
  0xe1   : > { %4812 = vmatpush1.bf16.msra.mxu0 %v7672_v23  ;;  %5004 = vmatpush1.bf16.msra.mxu1 %v6271_v0  ;;  %v1563_v23 = vld [vmem:[%s6302_s23 + $0x20] sm:$0xf]  ;;  %v1722_v35 = vrot.slane %v1560_v4, 6  ;;  %9561 = vst [vmem:[#allocation135_spill] sm:$0xff] %v7724_v3  ;;  %v1567_v4 = vld [vmem:[%s6302_s23 + $0x58] sm:$0x3f] }
  0xe2   : > { %4814 = vmatprep.subr.bf16.mxu0 %v7676_v48  ;;  %5006 = vmatprep.subr.bf16.mxu1 %v6285_v6  ;;  %v1723_v48 = vrot.slane %v1563_v23, 6  ;;  %v4189_v23 = vld [vmem:[%s9065_s1 + $0xaf8] sm:$0xff]  ;;  %9562 = vst [vmem:[#allocation136_spill] sm:$0xff] %v7743_v59  ;;  %v1285_v6 = vld [vmem:[%s6302_s23 + $0xe0] sm:$0x3f] }
  0xe3   : > { %1275 = vmatprep.mubr.f32.mxu0 %v9513_v54 }
  0xe5   : > { %4816 = vmatpush1.bf16.msra.mxu0 %v7692_v55  ;;  %5008 = vmatpush1.bf16.msra.mxu1 %v6306_v15  ;;  %v4184_v55 = vld [vmem:[%s9065_s1 + $0xad0] sm:$0xff]  ;;  %v4203_v15 = vld [vmem:[%s9065_s1 + $0xb60] sm:$0xff] }
  0xe6   : > { %4818 = vmatprep.subr.bf16.mxu0 %v7699_v22  ;;  %1666 = vmatprep.subr.mxu1 %v7721_v25  ;;  %v7746_v27 = vpack.c.bf16 %v4186_v50, %v4184_v55  ;;  %v1724_v22 = vsel %vm1126_vm2, %v1722_v35, %v1723_v48  ;;  %v7751_v25 = vpack.c.bf16 %v4191_v10, %v4189_v23  ;;  %v4193_v48 = vld [vmem:[%s9065_s1 + $0xb18] sm:$0xff]  ;;  %v4195_v55 = vld [vmem:[%s9065_s1 + $0xb28] sm:$0xff]  ;;  %v9565_v35 = vld [vmem:[#allocation32_spill] sm:$0xff] }
  0xe7   : > { %v7772_v23 = vpack.c.bf16 %v4195_v55, %v4193_v48  ;;  %v4192_v10 = vld [vmem:[%s9065_s1 + $0xb10] sm:$0xff]  ;;  %v7791_v48 = vld [vmem:[%s9065_s1 + $0xb38] sm:$0xff]  ;;  %v4200_v55 = vld [vmem:[%s9065_s1 + $0xb48] sm:$0xff] }
  0xe8   : > { %9563 = vst [vmem:[#allocation137_spill] sm:$0xff] %v7746_v27  ;;  %9564 = vst [vmem:[#allocation138_spill] sm:$0xff] %v7751_v25 }
  0xe9   : > { %4820 = vmatpush1.bf16.msra.mxu0 %v7715_v11  ;;  %1667 = vmatpush1.msra.mxu1 %v7743_v59  ;;  %v4188_v11 = vld [vmem:[%s9065_s1 + $0xaf0] sm:$0xff]  ;;  %v4190_v59 = vld [vmem:[%s9065_s1 + $0xb00] sm:$0xff]  ;;  %9567 = vst [vmem:[#allocation140_spill] sm:$0xff] %v7772_v23  ;;  %9571 = vst [vmem:[#allocation142_spill] sm:$0xff] %v7791_v48 }
  0xea   : > { %4822 = vmatprep.subr.bf16.mxu0 %v7724_v3  ;;  %5010 = vmatprep.subr.bf16.mxu1 %v6672_v7  ;;  %v7769_v50 = vpack.c.bf16 %v4190_v59, %v4188_v11  ;;  %v9568_v3 = vld [vmem:[#allocation35_spill] sm:$0xff]  ;;  %v9569_v11 = vld [vmem:[#allocation36_spill] sm:$0xff] }
  0xeb   : > { %4290 = vmatmul.mubr.msk.f32.vlgmr.msra.gmra.mrb[4].mxu1 %vm472_vm0, %v1567_v4  ;;  %v4194_v4 = vld [vmem:[%s9065_s1 + $0xb20] sm:$0xff] }
  0xec   : > { %5012 = vmatpush1.bf16.msra.mxu1 %v6699_v24  ;;  %1796 = vmatprep.mubr.f32.mxu1 %v1724_v22  ;;  %9566 = vst [vmem:[#allocation139_spill] sm:$0xff] %v7769_v50  ;;  %v1025_v22 = vld [vmem:[%s6302_s23 + $0xa0] sm:$0xc0]  ;;  %v7785_v59 = vpack.c.bf16 %v4194_v4, %v4192_v10  ;;  %v4201_v4 = vld [vmem:[%s9065_s1 + $0xb50] sm:$0xff]  ;;  %v9577_v24 = vld [vmem:[#allocation43_spill] sm:$0xff] }
  0xed   : > { %4824 = vmatpush1.bf16.msra.mxu0 %v7746_v27  ;;  %5014 = vmatprep.subr.bf16.mxu1 %v9565_v35  ;;  %v1028_v27 = vld [vmem:[%s6302_s23 + $0xb8] sm:$0xf]  ;;  %v4199_v10 = vld [vmem:[%s9065_s1 + $0xb40] sm:$0xff] }
  0xee   : > { %4826 = vmatprep.subr.bf16.mxu0 %v7751_v25  ;;  %9570 = vst [vmem:[#allocation141_spill] sm:$0xff] %v7785_v59  ;;  %v4202_v25 = vld [vmem:[%s9065_s1 + $0xb58] sm:$0xff] }
  0xef   : > { %v7820_v35 = vpack.c.bf16 %v4202_v25, %v4200_v55  ;;  %v9579_v25 = vld [vmem:[#allocation44_spill] sm:$0xff] }
  0xf0   : > { %5016 = vmatpush1.bf16.msra.mxu1 %v9568_v3  ;;  %v1134_v3 = vrot.slane %v1028_v27, 6  ;;  %v4206_v27 = vld [vmem:[%s9065_s1 + $0xb78] sm:$0xff] }
  0xf1   : > { %4828 = vmatpush1.bf16.msra.mxu0 %v7769_v50  ;;  %5018 = vmatprep.subr.bf16.mxu1 %v9569_v11  ;;  %v1133_v50 = vrot.slane %v1025_v22, 6  ;;  %v9572_v11 = vld [vmem:[#allocation39_spill] sm:$0xff]  ;;  %9575 = vst [vmem:[#allocation144_spill] sm:$0xff] %v7820_v35 }
  0xf2   : > { %4830 = vmatprep.subr.bf16.mxu0 %v7772_v23  ;;  %v9573_v23 = vld [vmem:[#allocation40_spill] sm:$0xff]  ;;  %v4204_v22 = vld [vmem:[%s9065_s1 + $0xb68] sm:$0xff] }
  0xf3   : > { %v7826_v7 = vpack.c.bf16 %v4206_v27, %v4204_v22  ;;  %v4207_v22 = vld [vmem:[%s9065_s1 + $0xb80] sm:$0xff]  ;;  %v4209_v27 = vld [vmem:[%s9065_s1 + $0xb90] sm:$0xff] }
  0xf4   : > { %5020 = vmatpush1.bf16.msra.mxu1 %v9572_v11  ;;  %v7818_v11 = vld [vmem:[%s9065_s1 + $0xb30] sm:$0xff] }
  0xf5   : > { %4832 = vmatpush1.bf16.msra.mxu0 %v7785_v59  ;;  %5022 = vmatprep.subr.bf16.mxu1 %v9573_v23  ;;  %9574 = vst [vmem:[#allocation143_spill] sm:$0xff] %v7818_v11  ;;  %v1135_v59 = vsel %vm1126_vm2, %v1133_v50, %v1134_v3  ;;  %v7823_v23 = vpack.c.bf16 %v4201_v4, %v4199_v10  ;;  %9578 = vst [vmem:[#allocation43_spill] sm:$0xff] %v7826_v7  ;;  %v4208_v3 = vld [vmem:[%s9065_s1 + $0xb88] sm:$0xff]  ;;  %v4210_v50 = vld [vmem:[%s9065_s1 + $0xb98] sm:$0xff] }
  0xf6   : > { %1235 = vmatprep.subr.mxu0 %v7791_v48  ;;  %v4205_v48 = vld [vmem:[%s9065_s1 + $0xb70] sm:$0xff]  ;;  %v9581_v10 = vld [vmem:[#allocation47_spill] sm:$0xff]  ;;  %v7850_v4 = vpack.c.bf16 %v4210_v50, %v4208_v3  ;;  %v7870_v50 = vpack.c.bf16 %v4209_v27, %v4207_v22  ;;  %v4218_v27 = vld [vmem:[%s9065_s1 + $0xbd8] sm:$0xff] }
  0xf7   : > { %9576 = vst [vmem:[#allocation145_spill] sm:$0xff] %v7823_v23  ;;  %v7846_v55 = vpack.c.bf16 %v4205_v48, %v4203_v15  ;;  %v4214_v15 = vld [vmem:[%s9065_s1 + $0xbb8] sm:$0xff]  ;;  %v4216_v22 = vld [vmem:[%s9065_s1 + $0xbc8] sm:$0xff] }
  0xf8   : > { %5024 = vmatpush1.bf16.msra.mxu1 %v9577_v24  ;;  %9582 = vst [vmem:[#allocation47_spill] sm:$0xff] %v7850_v4  ;;  %9584 = vst [vmem:[#allocation146_spill] sm:$0xff] %v7870_v50 }
  0xf9   : > { %1236 = vmatpush1.msra.mxu0 %v7818_v11  ;;  %5026 = vmatprep.subr.bf16.mxu1 %v9579_v25  ;;  %9580 = vst [vmem:[#allocation44_spill] sm:$0xff] %v7846_v55  ;;  %v4213_v11 = vld [vmem:[%s9065_s1 + $0xbb0] sm:$0xff] }
  0xfa   : > { %4834 = vmatprep.subr.bf16.mxu0 %v7820_v35  ;;  %4198 = vmatmul.mubr.msk.f32.vlgmr.msra.gmra.mrb[2].mxu0 %vm472_vm0, %v1135_v59  ;;  %v9583_v59 = vld [vmem:[#allocation48_spill] sm:$0xff]  ;;  %v4211_v35 = vld [vmem:[%s9065_s1 + $0xba0] sm:$0xff] }
  0xfb   : > { %4836 = vmatpush1.bf16.msra.mxu0 %v7823_v23  ;;  %1445 = vmatprep.mubr.f32.mxu0 %v1285_v6  ;;  %v4212_v6 = vld [vmem:[%s9065_s1 + $0xba8] sm:$0xff] }
  0xfc   : > { %5028 = vmatpush1.bf16.msra.mxu1 %v9581_v10  ;;  %4838 = vmatprep.subr.bf16.mxu0 %v7826_v7  ;;  %v9585_v7 = vld [vmem:[#allocation51_spill] sm:$0xff]  ;;  %v7874_v23 = vpack.c.bf16 %v4214_v15, %v4212_v6  ;;  %v7890_v6 = vpack.c.bf16 %v4213_v11, %v4211_v35  ;;  %v4222_v11 = vld [vmem:[%s9065_s1 + $0xbf8] sm:$0xff] }
  0xfd   : > { %5030 = vmatprep.subr.bf16.mxu1 %v9583_v59  ;;  %v9587_v59 = vld [vmem:[#allocation52_spill] sm:$0xff]  ;;  %v9589_v15 = vld [vmem:[#allocation55_spill] sm:$0xff] }
  0xfe   : > { %v7865_v48 = vpop.f32.mrb[0].mxu0  ;;  %9586 = vst [vmem:[#allocation147_spill] sm:$0xff] %v7874_v23  ;;  %9588 = vst [vmem:[#allocation148_spill] sm:$0xff] %v7890_v6  ;;  %v4220_v35 = vld [vmem:[%s9065_s1 + $0xbe8] sm:$0xff] }
  0xff   : > { %4840 = vmatpush1.bf16.msra.mxu0 %v7846_v55  ;;  %v7868_v3 = vpop.f32.mrb[1].mxu0  ;;  %v4215_v55 = vld [vmem:[%s9065_s1 + $0xbc0] sm:$0xff] }
 0x100   : > { %5032 = vmatpush1.bf16.msra.mxu1 %v9585_v7  ;;  %4842 = vmatprep.subr.bf16.mxu0 %v7850_v4  ;;  %v7894_v4 = vpack.c.bf16 %v4218_v27, %v4216_v22  ;;  %v9591_v7 = vld [vmem:[#allocation56_spill] sm:$0xff]  ;;  %v9593_v27 = vld [vmem:[#allocation59_spill] sm:$0xff] }
 0x101   : > { %5034 = vmatprep.subr.bf16.mxu1 %v9587_v59  ;;  %v4217_v59 = vld [vmem:[%s9065_s1 + $0xbd0] sm:$0xff] }
 0x102   : > { %9590 = vst [vmem:[#allocation149_spill] sm:$0xff] %v7894_v4  ;;  %v7910_v22 = vpack.c.bf16 %v4217_v59, %v4215_v55  ;;  %v4224_v55 = vld [vmem:[%s9065_s1 + $0xc08] sm:$0xff]  ;;  %v4226_v59 = vld [vmem:[%s9065_s1 + $0xc18] sm:$0xff] }
 0x103   : > { %4844 = vmatpush1.bf16.msra.mxu0 %v7870_v50  ;;  %v4219_v50 = vld [vmem:[%s9065_s1 + $0xbe0] sm:$0xff] }
 0x104   : > { %5036 = vmatpush1.bf16.msra.mxu1 %v9589_v15  ;;  %4846 = vmatprep.subr.bf16.mxu0 %v7874_v23  ;;  %9592 = vst [vmem:[#allocation150_spill] sm:$0xff] %v7910_v22  ;;  %v7914_v23 = vpack.c.bf16 %v4222_v11, %v4220_v35  ;;  %v9595_v15 = vld [vmem:[#allocation60_spill] sm:$0xff]  ;;  %v9597_v11 = vld [vmem:[#allocation63_spill] sm:$0xff] }
 0x105   : > { %5038 = vmatprep.subr.bf16.mxu1 %v9591_v7  ;;  %v4221_v7 = vld [vmem:[%s9065_s1 + $0xbf0] sm:$0xff] }
 0x106   : > { %9594 = vst [vmem:[#allocation151_spill] sm:$0xff] %v7914_v23  ;;  %v7930_v35 = vpack.c.bf16 %v4221_v7, %v4219_v50  ;;  %v4228_v7 = vld [vmem:[%s9065_s1 + $0xc28] sm:$0xff]  ;;  %v4230_v50 = vld [vmem:[%s9065_s1 + $0xc38] sm:$0xff] }
 0x107   : > { %4848 = vmatpush1.bf16.msra.mxu0 %v7890_v6  ;;  %v4223_v6 = vld [vmem:[%s9065_s1 + $0xc00] sm:$0xff] }
 0x108   : > { %5040 = vmatpush1.bf16.msra.mxu1 %v9593_v27  ;;  %4850 = vmatprep.subr.bf16.mxu0 %v7894_v4  ;;  %9596 = vst [vmem:[#allocation152_spill] sm:$0xff] %v7930_v35  ;;  %v7934_v4 = vpack.c.bf16 %v4226_v59, %v4224_v55  ;;  %v9599_v27 = vld [vmem:[#allocation64_spill] sm:$0xff]  ;;  %v9601_v59 = vld [vmem:[#allocation67_spill] sm:$0xff] }
 0x109   : > { %5042 = vmatprep.subr.bf16.mxu1 %v9595_v15  ;;  %v4225_v15 = vld [vmem:[%s9065_s1 + $0xc10] sm:$0xff] }
 0x10a   : > { %9598 = vst [vmem:[#allocation153_spill] sm:$0xff] %v7934_v4  ;;  %v7950_v55 = vpack.c.bf16 %v4225_v15, %v4223_v6  ;;  %v4232_v6 = vld [vmem:[%s9065_s1 + $0xc48] sm:$0xff]  ;;  %v4234_v15 = vld [vmem:[%s9065_s1 + $0xc58] sm:$0xff] }
 0x10b   : > { %4852 = vmatpush1.bf16.msra.mxu0 %v7910_v22  ;;  %v4227_v22 = vld [vmem:[%s9065_s1 + $0xc20] sm:$0xff] }
 0x10c   : > { %5044 = vmatpush1.bf16.msra.mxu1 %v9597_v11  ;;  %4854 = vmatprep.subr.bf16.mxu0 %v7914_v23  ;;  %9600 = vst [vmem:[#allocation154_spill] sm:$0xff] %v7950_v55  ;;  %v7954_v23 = vpack.c.bf16 %v4230_v50, %v4228_v7  ;;  %v9603_v11 = vld [vmem:[#allocation68_spill] sm:$0xff]  ;;  %v9605_v50 = vld [vmem:[#allocation71_spill] sm:$0xff] }
 0x10d   : > { %5046 = vmatprep.subr.bf16.mxu1 %v9599_v27  ;;  %v4229_v27 = vld [vmem:[%s9065_s1 + $0xc30] sm:$0xff] }
 0x10e   : > { %9602 = vst [vmem:[#allocation155_spill] sm:$0xff] %v7954_v23  ;;  %v7970_v7 = vpack.c.bf16 %v4229_v27, %v4227_v22  ;;  %v4236_v22 = vld [vmem:[%s9065_s1 + $0xc68] sm:$0xff]  ;;  %v4238_v27 = vld [vmem:[%s9065_s1 + $0xc78] sm:$0xff] }
 0x10f   : > { %4856 = vmatpush1.bf16.msra.mxu0 %v7930_v35  ;;  %v4231_v35 = vld [vmem:[%s9065_s1 + $0xc40] sm:$0xff] }
 0x110   : > { %5048 = vmatpush1.bf16.msra.mxu1 %v9601_v59  ;;  %4858 = vmatprep.subr.bf16.mxu0 %v7934_v4  ;;  %9604 = vst [vmem:[#allocation156_spill] sm:$0xff] %v7970_v7  ;;  %v7974_v4 = vpack.c.bf16 %v4234_v15, %v4232_v6  ;;  %v9607_v59 = vld [vmem:[#allocation72_spill] sm:$0xff]  ;;  %v9609_v15 = vld [vmem:[#allocation75_spill] sm:$0xff] }
 0x111   : > { %5050 = vmatprep.subr.bf16.mxu1 %v9603_v11  ;;  %v4233_v11 = vld [vmem:[%s9065_s1 + $0xc50] sm:$0xff] }
 0x112   : > { %9606 = vst [vmem:[#allocation157_spill] sm:$0xff] %v7974_v4  ;;  %v7990_v6 = vpack.c.bf16 %v4233_v11, %v4231_v35  ;;  %v4240_v35 = vld [vmem:[%s9065_s1 + $0xc88] sm:$0xff]  ;;  %v4242_v11 = vld [vmem:[%s9065_s1 + $0xc98] sm:$0xff] }
 0x113   : > { %4860 = vmatpush1.bf16.msra.mxu0 %v7950_v55  ;;  %v4235_v55 = vld [vmem:[%s9065_s1 + $0xc60] sm:$0xff] }
 0x114   : > { %5052 = vmatpush1.bf16.msra.mxu1 %v9605_v50  ;;  %4862 = vmatprep.subr.bf16.mxu0 %v7954_v23  ;;  %9608 = vst [vmem:[#allocation158_spill] sm:$0xff] %v7990_v6  ;;  %v7994_v23 = vpack.c.bf16 %v4238_v27, %v4236_v22  ;;  %v9611_v50 = vld [vmem:[#allocation76_spill] sm:$0xff]  ;;  %v8014_v27 = vpack.c.bf16 %v4242_v11, %v4240_v35 }
 0x115   : > { %5054 = vmatprep.subr.bf16.mxu1 %v9607_v59  ;;  %v4237_v59 = vld [vmem:[%s9065_s1 + $0xc70] sm:$0xff] }
 0x116   : > { %9610 = vst [vmem:[#allocation75_spill] sm:$0xff] %v7994_v23  ;;  %v8010_v22 = vpack.c.bf16 %v4237_v59, %v4235_v55  ;;  %9613 = vst [vmem:[#allocation160_spill] sm:$0xff] %v8014_v27  ;;  %v4244_v55 = vld [vmem:[%s9065_s1 + $0xca8] sm:$0xff]  ;;  %v4246_v59 = vld [vmem:[%s9065_s1 + $0xcb8] sm:$0xff] }
 0x117   : > { %4864 = vmatpush1.bf16.msra.mxu0 %v7970_v7  ;;  %v4241_v7 = vld [vmem:[%s9065_s1 + $0xc90] sm:$0xff]  ;;  %v8034_v11 = vpack.c.bf16 %v4246_v59, %v4244_v55  ;;  %v1562_v55 = vld [vmem:[%s6302_s23 + $0x18] sm:$0xf] }
 0x118   : > { %5056 = vmatpush1.bf16.msra.mxu1 %v9609_v15  ;;  %4866 = vmatprep.subr.bf16.mxu0 %v7974_v4  ;;  %9612 = vst [vmem:[#allocation159_spill] sm:$0xff] %v8010_v22  ;;  %v4239_v4 = vld [vmem:[%s9065_s1 + $0xc80] sm:$0xff] }
 0x119   : > { %5058 = vmatprep.subr.bf16.mxu1 %v9611_v50  ;;  %v9614_v50 = vld [vmem:[#allocation80_spill] sm:$0xff]  ;;  %v8030_v35 = vpack.c.bf16 %v4241_v7, %v4239_v4  ;;  %9616 = vst [vmem:[#allocation162_spill] sm:$0xff] %v8034_v11  ;;  %v4250_v4 = vld [vmem:[%s9065_s1 + $0xcd8] sm:$0xff]  ;;  %v1559_v7 = vld [vmem:[%s6302_s23] sm:$0xc0] }
 0x11b   : > { %4868 = vmatpush1.bf16.msra.mxu0 %v7990_v6  ;;  %9615 = vst [vmem:[#allocation161_spill] sm:$0xff] %v8030_v35  ;;  %v4245_v6 = vld [vmem:[%s9065_s1 + $0xcb0] sm:$0xff] }
 0x11c   : > { %5060 = vmatpush1.bf16.msra.mxu1 %v7137_v33  ;;  %4870 = vmatprep.subr.bf16.mxu0 %v7994_v23  ;;  %v4243_v23 = vld [vmem:[%s9065_s1 + $0xca0] sm:$0xff] }
 0x11d   : > { %5062 = vmatprep.subr.bf16.mxu1 %v9614_v50  ;;  %v4247_v33 = vld [vmem:[%s9065_s1 + $0xcc0] sm:$0xff] }
 0x11f   : > { %4872 = vmatpush1.bf16.msra.mxu0 %v8010_v22  ;;  %v4248_v22 = vld [vmem:[%s9065_s1 + $0xcc8] sm:$0xff] }
 0x120   : > { %5064 = vmatpush1.bf16.msra.mxu1 %v7173_v47  ;;  %4874 = vmatprep.subr.bf16.mxu0 %v8014_v27  ;;  %v8052_v27 = vpack.c.bf16 %v4245_v6, %v4243_v23  ;;  %v1719_v23 = vrot.slane %v1559_v7, 6  ;;  %v1720_v6 = vrot.slane %v1562_v55, 6  ;;  %v4251_v7 = vld [vmem:[%s9065_s1 + $0xce0] sm:$0xff]  ;;  %v4253_v55 = vld [vmem:[%s9065_s1 + $0xcf0] sm:$0xff] }
 0x121   : > { %5066 = vmatprep.subr.bf16.mxu1 %v7182_v29  ;;  %v8059_v29 = vpack.c.bf16 %v4250_v4, %v4248_v22  ;;  %v4252_v22 = vld [vmem:[%s9065_s1 + $0xce8] sm:$0xff]  ;;  %v4254_v4 = vld [vmem:[%s9065_s1 + $0xcf8] sm:$0xff] }
 0x122   : > { %9617 = vst [vmem:[#allocation163_spill] sm:$0xff] %v8052_v27 }
 0x123   : > { %4876 = vmatpush1.bf16.msra.mxu0 %v8030_v35  ;;  %v541_v59 = vpop.f32.mrb[0].mxu1  ;;  %9618 = vst [vmem:[#allocation164_spill] sm:$0xff] %v8059_v29  ;;  %v4249_v35 = vld [vmem:[%s9065_s1 + $0xcd0] sm:$0xff] }
 0x124   : > { %v8055_v47 = vadd.f32 %v7865_v48, %v541_v59  ;;  %5068 = vmatpush1.bf16.msra.mxu1 %v7210_v37  ;;  %v543_v50 = vpop.f32.mrb[1].mxu1  ;;  %4878 = vmatprep.subr.bf16.mxu0 %v8034_v11  ;;  %v8078_v59 = vpack.c.bf16 %v4249_v35, %v4247_v33  ;;  %v9621_v11 = vld [vmem:[#allocation11_spill] sm:$0xff]  ;;  %v4258_v35 = vld [vmem:[%s9065_s1 + $0xd18] sm:$0xff] }
 0x125   : > { %v8068_v48 = vadd.f32 %v7868_v3, %v543_v50  ;;  %5070 = vmatprep.subr.bf16.mxu1 %v7219_v38  ;;  %v1721_v3 = vsel %vm1126_vm2, %v1719_v23, %v1720_v6  ;;  %v8083_v50 = vpack.c.bf16 %v4254_v4, %v4252_v22  ;;  %v4256_v33 = vld [vmem:[%s9065_s1 + $0xd08] sm:$0xff]  ;;  %v8099_v23 = vpack.c.bf16 %v4253_v55, %v4251_v7  ;;  %v9623_v6 = vld [vmem:[#allocation12_spill] sm:$0xff]  ;;  %v4255_v4 = vld [vmem:[%s9065_s1 + $0xd00] sm:$0xff] }
 0x126   : > { %9619 = vst [vmem:[#allocation165_spill] sm:$0xff] %v8078_v59  ;;  %v8103_v22 = vpack.c.bf16 %v4258_v35, %v4256_v33  ;;  %v4262_v7 = vld [vmem:[%s9065_s1 + $0xd38] sm:$0xff]  ;;  %v9627_v33 = vld [vmem:[#allocation14_spill] sm:$0xff] }
 0x127   : > { %4880 = vmatpush1.bf16.msra.mxu0 %v8052_v27  ;;  %9620 = vst [vmem:[#allocation166_spill] sm:$0xff] %v8083_v50  ;;  %9622 = vst [vmem:[#allocation167_spill] sm:$0xff] %v8099_v23  ;;  %v9625_v27 = vld [vmem:[#allocation13_spill] sm:$0xff] }
 0x128   : > { %5072 = vmatpush1.bf16.msra.mxu1 %v7241_v45  ;;  %4882 = vmatprep.subr.bf16.mxu0 %v8059_v29  ;;  %9624 = vst [vmem:[#allocation168_spill] sm:$0xff] %v8103_v22  ;;  %v4257_v29 = vld [vmem:[%s9065_s1 + $0xd10] sm:$0xff]  ;;  %v4275_v45 = vld [vmem:[%s9065_s1 + $0xda0] sm:$0xff] }
 0x129   : > { %5074 = vmatprep.subr.bf16.mxu1 %v9621_v11  ;;  %v8120_v55 = vpack.c.bf16 %v4257_v29, %v4255_v4  ;;  %v4264_v29 = vld [vmem:[%s9065_s1 + $0xd48] sm:$0xff]  ;;  %v4266_v4 = vld [vmem:[%s9065_s1 + $0xd58] sm:$0xff]  ;;  %v9643_v11 = vld [vmem:[#allocation22_spill] sm:$0xff] }
 0x12b   : > { %4884 = vmatpush1.bf16.msra.mxu0 %v8078_v59  ;;  %1797 = vmatmul.mubr.f32.vlgmr.msra.gmra.mrb[4].mxu1 %v1721_v3  ;;  %v4260_v3 = vld [vmem:[%s9065_s1 + $0xd28] sm:$0xff]  ;;  %9626 = vst [vmem:[#allocation169_spill] sm:$0xff] %v8120_v55  ;;  %v4261_v59 = vld [vmem:[%s9065_s1 + $0xd30] sm:$0xff] }
 0x12c   : > { %5076 = vmatpush1.bf16.msra.mxu1 %v9623_v6  ;;  %4886 = vmatprep.subr.bf16.mxu0 %v8083_v50  ;;  %v8124_v35 = vpack.c.bf16 %v4262_v7, %v4260_v3  ;;  %v4259_v50 = vld [vmem:[%s9065_s1 + $0xd20] sm:$0xff]  ;;  %v9631_v7 = vld [vmem:[#allocation16_spill] sm:$0xff]  ;;  %v9637_v6 = vld [vmem:[#allocation19_spill] sm:$0xff] }
 0x12d   : > { %5078 = vmatprep.subr.bf16.mxu1 %v9625_v27  ;;  %1867 = vmatprep.mubr.f32.mxu1 %v9513_v54  ;;  %v9629_v27 = vld [vmem:[#allocation15_spill] sm:$0xff]  ;;  %v8140_v3 = vpack.c.bf16 %v4261_v59, %v4259_v50  ;;  %v4270_v50 = vld [vmem:[%s9065_s1 + $0xd78] sm:$0xff] }
 0x12e   : > { %9628 = vst [vmem:[#allocation170_spill] sm:$0xff] %v8124_v35  ;;  %v4268_v59 = vld [vmem:[%s9065_s1 + $0xd68] sm:$0xff] }
 0x12f   : > { %4888 = vmatpush1.bf16.msra.mxu0 %v8099_v23  ;;  %9630 = vst [vmem:[#allocation171_spill] sm:$0xff] %v8140_v3  ;;  %v4263_v23 = vld [vmem:[%s9065_s1 + $0xd40] sm:$0xff] }
 0x130   : > { %5080 = vmatpush1.bf16.msra.mxu1 %v9627_v33  ;;  %4890 = vmatprep.subr.bf16.mxu0 %v8103_v22  ;;  %v8144_v22 = vpack.c.bf16 %v4266_v4, %v4264_v29  ;;  %v9633_v33 = vld [vmem:[#allocation17_spill] sm:$0xff] }
 0x131   : > { %5082 = vmatprep.subr.bf16.mxu1 %v9629_v27  ;;  %v4265_v27 = vld [vmem:[%s9065_s1 + $0xd50] sm:$0xff]  ;;  %v1284_v29 = vld [vmem:[%s6302_s23 + $0xd8] sm:$0x3f] }
 0x132   : > { %9632 = vst [vmem:[#allocation172_spill] sm:$0xff] %v8144_v22  ;;  %v8161_v4 = vpack.c.bf16 %v4265_v27, %v4263_v23  ;;  %v4272_v27 = vld [vmem:[%s9065_s1 + $0xd88] sm:$0xff]  ;;  %v4274_v23 = vld [vmem:[%s9065_s1 + $0xd98] sm:$0xff] }
 0x133   : > { %4892 = vmatpush1.bf16.msra.mxu0 %v8120_v55  ;;  %v8165_v55 = vpack.c.bf16 %v4270_v50, %v4268_v59  ;;  %v1561_v50 = vld [vmem:[%s6302_s23 + $0x10] sm:$0xc0] }
 0x134   : > { %5084 = vmatpush1.bf16.msra.mxu1 %v9631_v7  ;;  %4894 = vmatprep.subr.bf16.mxu0 %v8124_v35  ;;  %9634 = vst [vmem:[#allocation173_spill] sm:$0xff] %v8161_v4  ;;  %v9635_v35 = vld [vmem:[#allocation18_spill] sm:$0xff]  ;;  %v4269_v7 = vld [vmem:[%s9065_s1 + $0xd70] sm:$0xff] }
 0x135   : > { %5086 = vmatprep.subr.bf16.mxu1 %v9633_v33  ;;  %9636 = vst [vmem:[#allocation174_spill] sm:$0xff] %v8165_v55  ;;  %v4267_v33 = vld [vmem:[%s9065_s1 + $0xd60] sm:$0xff] }
 0x136   : > { %v8181_v59 = vpack.c.bf16 %v4269_v7, %v4267_v33  ;;  %v4273_v33 = vld [vmem:[%s9065_s1 + $0xd90] sm:$0xff]  ;;  %v9641_v7 = vld [vmem:[#allocation21_spill] sm:$0xff] }
 0x137   : > { %4896 = vmatpush1.bf16.msra.mxu0 %v8140_v3  ;;  %v9639_v3 = vld [vmem:[#allocation20_spill] sm:$0xff] }
 0x138   : > { %5088 = vmatpush1.bf16.msra.mxu1 %v9635_v35  ;;  %4898 = vmatprep.subr.bf16.mxu0 %v8144_v22  ;;  %9638 = vst [vmem:[#allocation175_spill] sm:$0xff] %v8181_v59  ;;  %v1564_v22 = vld [vmem:[%s6302_s23 + $0x28] sm:$0xf]  ;;  %v4271_v35 = vld [vmem:[%s9065_s1 + $0xd80] sm:$0xff] }
 0x139   : > { %5090 = vmatprep.subr.bf16.mxu1 %v9637_v6  ;;  %v8188_v6 = vpack.c.bf16 %v4274_v23, %v4272_v27  ;;  %v1725_v27 = vrot.slane %v1561_v50, 6  ;;  %v1726_v23 = vrot.slane %v1564_v22, 6  ;;  %v4277_v50 = vld [vmem:[%s9065_s1 + $0xdb0] sm:$0xff]  ;;  %v8220_v22 = vld [vmem:[%s9065_s1 + $0x2c8] sm:$0xff] }
 0x13a   : > { %1446 = vmatmul.mubr.f32.vlgmr.msra.gmra.mrb[2].mxu0 %v1284_v29  ;;  %v4276_v29 = vld [vmem:[%s9065_s1 + $0xda8] sm:$0xff]  ;;  %9645 = vst [vmem:[#allocation178_spill] sm:$0xff] %v8220_v22 }
 0x13b   : > { %4900 = vmatpush1.bf16.msra.mxu0 %v8161_v4  ;;  %1516 = vmatprep.mubr.f32.mxu0 %v9513_v54  ;;  %9640 = vst [vmem:[#allocation176_spill] sm:$0xff] %v8188_v6  ;;  %v8204_v4 = vpack.c.bf16 %v4273_v33, %v4271_v35  ;;  %v4282_v35 = vld [vmem:[%s9065_s1 + $0xdd8] sm:$0xff]  ;;  %v1727_v33 = vsel %vm1126_vm2, %v1725_v27, %v1726_v23  ;;  %v4279_v27 = vld [vmem:[%s9065_s1 + $0xdc0] sm:$0xff]  ;;  %v4284_v23 = vld [vmem:[%s9065_s1 + $0xde8] sm:$0xff] }
 0x13c   : > { %5092 = vmatpush1.bf16.msra.mxu1 %v9639_v3  ;;  %4902 = vmatprep.subr.bf16.mxu0 %v8165_v55  ;;  %v4278_v55 = vld [vmem:[%s9065_s1 + $0xdb8] sm:$0xff]  ;;  %v1875_v3 = vld [vmem:[%s6302_s23 + $0x80] sm:$0xfc] }
 0x13d   : > { %5094 = vmatprep.subr.bf16.mxu1 %v9641_v7  ;;  %9642 = vst [vmem:[#allocation177_spill] sm:$0xff] %v8204_v4  ;;  %v8209_v7 = vpack.c.bf16 %v4278_v55, %v4276_v29  ;;  %v4280_v55 = vld [vmem:[%s9065_s1 + $0xdc8] sm:$0xff]  ;;  %v1881_v29 = vrot.slane %v1875_v3, 2 }
 0x13e   : > { %v9648_v3 = vld [vmem:[#allocation23_spill] sm:$0xff] }
 0x13f   : > { %4904 = vmatpush1.bf16.msra.mxu0 %v8181_v59  ;;  %9644 = vst [vmem:[#allocation22_spill] sm:$0xff] %v8209_v7  ;;  %v8236_v59 = vld [vmem:[%s9065_s1 + $0x2c0] sm:$0xff] }
 0x140   : > { %5096 = vmatpush1.bf16.msra.mxu1 %v9643_v11  ;;  %4906 = vmatprep.subr.bf16.mxu0 %v8188_v6  ;;  %v8231_v6 = vpack.c.bf16 %v4277_v50, %v4275_v45  ;;  %v4281_v45 = vld [vmem:[%s9065_s1 + $0xdd0] sm:$0xff]  ;;  %v4286_v50 = vld [vmem:[%s9065_s1 + $0xdf8] sm:$0xff] }
 0x141   : > { %1827 = vmatprep.subr.mxu1 %v8220_v22  ;;  %v8240_v22 = vpack.c.bf16 %v4282_v35, %v4280_v55  ;;  %v9649_v55 = vld [vmem:[#allocation24_spill] sm:$0xff]  ;;  %v9650_v35 = vld [vmem:[#allocation25_spill] sm:$0xff] }
 0x142   : > { %9646 = vst [vmem:[#allocation179_spill] sm:$0xff] %v8231_v6 }
 0x143   : > { %4908 = vmatpush1.bf16.msra.mxu0 %v8204_v4  ;;  %9647 = vst [vmem:[#allocation180_spill] sm:$0xff] %v8240_v22  ;;  %v4283_v4 = vld [vmem:[%s9065_s1 + $0xde0] sm:$0xff] }
 0x144   : > { %1828 = vmatpush1.msra.mxu1 %v8236_v59  ;;  %4910 = vmatprep.subr.bf16.mxu0 %v8209_v7  ;;  %v8259_v7 = vpack.c.bf16 %v4281_v45, %v4279_v27  ;;  %v2546_v45 = vld [vmem:[%s6302_s23 + $0x50] sm:$0xc0] }
 0x145   : > { %5098 = vmatprep.subr.bf16.mxu1 %v9648_v3  ;;  %4291 = vmatmul.mubr.msk.f32.vlgmr.msra.gmra.mrb[4].mxu1 %vm472_vm0, %v1727_v33  ;;  %v8262_v33 = vpack.c.bf16 %v4286_v50, %v4284_v23  ;;  %v4285_v3 = vld [vmem:[%s9065_s1 + $0xdf0] sm:$0xff]  ;;  %v2549_v23 = vld [vmem:[%s6302_s23 + $0x68] sm:$0xf] }
 0x146   : > { %5100 = vmatpush1.bf16.msra.mxu1 %v9649_v55  ;;  %1951 = vmatprep.mubr.f32.mxu1 %v1881_v29  ;;  %9651 = vst [vmem:[#allocation181_spill] sm:$0xff] %v8259_v7  ;;  %v9653_v55 = vld [vmem:[#allocation26_spill] sm:$0xff]  ;;  %v9654_v29 = vld [vmem:[#allocation27_spill] sm:$0xff]  ;;  %v8273_v27 = vpack.c.bf16 %v4285_v3, %v4283_v4 }
 0x147   : > { %4912 = vmatpush1.bf16.msra.mxu0 %v8231_v6  ;;  %5102 = vmatprep.subr.bf16.mxu1 %v9650_v35  ;;  %9652 = vst [vmem:[#allocation182_spill] sm:$0xff] %v8262_v33  ;;  %v8281_v50 = vld [vmem:[%s9065_s1 + $0xe08] sm:$0xff]  ;;  %v2560_v6 = vrot.slane %v2546_v45, 6  ;;  %v2561_v35 = vrot.slane %v2549_v23, 6  ;;  %v8290_v4 = vld [vmem:[%s9065_s1 + $0xe00] sm:$0xff] }
 0x148   : > { %4914 = vmatprep.subr.bf16.mxu0 %v8240_v22  ;;  %9655 = vst [vmem:[#allocation26_spill] sm:$0xff] %v8273_v27  ;;  %9656 = vst [vmem:[#allocation183_spill] sm:$0xff] %v8281_v50  ;;  %v9657_v22 = vld [vmem:[#allocation29_spill] sm:$0xff]  ;;  %v1286_v3 = vld [vmem:[%s6302_s23 + $0xe8] sm:$0x3f] }
 0x149   : > { %9659 = vst [vmem:[#allocation184_spill] sm:$0xff] %v8290_v4  ;;  %v9661_v45 = vld [vmem:[#allocation34_spill] sm:$0xff] }
 0x14a   : > { %5104 = vmatpush1.bf16.msra.mxu1 %v9653_v55  ;;  %v9662_v23 = vld [vmem:[#allocation2_spill] sm:$0xff] }
 0x14b   : > { %4916 = vmatpush1.bf16.msra.mxu0 %v8259_v7  ;;  %5106 = vmatprep.subr.bf16.mxu1 %v9654_v29  ;;  %v9658_v7 = vld [vmem:[#allocation30_spill] sm:$0xff]  ;;  %v2562_v29 = vsel %vm1126_vm2, %v2560_v6, %v2561_v35  ;;  %v9668_v6 = vld [vmem:[#allocation41_spill] sm:$0xff] }
 0x14c   : > { %4918 = vmatprep.subr.bf16.mxu0 %v8262_v33  ;;  %v9660_v33 = vld [vmem:[#allocation33_spill] sm:$0xff]  ;;  %v9669_v35 = vld [vmem:[#allocation6_spill] sm:$0xff] }
 0x14e   : > { %5108 = vmatpush1.bf16.msra.mxu1 %v9657_v22  ;;  %v9666_v22 = vld [vmem:[#allocation38_spill] sm:$0xff] }
 0x14f   : > { %4920 = vmatpush1.bf16.msra.mxu0 %v8273_v27  ;;  %5110 = vmatprep.subr.bf16.mxu1 %v9658_v7  ;;  %v9663_v27 = vld [vmem:[#allocation3_spill] sm:$0xff]  ;;  %v9665_v7 = vld [vmem:[#allocation4_spill] sm:$0xff] }
 0x150   : > { %1476 = vmatprep.subr.mxu0 %v8281_v50  ;;  %v9664_v50 = vld [vmem:[#allocation37_spill] sm:$0xff] }
 0x152   : > { %5112 = vmatpush1.bf16.msra.mxu1 %v9660_v33  ;;  %v9667_v33 = vld [vmem:[#allocation5_spill] sm:$0xff] }
 0x153   : > { %1477 = vmatpush1.msra.mxu0 %v8290_v4  ;;  %5114 = vmatprep.subr.bf16.mxu1 %v9661_v45  ;;  %v9670_v4 = vld [vmem:[#allocation42_spill] sm:$0xff] }
 0x154   : > { %4289 = vmatmul.mubr.msk.f32.vlgmr.msra.gmra.mrb[2].mxu0 %vm472_vm0, %v1286_v3  ;;  %5416 = vmatprep.subr.bf16.mxu0 %v9662_v23  ;;  %v9671_v3 = vld [vmem:[#allocation7_spill] sm:$0xff]  ;;  %v9672_v23 = vld [vmem:[#allocation45_spill] sm:$0xff] }
 0x155   : > { %5418 = vmatpush1.bf16.msra.mxu0 %v9663_v27  ;;  %2634 = vmatprep.mubr.f32.mxu0 %v2562_v29  ;;  %v9673_v27 = vld [vmem:[#allocation8_spill] sm:$0xff]  ;;  %v9674_v29 = vld [vmem:[#allocation46_spill] sm:$0xff] }
 0x156   : > { %5116 = vmatpush1.bf16.msra.mxu1 %v9664_v50  ;;  %5420 = vmatprep.subr.bf16.mxu0 %v9665_v7  ;;  %v9675_v7 = vld [vmem:[#allocation49_spill] sm:$0xff] }
 0x157   : > { %5118 = vmatprep.subr.bf16.mxu1 %v9666_v22 }
 0x159   : > { %5422 = vmatpush1.bf16.msra.mxu0 %v9667_v33 }
 0x15a   : > { %5120 = vmatpush1.bf16.msra.mxu1 %v9668_v6  ;;  %5424 = vmatprep.subr.bf16.mxu0 %v9669_v35  ;;  %v9676_v6 = vld [vmem:[#allocation50_spill] sm:$0xff] }
 0x15b   : > { %5122 = vmatprep.subr.bf16.mxu1 %v9670_v4 }
 0x15d   : > { %5426 = vmatpush1.bf16.msra.mxu0 %v9671_v3 }
 0x15e   : > { %5124 = vmatpush1.bf16.msra.mxu1 %v9672_v23  ;;  %5428 = vmatprep.subr.bf16.mxu0 %v9673_v27  ;;  %v9677_v27 = vld [vmem:[#allocation53_spill] sm:$0xff] }
 0x15f   : > { %5126 = vmatprep.subr.bf16.mxu1 %v9674_v29 }
 0x161   : > { %5430 = vmatpush1.bf16.msra.mxu0 %v6224_v51  ;;  %v9678_v51 = vld [vmem:[#allocation54_spill] sm:$0xff] }
 0x162   : > { %5128 = vmatpush1.bf16.msra.mxu1 %v9675_v7  ;;  %5432 = vmatprep.subr.bf16.mxu0 %v6236_v53  ;;  %v9679_v53 = vld [vmem:[#allocation57_spill] sm:$0xff] }
 0x163   : > { %v686_v33 = vpop.f32.mrb[2].mxu1  ;;  %5130 = vmatprep.subr.bf16.mxu1 %v9676_v6 }
 0x164   : > { %v8316_v35 = vadd.f32 %v686_v33, %v8055_v47  ;;  %v688_v4 = vpop.f32.mrb[3].mxu1  ;;  %v9680_v47 = vld [vmem:[#allocation58_spill] sm:$0xff] }
 0x165   : > { %5434 = vmatpush1.bf16.msra.mxu0 %v6266_v63  ;;  %v8320_v3 = vadd.f32 %v688_v4, %v8068_v48  ;;  %v9681_v63 = vld [vmem:[#allocation61_spill] sm:$0xff]  ;;  %v9682_v48 = vld [vmem:[#allocation62_spill] sm:$0xff] }
 0x166   : > { %5132 = vmatpush1.bf16.msra.mxu1 %v9677_v27  ;;  %5436 = vmatprep.subr.bf16.mxu0 %v6273_v1  ;;  %v9683_v1 = vld [vmem:[#allocation65_spill] sm:$0xff]  ;;  %v9690_v4 = vld [vmem:[#allocation78_spill] sm:$0xff] }
 0x167   : > { %5134 = vmatprep.subr.bf16.mxu1 %v9678_v51  ;;  %v2548_v33 = vld [vmem:[%s6302_s23 + $0x60] sm:$0xf] }
 0x169   : > { %5438 = vmatpush1.bf16.msra.mxu0 %v6297_v14  ;;  %v9684_v14 = vld [vmem:[#allocation66_spill] sm:$0xff] }
 0x16a   : > { %5136 = vmatpush1.bf16.msra.mxu1 %v9679_v53  ;;  %5440 = vmatprep.subr.bf16.mxu0 %v6308_v16  ;;  %v9685_v16 = vld [vmem:[#allocation69_spill] sm:$0xff] }
 0x16b   : > { %5138 = vmatprep.subr.bf16.mxu1 %v9680_v47 }
 0x16d   : > { %5442 = vmatpush1.bf16.msra.mxu0 %v6334_v30  ;;  %v9686_v30 = vld [vmem:[#allocation70_spill] sm:$0xff] }
 0x16e   : > { %5140 = vmatpush1.bf16.msra.mxu1 %v9681_v63  ;;  %5444 = vmatprep.subr.bf16.mxu0 %v6347_v36  ;;  %v9687_v36 = vld [vmem:[#allocation73_spill] sm:$0xff] }
 0x16f   : > { %5142 = vmatprep.subr.bf16.mxu1 %v9682_v48 }
 0x171   : > { %5446 = vmatpush1.bf16.msra.mxu0 %v6372_v49  ;;  %v9688_v49 = vld [vmem:[#allocation74_spill] sm:$0xff] }
 0x172   : > { %5144 = vmatpush1.bf16.msra.mxu1 %v9683_v1  ;;  %5448 = vmatprep.subr.bf16.mxu0 %v6386_v58  ;;  %v9689_v58 = vld [vmem:[#allocation77_spill] sm:$0xff] }
 0x173   : > { %5146 = vmatprep.subr.bf16.mxu1 %v9684_v14 }
 0x175   : > { %5450 = vmatpush1.bf16.msra.mxu0 %v6411_v5  ;;  %v1874_v5 = vld [vmem:[%s6302_s23 + $0x78] sm:$0xfc] }
 0x176   : > { %5148 = vmatpush1.bf16.msra.mxu1 %v9685_v16  ;;  %5452 = vmatprep.subr.bf16.mxu0 %v6425_v20  ;;  %v1880_v20 = vrot.slane %v1874_v5, 2  ;;  %v9696_v5 = vld [vmem:[#allocation88_spill] sm:$0xff] }
 0x177   : > { %5150 = vmatprep.subr.bf16.mxu1 %v9686_v30 }
 0x179   : > { %5454 = vmatpush1.bf16.msra.mxu0 %v6447_v32  ;;  %v9691_v32 = vld [vmem:[#allocation81_spill] sm:$0xff] }
 0x17a   : > { %5152 = vmatpush1.bf16.msra.mxu1 %v9687_v36  ;;  %5456 = vmatprep.subr.bf16.mxu0 %v6461_v41  ;;  %v9692_v41 = vld [vmem:[#allocation82_spill] sm:$0xff] }
 0x17b   : > { %5154 = vmatprep.subr.bf16.mxu1 %v9688_v49 }
 0x17d   : > { %5458 = vmatpush1.bf16.msra.mxu0 %v6483_v56  ;;  %v9693_v56 = vld [vmem:[#allocation85_spill] sm:$0xff] }
 0x17e   : > { %5156 = vmatpush1.bf16.msra.mxu1 %v9689_v58  ;;  %5460 = vmatprep.subr.bf16.mxu0 %v6497_v2  ;;  %v9694_v2 = vld [vmem:[#allocation86_spill] sm:$0xff] }
 0x17f   : > { %5158 = vmatprep.subr.bf16.mxu1 %v9690_v4 }
 0x181   : > { %5462 = vmatpush1.bf16.msra.mxu0 %v6520_v28  ;;  %v9695_v28 = vld [vmem:[#allocation87_spill] sm:$0xff] }
 0x182   : > { %5160 = vmatpush1.bf16.msra.mxu1 %v9691_v32  ;;  %5464 = vmatprep.subr.bf16.mxu0 %v6531_v43  ;;  %v2545_v43 = vld [vmem:[%s6302_s23 + $0x48] sm:$0xc0] }
 0x183   : > { %5162 = vmatprep.subr.bf16.mxu1 %v9692_v41 }
 0x185   : > { %5466 = vmatpush1.bf16.msra.mxu0 %v6550_v62  ;;  %1952 = vmatmul.mubr.f32.vlgmr.msra.gmra.mrb[4].mxu1 %v1880_v20  ;;  %v2557_v62 = vrot.slane %v2545_v43, 6  ;;  %v9697_v20 = vld [vmem:[#allocation90_spill] sm:$0xff] }
 0x186   : > { %5164 = vmatpush1.bf16.msra.mxu1 %v9693_v56  ;;  %5468 = vmatprep.subr.bf16.mxu0 %v6559_v19  ;;  %v2558_v19 = vrot.slane %v2548_v33, 6  ;;  %v9701_v43 = vld [vmem:[#allocation94_spill] sm:$0xff]  ;;  %v2035_v33 = vld [vmem:[%s6302_s23 + $0xc8] sm:$0x3] }
 0x187   : > { %5166 = vmatprep.subr.bf16.mxu1 %v9694_v2  ;;  %2022 = vmatprep.mubr.f32.mxu1 %v9513_v54 }
 0x189   : > { %5470 = vmatpush1.bf16.msra.mxu0 %v6589_v60  ;;  %v9698_v60 = vld [vmem:[#allocation91_spill] sm:$0xff] }
 0x18a   : > { %5168 = vmatpush1.bf16.msra.mxu1 %v9695_v28  ;;  %5472 = vmatprep.subr.bf16.mxu0 %v6598_v34  ;;  %v2559_v34 = vsel %vm1126_vm2, %v2557_v62, %v2558_v19  ;;  %v9699_v28 = vld [vmem:[#allocation92_spill] sm:$0xff]  ;;  %v1876_v62 = vld [vmem:[%s6302_s23 + $0x88] sm:$0xfc] }
 0x18b   : > { %5170 = vmatprep.subr.bf16.mxu1 %v9696_v5 }
 0x18d   : > { %5474 = vmatpush1.bf16.msra.mxu0 %v6625_v46  ;;  %v9700_v46 = vld [vmem:[#allocation93_spill] sm:$0xff] }
 0x18e   : > { %5172 = vmatpush1.bf16.msra.mxu1 %v9697_v20  ;;  %5476 = vmatprep.subr.bf16.mxu0 %v6635_v61  ;;  %v2032_v61 = vld [vmem:[%s6302_s23 + $0xb0] sm:$0xf0] }
 0x18f   : > { %5174 = vmatprep.subr.bf16.mxu1 %v9698_v60  ;;  %v2046_v19 = vrot.slane %v2032_v61, 4  ;;  %v2543_v61 = vld [vmem:[%s6302_s23 + $0x38] sm:$0x3] }
 0x191   : > { %5478 = vmatpush1.bf16.msra.mxu0 %v6662_v42  ;;  %v9702_v42 = vld [vmem:[#allocation95_spill] sm:$0xff] }
 0x192   : > { %5176 = vmatpush1.bf16.msra.mxu1 %v9699_v28  ;;  %5480 = vmatprep.subr.bf16.mxu0 %v6091_v8  ;;  %v2047_v8 = vrot.slane %v2035_v33, 4  ;;  %v9703_v28 = vld [vmem:[#allocation96_spill] sm:$0xff]  ;;  %v9704_v33 = vld [vmem:[#allocation9_spill] sm:$0xff] }
 0x193   : > { %5178 = vmatprep.subr.bf16.mxu1 %v9700_v46 }
 0x194   : > { %2635 = vmatmul.mubr.f32.vlgmr.msra.gmra.mrb[4].mxu0 %v2559_v34  ;;  %v8396_v34 = vld [vmem:[%s9065_s1 + $0x860] sm:$0xff] }
 0x195   : > { %5482 = vmatpush1.bf16.msra.mxu0 %v6105_v13  ;;  %2705 = vmatprep.mubr.f32.mxu0 %v9513_v54  ;;  %v8388_v13 = vld [vmem:[%s9065_s1 + $0x868] sm:$0xff] }
 0x196   : > { %5180 = vmatpush1.bf16.msra.mxu1 %v9701_v43  ;;  %5484 = vmatprep.subr.bf16.mxu0 %v6120_v18  ;;  %v1882_v18 = vrot.slane %v1876_v62, 2 }
 0x197   : > { %5182 = vmatprep.subr.bf16.mxu1 %v9702_v42 }
 0x199   : > { %5486 = vmatpush1.bf16.msra.mxu0 %v6145_v26  ;;  %v2048_v26 = vsel %vm865_vm1, %v2046_v19, %v2047_v8  ;;  %v9705_v8 = vld [vmem:[#allocation101_spill] sm:$0xff] }
 0x19a   : > { %5184 = vmatpush1.bf16.msra.mxu1 %v9703_v28  ;;  %5488 = vmatprep.subr.bf16.mxu0 %v6158_v31  ;;  %v2547_v31 = vld [vmem:[%s6302_s23 + $0x58] sm:$0xc0] }
 0x19b   : > { %1982 = vmatprep.subr.mxu1 %v8388_v13  ;;  %v2563_v62 = vrot.slane %v2547_v31, 6  ;;  %v9711_v31 = vld [vmem:[#allocation104_spill] sm:$0xff] }
 0x19d   : > { %5490 = vmatpush1.bf16.msra.mxu0 %v6189_v39  ;;  %v2550_v39 = vld [vmem:[%s6302_s23 + $0x70] sm:$0xf] }
 0x19e   : > { %1983 = vmatpush1.msra.mxu1 %v8396_v34  ;;  %5492 = vmatprep.subr.bf16.mxu0 %v6203_v44  ;;  %v2540_v44 = vld [vmem:[%s6302_s23 + $0x20] sm:$0xf0]  ;;  %v2564_v19 = vrot.slane %v2550_v39, 6  ;;  %v9712_v39 = vld [vmem:[#allocation28_spill] sm:$0xff] }
 0x19f   : > { %5186 = vmatprep.subr.bf16.mxu1 %v7341_v40  ;;  %4292 = vmatmul.mubr.msk.f32.vlgmr.msra.gmra.mrb[4].mxu1 %vm472_vm0, %v1882_v18  ;;  %v2722_v18 = vrot.slane %v2543_v61, 4  ;;  %v9714_v61 = vld [vmem:[#allocation105_spill] sm:$0xff] }
 0x1a0   : > { %5188 = vmatpush1.bf16.msra.mxu1 %v7345_v17  ;;  %2120 = vmatprep.mubr.f32.mxu1 %v2048_v26  ;;  %v9706_v26 = vld [vmem:[#allocation10_spill] sm:$0xff]  ;;  %v9710_v17 = vld [vmem:[#allocation136_spill] sm:$0xff] }
 0x1a1   : > { %5494 = vmatpush1.bf16.msra.mxu0 %v6234_v52  ;;  %5190 = vmatprep.subr.bf16.mxu1 %v7348_v9  ;;  %v2721_v52 = vrot.slane %v2540_v44, 4  ;;  %v9709_v9 = vld [vmem:[#allocation103_spill] sm:$0xff] }
 0x1a2   : > { %5496 = vmatprep.subr.bf16.mxu0 %v6248_v57  ;;  %v9707_v57 = vld [vmem:[#allocation102_spill] sm:$0xff]  ;;  %v9713_v44 = vld [vmem:[#allocation31_spill] sm:$0xff] }
 0x1a4   : > { %5192 = vmatpush1.bf16.msra.mxu1 %v7367_v12  ;;  %v9708_v12 = vld [vmem:[#allocation134_spill] sm:$0xff] }
 0x1a5   : > { %5498 = vmatpush1.bf16.msra.mxu0 %v6271_v0  ;;  %5194 = vmatprep.subr.bf16.mxu1 %v7371_v21  ;;  %v2565_v0 = vsel %vm1126_vm2, %v2563_v62, %v2564_v19  ;;  %v2723_v21 = vsel %vm865_vm1, %v2721_v52, %v2722_v18  ;;  %v9717_v62 = vld [vmem:[#allocation35_spill] sm:$0xff]  ;;  %v9720_v52 = vld [vmem:[#allocation108_spill] sm:$0xff] }
 0x1a6   : > { %5500 = vmatprep.subr.bf16.mxu0 %v9704_v33  ;;  %v9716_v33 = vld [vmem:[#allocation106_spill] sm:$0xff]  ;;  %v9718_v19 = vld [vmem:[#allocation107_spill] sm:$0xff] }
 0x1a7   : > { %v9721_v18 = vld [vmem:[#allocation39_spill] sm:$0xff] }
 0x1a8   : > { %5196 = vmatpush1.bf16.msra.mxu1 %v9705_v8 }
 0x1a9   : > { %5502 = vmatpush1.bf16.msra.mxu0 %v9706_v26  ;;  %5198 = vmatprep.subr.bf16.mxu1 %v9707_v57  ;;  %v9722_v26 = vld [vmem:[#allocation109_spill] sm:$0xff] }
 0x1aa   : > { %2665 = vmatprep.subr.mxu0 %v9708_v12  ;;  %v9715_v12 = vld [vmem:[#allocation32_spill] sm:$0xff] }
 0x1ac   : > { %5200 = vmatpush1.bf16.msra.mxu1 %v9709_v9 }
 0x1ad   : > { %2666 = vmatpush1.msra.mxu0 %v9710_v17  ;;  %5202 = vmatprep.subr.bf16.mxu1 %v9711_v31  ;;  %v9719_v17 = vld [vmem:[#allocation36_spill] sm:$0xff] }
 0x1ae   : > { %5504 = vmatprep.subr.bf16.mxu0 %v9712_v39  ;;  %4315 = vmatmul.mubr.msk.f32.vlgmr.msra.gmra.mrb[4].mxu0 %vm472_vm0, %v2565_v0  ;;  %v9723_v0 = vld [vmem:[#allocation40_spill] sm:$0xff]  ;;  %v9725_v39 = vld [vmem:[#allocation111_spill] sm:$0xff] }
 0x1af   : > { %5506 = vmatpush1.bf16.msra.mxu0 %v9713_v44  ;;  %2795 = vmatprep.mubr.f32.mxu0 %v2723_v21  ;;  %v9724_v21 = vld [vmem:[#allocation110_spill] sm:$0xff]  ;;  %v9726_v44 = vld [vmem:[#allocation112_spill] sm:$0xff] }
 0x1b0   : > { %5204 = vmatpush1.bf16.msra.mxu1 %v9714_v61  ;;  %5508 = vmatprep.subr.bf16.mxu0 %v9715_v12  ;;  %v9727_v12 = vld [vmem:[#allocation113_spill] sm:$0xff] }
 0x1b1   : > { %5206 = vmatprep.subr.bf16.mxu1 %v9716_v33 }
 0x1b3   : > { %5510 = vmatpush1.bf16.msra.mxu0 %v9717_v62  ;;  %v9728_v62 = vld [vmem:[#allocation48_spill] sm:$0xff] }
 0x1b4   : > { %5208 = vmatpush1.bf16.msra.mxu1 %v9718_v19  ;;  %5512 = vmatprep.subr.bf16.mxu0 %v9719_v17  ;;  %v9729_v17 = vld [vmem:[#allocation114_spill] sm:$0xff] }
 0x1b5   : > { %5210 = vmatprep.subr.bf16.mxu1 %v9720_v52  ;;  %v9753_v52 = vld [vmem:[#allocation126_spill] sm:$0xff] }
 0x1b7   : > { %5514 = vmatpush1.bf16.msra.mxu0 %v9721_v18  ;;  %v9730_v18 = vld [vmem:[#allocation51_spill] sm:$0xff] }
 0x1b8   : > { %5212 = vmatpush1.bf16.msra.mxu1 %v9722_v26  ;;  %5516 = vmatprep.subr.bf16.mxu0 %v9723_v0  ;;  %v9731_v0 = vld [vmem:[#allocation115_spill] sm:$0xff] }
 0x1b9   : > { %5214 = vmatprep.subr.bf16.mxu1 %v9724_v21  ;;  %v9732_v21 = vld [vmem:[#allocation52_spill] sm:$0xff]  ;;  %v9750_v26 = vld [vmem:[#allocation71_spill] sm:$0xff] }
 0x1bb   : > { %5518 = vmatpush1.bf16.msra.mxu0 %v9577_v24  ;;  %v9733_v24 = vld [vmem:[#allocation116_spill] sm:$0xff] }
 0x1bc   : > { %5216 = vmatpush1.bf16.msra.mxu1 %v9725_v39  ;;  %5520 = vmatprep.subr.bf16.mxu0 %v9579_v25  ;;  %v9734_v39 = vld [vmem:[#allocation55_spill] sm:$0xff]  ;;  %v9735_v25 = vld [vmem:[#allocation117_spill] sm:$0xff] }
 0x1bd   : > { %5218 = vmatprep.subr.bf16.mxu1 %v9726_v44  ;;  %v9746_v44 = vld [vmem:[#allocation67_spill] sm:$0xff] }
 0x1bf   : > { %5522 = vmatpush1.bf16.msra.mxu0 %v9581_v10  ;;  %v9736_v10 = vld [vmem:[#allocation56_spill] sm:$0xff] }
 0x1c0   : > { %5220 = vmatpush1.bf16.msra.mxu1 %v9727_v12  ;;  %5524 = vmatprep.subr.bf16.mxu0 %v9728_v62  ;;  %v9737_v12 = vld [vmem:[#allocation118_spill] sm:$0xff]  ;;  %v9738_v62 = vld [vmem:[#allocation59_spill] sm:$0xff] }
 0x1c1   : > { %5222 = vmatprep.subr.bf16.mxu1 %v9729_v17  ;;  %v9739_v17 = vld [vmem:[#allocation119_spill] sm:$0xff] }
 0x1c3   : > { %5526 = vmatpush1.bf16.msra.mxu0 %v9730_v18  ;;  %v9740_v18 = vld [vmem:[#allocation60_spill] sm:$0xff] }
 0x1c4   : > { %5224 = vmatpush1.bf16.msra.mxu1 %v9731_v0  ;;  %5528 = vmatprep.subr.bf16.mxu0 %v9732_v21  ;;  %v9741_v0 = vld [vmem:[#allocation120_spill] sm:$0xff]  ;;  %v9742_v21 = vld [vmem:[#allocation63_spill] sm:$0xff] }
 0x1c5   : > { %5226 = vmatprep.subr.bf16.mxu1 %v9733_v24  ;;  %v9743_v24 = vld [vmem:[#allocation121_spill] sm:$0xff] }
 0x1c7   : > { %5530 = vmatpush1.bf16.msra.mxu0 %v9734_v39  ;;  %v9744_v39 = vld [vmem:[#allocation64_spill] sm:$0xff] }
 0x1c8   : > { %5228 = vmatpush1.bf16.msra.mxu1 %v9735_v25  ;;  %5532 = vmatprep.subr.bf16.mxu0 %v9736_v10  ;;  %v9745_v25 = vld [vmem:[#allocation122_spill] sm:$0xff]  ;;  %v9747_v10 = vld [vmem:[#allocation123_spill] sm:$0xff] }
 0x1c9   : > { %5230 = vmatprep.subr.bf16.mxu1 %v9737_v12  ;;  %v9748_v12 = vld [vmem:[#allocation68_spill] sm:$0xff] }
 0x1cb   : > { %5534 = vmatpush1.bf16.msra.mxu0 %v9738_v62  ;;  %v9749_v62 = vld [vmem:[#allocation124_spill] sm:$0xff] }
 0x1cc   : > { %5232 = vmatpush1.bf16.msra.mxu1 %v9739_v17  ;;  %5536 = vmatprep.subr.bf16.mxu0 %v9740_v18  ;;  %v2031_v17 = vld [vmem:[%s6302_s23 + $0xa8] sm:$0xf0]  ;;  %v2034_v18 = vld [vmem:[%s6302_s23 + $0xc0] sm:$0x3] }
 0x1cd   : > { %5234 = vmatprep.subr.bf16.mxu1 %v9741_v0  ;;  %v9751_v0 = vld [vmem:[#allocation125_spill] sm:$0xff] }
 0x1cf   : > { %5538 = vmatpush1.bf16.msra.mxu0 %v9742_v21  ;;  %v9752_v21 = vld [vmem:[#allocation72_spill] sm:$0xff] }
 0x1d0   : > { %5236 = vmatpush1.bf16.msra.mxu1 %v9743_v24  ;;  %5540 = vmatprep.subr.bf16.mxu0 %v9744_v39  ;;  %v2043_v24 = vrot.slane %v2031_v17, 4  ;;  %v2044_v39 = vrot.slane %v2034_v18, 4  ;;  %v9759_v17 = vld [vmem:[#allocation80_spill] sm:$0xff]  ;;  %v9760_v18 = vld [vmem:[#allocation130_spill] sm:$0xff] }
 0x1d1   : > { %5238 = vmatprep.subr.bf16.mxu1 %v9745_v25 }
 0x1d3   : > { %5542 = vmatpush1.bf16.msra.mxu0 %v9746_v44  ;;  %v9754_v44 = vld [vmem:[#allocation127_spill] sm:$0xff] }
 0x1d4   : > { %5240 = vmatpush1.bf16.msra.mxu1 %v9747_v10  ;;  %5544 = vmatprep.subr.bf16.mxu0 %v9748_v12  ;;  %v9755_v12 = vld [vmem:[#allocation76_spill] sm:$0xff] }
 0x1d5   : > { %5242 = vmatprep.subr.bf16.mxu1 %v9749_v62  ;;  %v2045_v62 = vsel %vm865_vm1, %v2043_v24, %v2044_v39  ;;  %v9756_v10 = vld [vmem:[#allocation128_spill] sm:$0xff]  ;;  %v2539_v24 = vld [vmem:[%s6302_s23 + $0x18] sm:$0xf0] }
 0x1d6   : > { %v2542_v39 = vld [vmem:[%s6302_s23 + $0x30] sm:$0x3] }
 0x1d7   : > { %5546 = vmatpush1.bf16.msra.mxu0 %v9750_v26  ;;  %v9757_v26 = vld [vmem:[#allocation79_spill] sm:$0xff] }
 0x1d8   : > { %5244 = vmatpush1.bf16.msra.mxu1 %v9751_v0  ;;  %5548 = vmatprep.subr.bf16.mxu0 %v9752_v21  ;;  %v9758_v21 = vld [vmem:[#allocation129_spill] sm:$0xff]  ;;  %v9778_v0 = vld [vmem:[#allocation142_spill] sm:$0xff] }
 0x1d9   : > { %5246 = vmatprep.subr.bf16.mxu1 %v9753_v52  ;;  %v9776_v52 = vld [vmem:[#allocation141_spill] sm:$0xff] }
 0x1db   : > { %5550 = vmatpush1.bf16.msra.mxu0 %v9609_v15  ;;  %v9761_v15 = vld [vmem:[#allocation83_spill] sm:$0xff] }
 0x1dc   : > { %5248 = vmatpush1.bf16.msra.mxu1 %v9754_v44  ;;  %5552 = vmatprep.subr.bf16.mxu0 %v9755_v12  ;;  %v9762_v44 = vld [vmem:[#allocation131_spill] sm:$0xff]  ;;  %v9763_v12 = vld [vmem:[#allocation84_spill] sm:$0xff] }
 0x1dd   : > { %5250 = vmatprep.subr.bf16.mxu1 %v9756_v10  ;;  %v9764_v10 = vld [vmem:[#allocation132_spill] sm:$0xff] }
 0x1df   : > { %5554 = vmatpush1.bf16.msra.mxu0 %v9757_v26  ;;  %2121 = vmatmul.mubr.f32.vlgmr.msra.gmra.mrb[4].mxu1 %v2045_v62  ;;  %v2718_v62 = vrot.slane %v2539_v24, 4  ;;  %v2719_v26 = vrot.slane %v2542_v39, 4  ;;  %v2033_v24 = vld [vmem:[%s6302_s23 + $0xb8] sm:$0xf0]  ;;  %v2036_v39 = vld [vmem:[%s6302_s23 + $0xd0] sm:$0x3] }
 0x1e0   : > { %5252 = vmatpush1.bf16.msra.mxu1 %v9758_v21  ;;  %5556 = vmatprep.subr.bf16.mxu0 %v9759_v17  ;;  %v9765_v17 = vld [vmem:[#allocation133_spill] sm:$0xff]  ;;  %v9769_v21 = vld [vmem:[#allocation11_spill] sm:$0xff] }
 0x1e1   : > { %5254 = vmatprep.subr.bf16.mxu1 %v9760_v18  ;;  %2191 = vmatprep.mubr.f32.mxu1 %v9513_v54  ;;  %v9768_v18 = vld [vmem:[#allocation137_spill] sm:$0xff] }
 0x1e3   : > { %5558 = vmatpush1.bf16.msra.mxu0 %v9761_v15  ;;  %v9766_v15 = vld [vmem:[#allocation135_spill] sm:$0xff] }
 0x1e4   : > { %5256 = vmatpush1.bf16.msra.mxu1 %v9762_v44  ;;  %5560 = vmatprep.subr.bf16.mxu0 %v9763_v12  ;;  %v9767_v44 = vld [vmem:[#allocation89_spill] sm:$0xff]  ;;  %v2720_v12 = vsel %vm865_vm1, %v2718_v62, %v2719_v26  ;;  %v9774_v62 = vld [vmem:[#allocation140_spill] sm:$0xff]  ;;  %v2049_v26 = vrot.slane %v2033_v24, 4  ;;  %v9780_v24 = vld [vmem:[#allocation143_spill] sm:$0xff] }
 0x1e5   : > { %5258 = vmatprep.subr.bf16.mxu1 %v9764_v10  ;;  %v9770_v10 = vld [vmem:[#allocation138_spill] sm:$0xff] }
 0x1e7   : > { %5562 = vmatpush1.bf16.msra.mxu0 %v7210_v37  ;;  %v9771_v37 = vld [vmem:[#allocation12_spill] sm:$0xff] }
 0x1e8   : > { %5260 = vmatpush1.bf16.msra.mxu1 %v9765_v17  ;;  %5564 = vmatprep.subr.bf16.mxu0 %v7219_v38  ;;  %v9772_v38 = vld [vmem:[#allocation139_spill] sm:$0xff]  ;;  %v2204_v17 = vld [vmem:[%s6302_s23 + $0xf8] sm:$0xf] }
 0x1e9   : > { %5262 = vmatprep.subr.bf16.mxu1 %v9766_v15  ;;  %v9773_v15 = vld [vmem:[#allocation13_spill] sm:$0xff] }
 0x1eb   : > { %5566 = vmatpush1.bf16.msra.mxu0 %v9767_v44  ;;  %v2201_v44 = vld [vmem:[%s6302_s23 + $0xe0] sm:$0xc0] }
 0x1ec   : > { %5264 = vmatpush1.bf16.msra.mxu1 %v9768_v18  ;;  %5568 = vmatprep.subr.bf16.mxu0 %v9769_v21  ;;  %v2050_v18 = vrot.slane %v2036_v39, 4  ;;  %v9775_v21 = vld [vmem:[#allocation14_spill] sm:$0xff]  ;;  %v9781_v39 = vld [vmem:[#allocation17_spill] sm:$0xff] }
 0x1ed   : > { %5266 = vmatprep.subr.bf16.mxu1 %v9770_v10  ;;  %v2215_v10 = vrot.slane %v2201_v44, 6  ;;  %v9782_v44 = vld [vmem:[#allocation144_spill] sm:$0xff] }
 0x1ee   : > { %2796 = vmatmul.mubr.f32.vlgmr.msra.gmra.mrb[4].mxu0 %v2720_v12  ;;  %v2216_v12 = vrot.slane %v2204_v17, 6  ;;  %v9783_v17 = vld [vmem:[#allocation145_spill] sm:$0xff] }
 0x1ef   : > { %5570 = vmatpush1.bf16.msra.mxu0 %v9771_v37  ;;  %2866 = vmatprep.mubr.f32.mxu0 %v9513_v54  ;;  %v9777_v37 = vld [vmem:[#allocation15_spill] sm:$0xff] }
 0x1f0   : > { %5268 = vmatpush1.bf16.msra.mxu1 %v9772_v38  ;;  %5572 = vmatprep.subr.bf16.mxu0 %v9773_v15  ;;  %v2051_v15 = vsel %vm865_vm1, %v2049_v26, %v2050_v18  ;;  %v9779_v38 = vld [vmem:[#allocation16_spill] sm:$0xff]  ;;  %v9786_v18 = vld [vmem:[#allocation19_spill] sm:$0xff]  ;;  %v2544_v26 = vld [vmem:[%s6302_s23 + $0x40] sm:$0x3] }
 0x1f1   : > { %5270 = vmatprep.subr.bf16.mxu1 %v9774_v62  ;;  %v2217_v62 = vsel %vm1126_vm2, %v2215_v10, %v2216_v12  ;;  %v2541_v10 = vld [vmem:[%s6302_s23 + $0x28] sm:$0xf0]  ;;  %v9788_v12 = vld [vmem:[#allocation20_spill] sm:$0xff] }
 0x1f3   : > { %5574 = vmatpush1.bf16.msra.mxu0 %v9775_v21  ;;  %v9784_v21 = vld [vmem:[#allocation18_spill] sm:$0xff] }
 0x1f4   : > { %5272 = vmatpush1.bf16.msra.mxu1 %v9776_v52  ;;  %5576 = vmatprep.subr.bf16.mxu0 %v9777_v37  ;;  %v9789_v37 = vld [vmem:[#allocation47_spill] sm:$0xff] }
 0x1f5   : > { %2151 = vmatprep.subr.mxu1 %v9778_v0  ;;  %v9785_v0 = vld [vmem:[#allocation43_spill] sm:$0xff] }
 0x1f7   : > { %5578 = vmatpush1.bf16.msra.mxu0 %v9779_v38  ;;  %v9787_v38 = vld [vmem:[#allocation44_spill] sm:$0xff] }
 0x1f8   : > { %2152 = vmatpush1.msra.mxu1 %v9780_v24  ;;  %5580 = vmatprep.subr.bf16.mxu0 %v9781_v39  ;;  %v9790_v24 = vld [vmem:[#allocation21_spill] sm:$0xff]  ;;  %v2725_v39 = vrot.slane %v2544_v26, 4 }
 0x1f9   : > { %5274 = vmatprep.subr.bf16.mxu1 %v9782_v44  ;;  %4293 = vmatmul.mubr.msk.f32.vlgmr.msra.gmra.mrb[4].mxu1 %vm472_vm0, %v2051_v15  ;;  %v2724_v15 = vrot.slane %v2541_v10, 4  ;;  %v9797_v10 = vld [vmem:[#allocation24_spill] sm:$0xff]  ;;  %v9799_v26 = vld [vmem:[#allocation25_spill] sm:$0xff] }
 0x1fa   : > { %5276 = vmatpush1.bf16.msra.mxu1 %v9783_v17  ;;  %2289 = vmatprep.mubr.f32.mxu1 %v2217_v62  ;;  %v9791_v62 = vld [vmem:[#allocation146_spill] sm:$0xff]  ;;  %v2874_v17 = vld [vmem:[%s6302_s23 + $0x98] sm:$0x3f] }
 0x1fb   : > { %5582 = vmatpush1.bf16.msra.mxu0 %v9784_v21  ;;  %5278 = vmatprep.subr.bf16.mxu1 %v9785_v0  ;;  %v9792_v21 = vld [vmem:[#allocation147_spill] sm:$0xff]  ;;  %v9793_v0 = vld [vmem:[#allocation178_spill] sm:$0xff] }
 0x1fc   : > { %5584 = vmatprep.subr.bf16.mxu0 %v9786_v18  ;;  %v2726_v18 = vsel %vm865_vm1, %v2724_v15, %v2725_v39  ;;  %v9801_v15 = vld [vmem:[#allocation152_spill] sm:$0xff]  ;;  %v9803_v39 = vld [vmem:[#allocation153_spill] sm:$0xff] }
 0x1fe   : > { %5280 = vmatpush1.bf16.msra.mxu1 %v9787_v38  ;;  %v9794_v38 = vld [vmem:[#allocation148_spill] sm:$0xff] }
 0x1ff   : > { %5586 = vmatpush1.bf16.msra.mxu0 %v9788_v12  ;;  %5282 = vmatprep.subr.bf16.mxu1 %v9789_v37  ;;  %v9795_v12 = vld [vmem:[#allocation149_spill] sm:$0xff] }
 0x200   : > { %5588 = vmatprep.subr.bf16.mxu0 %v9790_v24  ;;  %v9796_v24 = vld [vmem:[#allocation23_spill] sm:$0xff] }
 0x202   : > { %5284 = vmatpush1.bf16.msra.mxu1 %v9791_v62 }
 0x203   : > { %5590 = vmatpush1.bf16.msra.mxu0 %v9643_v11  ;;  %5286 = vmatprep.subr.bf16.mxu1 %v9792_v21  ;;  %v9798_v11 = vld [vmem:[#allocation150_spill] sm:$0xff] }
 0x204   : > { %2826 = vmatprep.subr.mxu0 %v9793_v0  ;;  %v9800_v0 = vld [vmem:[#allocation151_spill] sm:$0xff] }
 0x206   : > { %5288 = vmatpush1.bf16.msra.mxu1 %v9794_v38 }
 0x207   : > { %2827 = vmatpush1.msra.mxu0 %v8236_v59  ;;  %5290 = vmatprep.subr.bf16.mxu1 %v9795_v12  ;;  %v9802_v59 = vld [vmem:[#allocation27_spill] sm:$0xff] }
 0x208   : > { %5592 = vmatprep.subr.bf16.mxu0 %v9796_v24  ;;  %4316 = vmatmul.mubr.msk.f32.vlgmr.msra.gmra.mrb[4].mxu0 %vm472_vm0, %v2726_v18  ;;  %v9804_v24 = vld [vmem:[#allocation29_spill] sm:$0xff]  ;;  %v9805_v18 = vld [vmem:[#allocation154_spill] sm:$0xff] }
 0x209   : > { %5594 = vmatpush1.bf16.msra.mxu0 %v9797_v10  ;;  %2943 = vmatprep.mubr.f32.mxu0 %v2874_v17  ;;  %v9806_v10 = vld [vmem:[#allocation30_spill] sm:$0xff]  ;;  %v9807_v17 = vld [vmem:[#allocation155_spill] sm:$0xff] }
 0x20a   : > { %5292 = vmatpush1.bf16.msra.mxu1 %v9798_v11  ;;  %5596 = vmatprep.subr.bf16.mxu0 %v9799_v26  ;;  %v9808_v11 = vld [vmem:[#allocation33_spill] sm:$0xff]  ;;  %v9809_v26 = vld [vmem:[#allocation156_spill] sm:$0xff] }
 0x20b   : > { %5294 = vmatprep.subr.bf16.mxu1 %v9800_v0 }
 0x20d   : > { %5598 = vmatpush1.bf16.msra.mxu0 %v9653_v55  ;;  %v9810_v55 = vld [vmem:[#allocation157_spill] sm:$0xff] }
 0x20e   : > { %5296 = vmatpush1.bf16.msra.mxu1 %v9801_v15  ;;  %5600 = vmatprep.subr.bf16.mxu0 %v9802_v59  ;;  %v9811_v59 = vld [vmem:[#allocation158_spill] sm:$0xff] }
 0x20f   : > { %5298 = vmatprep.subr.bf16.mxu1 %v9803_v39 }
 0x211   : > { %5602 = vmatpush1.bf16.msra.mxu0 %v9804_v24  ;;  %v9812_v24 = vld [vmem:[#allocation75_spill] sm:$0xff] }
 0x212   : > { %5300 = vmatpush1.bf16.msra.mxu1 %v9805_v18  ;;  %5604 = vmatprep.subr.bf16.mxu0 %v9806_v10  ;;  %v9813_v18 = vld [vmem:[#allocation41_spill] sm:$0xff]  ;;  %v9814_v10 = vld [vmem:[#allocation159_spill] sm:$0xff] }
 0x213   : > { %5302 = vmatprep.subr.bf16.mxu1 %v9807_v17  ;;  %v9815_v17 = vld [vmem:[#allocation42_spill] sm:$0xff] }
 0x215   : > { %5606 = vmatpush1.bf16.msra.mxu0 %v9808_v11  ;;  %v9816_v11 = vld [vmem:[#allocation160_spill] sm:$0xff] }
 0x216   : > { %5304 = vmatpush1.bf16.msra.mxu1 %v9809_v26  ;;  %5608 = vmatprep.subr.bf16.mxu0 %v9661_v45  ;;  %v9817_v45 = vld [vmem:[#allocation161_spill] sm:$0xff] }
 0x217   : > { %5306 = vmatprep.subr.bf16.mxu1 %v9810_v55 }
 0x219   : > { %5610 = vmatpush1.bf16.msra.mxu0 %v9664_v50  ;;  %v9818_v50 = vld [vmem:[#allocation162_spill] sm:$0xff] }
 0x21a   : > { %5308 = vmatpush1.bf16.msra.mxu1 %v9811_v59  ;;  %5612 = vmatprep.subr.bf16.mxu0 %v9666_v22  ;;  %v9819_v22 = vld [vmem:[#allocation163_spill] sm:$0xff] }
 0x21b   : > { %5310 = vmatprep.subr.bf16.mxu1 %v9812_v24 }
 0x21d   : > { %5614 = vmatpush1.bf16.msra.mxu0 %v9813_v18 }
 0x21e   : > { %5312 = vmatpush1.bf16.msra.mxu1 %v9814_v10  ;;  %5616 = vmatprep.subr.bf16.mxu0 %v9815_v17  ;;  %v9820_v17 = vld [vmem:[#allocation164_spill] sm:$0xff] }
 0x21f   : > { %5314 = vmatprep.subr.bf16.mxu1 %v9816_v11 }
 0x221   : > { %5618 = vmatpush1.bf16.msra.mxu0 %v9672_v23 }
 0x222   : > { %5316 = vmatpush1.bf16.msra.mxu1 %v9817_v45  ;;  %5620 = vmatprep.subr.bf16.mxu0 %v9674_v29  ;;  %v9823_v29 = vld [vmem:[#allocation165_spill] sm:$0xff] }
 0x223   : > { %5318 = vmatprep.subr.bf16.mxu1 %v9818_v50 }
 0x225   : > { %5622 = vmatpush1.bf16.msra.mxu0 %v9675_v7  ;;  %v9824_v7 = vld [vmem:[#allocation166_spill] sm:$0xff] }
 0x226   : > { %5320 = vmatpush1.bf16.msra.mxu1 %v9819_v22  ;;  %5624 = vmatprep.subr.bf16.mxu0 %v9676_v6  ;;  %v9825_v6 = vld [vmem:[#allocation167_spill] sm:$0xff] }
 0x227   : > { %v1518_v18 = vpop.f32.mrb[2].mxu0  ;;  %5322 = vmatprep.subr.bf16.mxu1 %v9820_v17 }
 0x228   : > { %v8570_v11 = vadd.f32 %v1518_v18, %v8316_v35  ;;  %v1520_v23 = vpop.f32.mrb[3].mxu0  ;;  %v9826_v35 = vld [vmem:[#allocation168_spill] sm:$0xff]  ;;  %v2200_v18 = vld [vmem:[%s6302_s23 + $0xd8] sm:$0xc0] }
 0x229   : > { %v8573_v45 = vadd.f32 %v1520_v23, %v8320_v3  ;;  %5626 = vmatpush1.bf16.msra.mxu0 %v9677_v27  ;;  %v9827_v3 = vld [vmem:[#allocation169_spill] sm:$0xff]  ;;  %v2212_v27 = vrot.slane %v2200_v18, 6  ;;  %v9828_v23 = vld [vmem:[#allocation170_spill] sm:$0xff]  ;;  %v9837_v18 = vld [vmem:[#allocation179_spill] sm:$0xff] }
 0x22a   : > { %9821 = vst [vmem:[#allocation34_spill] sm:$0xff] %v8570_v11  ;;  %5324 = vmatpush1.bf16.msra.mxu1 %v9823_v29  ;;  %5628 = vmatprep.subr.bf16.mxu0 %v9678_v51  ;;  %v2203_v11 = vld [vmem:[%s6302_s23 + $0xf0] sm:$0xf] }
 0x22b   : > { %9822 = vst [vmem:[#allocation2_spill] sm:$0xff] %v8573_v45  ;;  %5326 = vmatprep.subr.bf16.mxu1 %v9824_v7  ;;  %v2213_v51 = vrot.slane %v2203_v11, 6  ;;  %v9830_v45 = vld [vmem:[#allocation172_spill] sm:$0xff] }
 0x22c   : > { %v2873_v11 = vld [vmem:[%s6302_s23 + $0x90] sm:$0x3f] }
 0x22d   : > { %5630 = vmatpush1.bf16.msra.mxu0 %v9679_v53  ;;  %v9829_v53 = vld [vmem:[#allocation171_spill] sm:$0xff] }
 0x22e   : > { %5328 = vmatpush1.bf16.msra.mxu1 %v9825_v6  ;;  %5632 = vmatprep.subr.bf16.mxu0 %v9680_v47  ;;  %v2214_v47 = vsel %vm1126_vm2, %v2212_v27, %v2213_v51  ;;  %v9839_v27 = vld [vmem:[#allocation181_spill] sm:$0xff] }
 0x22f   : > { %5330 = vmatprep.subr.bf16.mxu1 %v9826_v35 }
 0x231   : > { %5634 = vmatpush1.bf16.msra.mxu0 %v9681_v63  ;;  %v9831_v63 = vld [vmem:[#allocation173_spill] sm:$0xff] }
 0x232   : > { %5332 = vmatpush1.bf16.msra.mxu1 %v9827_v3  ;;  %5636 = vmatprep.subr.bf16.mxu0 %v9682_v48  ;;  %v9832_v48 = vld [vmem:[#allocation174_spill] sm:$0xff] }
 0x233   : > { %5334 = vmatprep.subr.bf16.mxu1 %v9828_v23 }
 0x235   : > { %5638 = vmatpush1.bf16.msra.mxu0 %v9683_v1  ;;  %v9833_v1 = vld [vmem:[#allocation175_spill] sm:$0xff] }
 0x236   : > { %5336 = vmatpush1.bf16.msra.mxu1 %v9829_v53  ;;  %5640 = vmatprep.subr.bf16.mxu0 %v9684_v14  ;;  %v9834_v14 = vld [vmem:[#allocation176_spill] sm:$0xff] }
 0x237   : > { %5338 = vmatprep.subr.bf16.mxu1 %v9830_v45 }
 0x239   : > { %5642 = vmatpush1.bf16.msra.mxu0 %v9685_v16  ;;  %2290 = vmatmul.mubr.f32.vlgmr.msra.gmra.mrb[4].mxu1 %v2214_v47  ;;  %v9835_v16 = vld [vmem:[#allocation177_spill] sm:$0xff]  ;;  %v9841_v47 = vld [vmem:[#allocation87_spill] sm:$0xff] }
 0x23a   : > { %5340 = vmatpush1.bf16.msra.mxu1 %v9831_v63  ;;  %5644 = vmatprep.subr.bf16.mxu0 %v9686_v30  ;;  %v9836_v30 = vld [vmem:[#allocation22_spill] sm:$0xff] }
 0x23b   : > { %5342 = vmatprep.subr.bf16.mxu1 %v9832_v48  ;;  %2360 = vmatprep.mubr.f32.mxu1 %v9513_v54 }
 0x23d   : > { %5646 = vmatpush1.bf16.msra.mxu0 %v9687_v36  ;;  %v9838_v36 = vld [vmem:[#allocation180_spill] sm:$0xff] }
 0x23e   : > { %5344 = vmatpush1.bf16.msra.mxu1 %v9833_v1  ;;  %5648 = vmatprep.subr.bf16.mxu0 %v9688_v49  ;;  %v2202_v49 = vld [vmem:[%s6302_s23 + $0xe8] sm:$0xc0] }
 0x23f   : > { %5346 = vmatprep.subr.bf16.mxu1 %v9834_v14 }
 0x241   : > { %5650 = vmatpush1.bf16.msra.mxu0 %v9689_v58  ;;  %v2205_v58 = vld [vmem:[%s6302_s23 + $0x100] sm:$0xf] }
 0x242   : > { %5348 = vmatpush1.bf16.msra.mxu1 %v9835_v16  ;;  %5652 = vmatprep.subr.bf16.mxu0 %v9690_v4  ;;  %v9840_v4 = vld [vmem:[#allocation182_spill] sm:$0xff]  ;;  %v2219_v51 = vrot.slane %v2205_v58, 6  ;;  %v9858_v58 = vld [vmem:[#allocation116_spill] sm:$0xff] }
 0x243   : > { %5350 = vmatprep.subr.bf16.mxu1 %v9836_v30 }
 0x245   : > { %5654 = vmatpush1.bf16.msra.mxu0 %v9691_v32  ;;  %v2218_v32 = vrot.slane %v2202_v49, 6 }
 0x246   : > { %5352 = vmatpush1.bf16.msra.mxu1 %v9837_v18  ;;  %5656 = vmatprep.subr.bf16.mxu0 %v9692_v41  ;;  %v9842_v41 = vld [vmem:[#allocation26_spill] sm:$0xff] }
 0x247   : > { %5354 = vmatprep.subr.bf16.mxu1 %v9838_v36 }
 0x248   : > { %2944 = vmatmul.mubr.f32.vlgmr.msra.gmra.mrb[4].mxu0 %v2873_v11  ;;  %v2220_v11 = vsel %vm1126_vm2, %v2218_v32, %v2219_v51  ;;  %v9859_v32 = vld [vmem:[#allocation117_spill] sm:$0xff]  ;;  %v4297_v51 = vld [vmem:[%s9067_s3 + $0xa0] sm:$0xff] }
 0x249   : > { %5658 = vmatpush1.bf16.msra.mxu0 %v9693_v56  ;;  %3014 = vmatprep.mubr.f32.mxu0 %v9513_v54  ;;  %v9843_v56 = vld [vmem:[#allocation183_spill] sm:$0xff] }
 0x24a   : > { %5356 = vmatpush1.bf16.msra.mxu1 %v9839_v27  ;;  %5660 = vmatprep.subr.bf16.mxu0 %v9694_v2  ;;  %v9844_v27 = vld [vmem:[#allocation184_spill] sm:$0xff] }
 0x24b   : > { %5358 = vmatprep.subr.bf16.mxu1 %v9840_v4  ;;  %v9845_v2 = vld [vmem:[#allocation92_spill] sm:$0xff] }
 0x24d   : > { %5662 = vmatpush1.bf16.msra.mxu0 %v9841_v47  ;;  %v4298_v47 = vld [vmem:[%s9067_s3 + $0xa8] sm:$0xff] }
 0x24e   : > { %5360 = vmatpush1.bf16.msra.mxu1 %v9842_v41  ;;  %5664 = vmatprep.subr.bf16.mxu0 %v9696_v5  ;;  %v3024_v5 = vld [vmem:[%s6302_s23 + $0xc8] sm:$0xfc] }
 0x24f   : > { %2320 = vmatprep.subr.mxu1 %v9843_v56  ;;  %v3030_v49 = vrot.slane %v3024_v5, 2  ;;  %v9860_v56 = vld [vmem:[#allocation118_spill] sm:$0xff]  ;;  %v4299_v5 = vld [vmem:[%s9067_s3 + $0xb0] sm:$0xff] }
 0x251   : > { %5666 = vmatpush1.bf16.msra.mxu0 %v9697_v20  ;;  %v2875_v20 = vld [vmem:[%s6302_s23 + $0xa0] sm:$0x3f] }
 0x252   : > { %2321 = vmatpush1.msra.mxu1 %v9844_v27  ;;  %5668 = vmatprep.subr.bf16.mxu0 %v9698_v60  ;;  %v9846_v60 = vld [vmem:[#allocation97_spill] sm:$0xff] }
 0x253   : > { %4294 = vmatmul.mubr.msk.f32.vlgmr.msra.gmra.mrb[4].mxu1 %vm472_vm0, %v2220_v11  ;;  %v5365_v11 = vpack.c.bf16 %v4298_v47, %v4297_v51 }
 0x255   : > { %5670 = vmatpush1.bf16.msra.mxu0 %v9845_v2  ;;  %v9861_v2 = vld [vmem:[#allocation119_spill] sm:$0xff] }
 0x256   : > { %5672 = vmatprep.subr.bf16.mxu0 %v9700_v46  ;;  %v9847_v46 = vld [vmem:[#allocation98_spill] sm:$0xff] }
 0x259   : > { %5674 = vmatpush1.bf16.msra.mxu0 %v9701_v43  ;;  %v9848_v43 = vld [vmem:[#allocation99_spill] sm:$0xff] }
 0x25a   : > { %5676 = vmatprep.subr.bf16.mxu0 %v9702_v42  ;;  %v9849_v42 = vld [vmem:[#allocation100_spill] sm:$0xff] }
 0x25d   : > { %5678 = vmatpush1.bf16.msra.mxu0 %v9703_v28  ;;  %v9851_v28 = vld [vmem:[#allocation109_spill] sm:$0xff] }
 0x25e   : > { %2974 = vmatprep.subr.mxu0 %v8388_v13  ;;  %v9852_v13 = vld [vmem:[#allocation110_spill] sm:$0xff] }
 0x261   : > { %2975 = vmatpush1.msra.mxu0 %v8396_v34  ;;  %v9853_v34 = vld [vmem:[#allocation111_spill] sm:$0xff] }
 0x262   : > { %5680 = vmatprep.subr.bf16.mxu0 %v7341_v40  ;;  %4317 = vmatmul.mubr.msk.f32.vlgmr.msra.gmra.mrb[4].mxu0 %vm472_vm0, %v2875_v20  ;;  %v9850_v40 = vld [vmem:[#allocation108_spill] sm:$0xff]  ;;  %v4300_v20 = vld [vmem:[%s9067_s3 + $0xb8] sm:$0xff] }
 0x263   : > { %5682 = vmatpush1.bf16.msra.mxu0 %v9846_v60  ;;  %3100 = vmatprep.mubr.f32.mxu0 %v3030_v49  ;;  %v9862_v49 = vld [vmem:[#allocation120_spill] sm:$0xff]  ;;  %v5368_v60 = vpack.c.bf16 %v4300_v20, %v4299_v5 }
 0x264   : > { %5684 = vmatprep.subr.bf16.mxu0 %v9847_v46  ;;  %v9863_v46 = vld [vmem:[#allocation121_spill] sm:$0xff]  ;;  %v9869_v5 = vld [vmem:[#allocation128_spill] sm:$0xff] }
 0x267   : > { %5686 = vmatpush1.bf16.msra.mxu0 %v9848_v43  ;;  %v4301_v43 = vld [vmem:[%s9067_s3 + $0xc0] sm:$0xff] }
 0x268   : > { %5688 = vmatprep.subr.bf16.mxu0 %v9849_v42  ;;  %v4302_v42 = vld [vmem:[%s9067_s3 + $0xc8] sm:$0xff] }
 0x26b   : > { %5690 = vmatpush1.bf16.msra.mxu0 %v9705_v8  ;;  %v9854_v8 = vld [vmem:[#allocation112_spill] sm:$0xff] }
 0x26c   : > { %5692 = vmatprep.subr.bf16.mxu0 %v9707_v57  ;;  %v9855_v57 = vld [vmem:[#allocation113_spill] sm:$0xff] }
 0x26f   : > { %5694 = vmatpush1.bf16.msra.mxu0 %v9709_v9  ;;  %v9856_v9 = vld [vmem:[#allocation114_spill] sm:$0xff] }
 0x270   : > { %5696 = vmatprep.subr.bf16.mxu0 %v9711_v31  ;;  %v9857_v31 = vld [vmem:[#allocation115_spill] sm:$0xff] }
 0x273   : > { %5698 = vmatpush1.bf16.msra.mxu0 %v9714_v61  ;;  %v6020_v61 = vmov 0.0|0.0  }
 0x274   : > { %5700 = vmatprep.subr.bf16.mxu0 %v9716_v33  ;;  %5361 = vmatprep.subr.bf16.mxu1 %v6020_v61  ;;  %v4295_v33 = vld [vmem:[%s9067_s3 + $0x90] sm:$0xff] }
 0x277   : > { %5702 = vmatpush1.bf16.msra.mxu0 %v9718_v19  ;;  %v4296_v19 = vld [vmem:[%s9067_s3 + $0x98] sm:$0xff] }
 0x278   : > { %5704 = vmatprep.subr.bf16.mxu0 %v9850_v40  ;;  %v5362_v27 = vpack.c.bf16 %v4296_v19, %v4295_v33  ;;  %v5371_v40 = vpack.c.bf16 %v4302_v42, %v4301_v43  ;;  %v9866_v33 = vld [vmem:[#allocation125_spill] sm:$0xff]  ;;  %v3023_v19 = vld [vmem:[%s6302_s23 + $0xc0] sm:$0xfc]  ;;  %v4311_v43 = vld [vmem:[%s9067_s3 + $0x110] sm:$0xff] }
 0x279   : > { %v3029_v51 = vrot.slane %v3023_v19, 2  ;;  %v4312_v42 = vld [vmem:[%s9067_s3 + $0x118] sm:$0xff]  ;;  %v3025_v19 = vld [vmem:[%s6302_s23 + $0xd0] sm:$0xfc] }
 0x27a   : > { %5363 = vmatpush1.bf16.msra.mxu1 %v5362_v27  ;;  %v4308_v27 = vld [vmem:[%s9067_s3 + $0xf8] sm:$0xff] }
 0x27b   : > { %5706 = vmatpush1.bf16.msra.mxu0 %v9851_v28  ;;  %5364 = vmatprep.subr.bf16.mxu1 %v6020_v61  ;;  %v4303_v28 = vld [vmem:[%s9067_s3 + $0xd0] sm:$0xff] }
 0x27c   : > { %5708 = vmatprep.subr.bf16.mxu0 %v9852_v13  ;;  %v4304_v13 = vld [vmem:[%s9067_s3 + $0xd8] sm:$0xff] }
 0x27e   : > { %5366 = vmatpush1.bf16.msra.mxu1 %v5365_v11  ;;  %v4309_v11 = vld [vmem:[%s9067_s3 + $0x100] sm:$0xff] }
 0x27f   : > { %5710 = vmatpush1.bf16.msra.mxu0 %v9853_v34  ;;  %5367 = vmatprep.subr.bf16.mxu1 %v6020_v61  ;;  %v9864_v34 = vld [vmem:[#allocation123_spill] sm:$0xff] }
 0x280   : > { %5712 = vmatprep.subr.bf16.mxu0 %v9854_v8  ;;  %v5374_v8 = vpack.c.bf16 %v4304_v13, %v4303_v28  ;;  %v5386_v28 = vpack.c.bf16 %v4312_v42, %v4311_v43  ;;  %v9874_v13 = vld [vmem:[#allocation133_spill] sm:$0xff]  ;;  %v1545_v43 = vld [vmem:[%s9067_s3 + $0x20] sm:$0xff]  ;;  %v1546_v42 = vld [vmem:[%s9067_s3 + $0x28] sm:$0xff] }
 0x282   : > { %5369 = vmatpush1.bf16.msra.mxu1 %v5368_v60  ;;  %v9871_v60 = vld [vmem:[#allocation130_spill] sm:$0xff] }
 0x283   : > { %5714 = vmatpush1.bf16.msra.mxu0 %v9855_v57  ;;  %5370 = vmatprep.subr.bf16.mxu1 %v6020_v61  ;;  %v4305_v57 = vld [vmem:[%s9067_s3 + $0xe0] sm:$0xff] }
 0x284   : > { %5716 = vmatprep.subr.bf16.mxu0 %v9856_v9  ;;  %v9865_v9 = vld [vmem:[#allocation124_spill] sm:$0xff] }
 0x286   : > { %5372 = vmatpush1.bf16.msra.mxu1 %v5371_v40  ;;  %v9873_v40 = vld [vmem:[#allocation132_spill] sm:$0xff] }
 0x287   : > { %5718 = vmatpush1.bf16.msra.mxu0 %v9857_v31  ;;  %5373 = vmatprep.subr.bf16.mxu1 %v6020_v61 }
 0x288   : > { %5720 = vmatprep.subr.bf16.mxu0 %v9858_v58  ;;  %v4307_v58 = vld [vmem:[%s9067_s3 + $0xf0] sm:$0xff] }
 0x289   : > { %v5380_v47 = vpack.c.bf16 %v4308_v27, %v4307_v58 }
 0x28a   : > { %5375 = vmatpush1.bf16.msra.mxu1 %v5374_v8  ;;  %v9876_v8 = vld [vmem:[#allocation137_spill] sm:$0xff] }
 0x28b   : > { %5722 = vmatpush1.bf16.msra.mxu0 %v9859_v32  ;;  %5376 = vmatprep.subr.bf16.mxu1 %v6020_v61  ;;  %v9867_v32 = vld [vmem:[#allocation126_spill] sm:$0xff] }
 0x28c   : > { %5724 = vmatprep.subr.bf16.mxu0 %v9860_v56  ;;  %v9868_v56 = vld [vmem:[#allocation127_spill] sm:$0xff] }
 0x28f   : > { %5726 = vmatpush1.bf16.msra.mxu0 %v9861_v2  ;;  %v4310_v2 = vld [vmem:[%s9067_s3 + $0x108] sm:$0xff] }
 0x290   : > { %5728 = vmatprep.subr.bf16.mxu0 %v9862_v49  ;;  %v5383_v20 = vpack.c.bf16 %v4310_v2, %v4309_v11  ;;  %v9870_v49 = vld [vmem:[#allocation129_spill] sm:$0xff]  ;;  %v9882_v2 = vld [vmem:[#allocation44_spill] sm:$0xff] }
 0x291   : > { %v9880_v11 = vld [vmem:[#allocation145_spill] sm:$0xff] }
 0x293   : > { %5730 = vmatpush1.bf16.msra.mxu0 %v9863_v46  ;;  %v9872_v46 = vld [vmem:[#allocation131_spill] sm:$0xff] }
 0x294   : > { %5732 = vmatprep.subr.bf16.mxu0 %v9745_v25  ;;  %v4306_v25 = vld [vmem:[%s9067_s3 + $0xe8] sm:$0xff] }
 0x295   : > { %v5377_v31 = vpack.c.bf16 %v4306_v25, %v4305_v57  ;;  %v9877_v57 = vld [vmem:[#allocation138_spill] sm:$0xff]  ;;  %v9878_v25 = vld [vmem:[#allocation139_spill] sm:$0xff] }
 0x297   : > { %5734 = vmatpush1.bf16.msra.mxu0 %v9864_v34  ;;  %5378 = vmatpush1.bf16.msra.mxu1 %v5377_v31  ;;  %v9875_v34 = vld [vmem:[#allocation135_spill] sm:$0xff]  ;;  %v3184_v31 = vld [vmem:[%s6302_s23 + $0x110] sm:$0x3] }
 0x298   : > { %5736 = vmatprep.subr.bf16.mxu0 %v9865_v9  ;;  %5379 = vmatprep.subr.bf16.mxu1 %v6020_v61  ;;  %v3181_v9 = vld [vmem:[%s6302_s23 + $0xf8] sm:$0xf0]  ;;  %v3196_v27 = vrot.slane %v3184_v31, 4 }
 0x299   : > { %v3195_v58 = vrot.slane %v3181_v9, 4  ;;  %v1551_v9 = vld [vmem:[%s9067_s3 + $0x50] sm:$0xff]  ;;  %v1552_v31 = vld [vmem:[%s9067_s3 + $0x58] sm:$0xff] }
 0x29b   : > { %5738 = vmatpush1.bf16.msra.mxu0 %v9866_v33  ;;  %5381 = vmatpush1.bf16.msra.mxu1 %v5380_v47  ;;  %v9879_v33 = vld [vmem:[#allocation140_spill] sm:$0xff]  ;;  %v3197_v47 = vsel %vm865_vm1, %v3195_v58, %v3196_v27  ;;  %v1554_v58 = vld [vmem:[%s9067_s3 + $0x68] sm:$0xff] }
 0x29c   : > { %5740 = vmatprep.subr.bf16.mxu0 %v9867_v32  ;;  %5382 = vmatprep.subr.bf16.mxu1 %v6020_v61  ;;  %v6007_v32 = vld [vmem:[%s9065_s1 + $0xb38] sm:$0xff] }
 0x29f   : > { %5742 = vmatpush1.bf16.msra.mxu0 %v9868_v56  ;;  %5384 = vmatpush1.bf16.msra.mxu1 %v5383_v20  ;;  %v6008_v56 = vld [vmem:[%s9065_s1 + $0xb30] sm:$0xff]  ;;  %v9885_v20 = vld [vmem:[#allocation155_spill] sm:$0xff] }
 0x2a0   : > { %5744 = vmatprep.subr.bf16.mxu0 %v9869_v5  ;;  %5385 = vmatprep.subr.bf16.mxu1 %v6020_v61  ;;  %v9884_v5 = vld [vmem:[#allocation154_spill] sm:$0xff] }
 0x2a2   : > { %3101 = vmatmul.mubr.f32.vlgmr.msra.gmra.mrb[4].mxu0 %v3029_v51  ;;  %v3031_v51 = vrot.slane %v3025_v19, 2  ;;  %v1553_v19 = vld [vmem:[%s9067_s3 + $0x60] sm:$0xff] }
 0x2a3   : > { %5746 = vmatpush1.bf16.msra.mxu0 %v9870_v49  ;;  %3171 = vmatprep.mubr.f32.mxu0 %v9513_v54  ;;  %v1544_v49 = vld [vmem:[%s9067_s3 + $0x18] sm:$0xff]  ;;  %v5407_v27 = vpack.c.bf16 %v1554_v58, %v1553_v19  ;;  %v4347_v58 = vld [vmem:[%s9069_s5 + $0x60] sm:$0xff] }
 0x2a4   : > { %5748 = vmatprep.subr.bf16.mxu0 %v9871_v60  ;;  %5387 = vmatpush1.bf16.msra.mxu1 %v5386_v28  ;;  %v1547_v28 = vld [vmem:[%s9067_s3 + $0x30] sm:$0xff] }
 0x2a5   : > { %5388 = vmatprep.subr.bf16.mxu1 %v6020_v61 }
 0x2a7   : > { %5750 = vmatpush1.bf16.msra.mxu0 %v9872_v46 }
 0x2a8   : > { %5752 = vmatprep.subr.bf16.mxu0 %v9873_v40  ;;  %v5395_v40 = vpack.c.bf16 %v1546_v42, %v1545_v43  ;;  %v4342_v43 = vld [vmem:[%s9069_s5 + $0x40] sm:$0xff] }
 0x2ab   : > { %5754 = vmatpush1.bf16.msra.mxu0 %v9874_v13  ;;  %v1548_v13 = vld [vmem:[%s9067_s3 + $0x38] sm:$0xff] }
 0x2ac   : > { %5756 = vmatprep.subr.bf16.mxu0 %v9875_v34  ;;  %v5398_v34 = vpack.c.bf16 %v1548_v13, %v1547_v28 }
 0x2af   : > { %5758 = vmatpush1.bf16.msra.mxu0 %v9876_v8  ;;  %v1549_v8 = vld [vmem:[%s9067_s3 + $0x40] sm:$0xff] }
 0x2b0   : > { %5760 = vmatprep.subr.bf16.mxu0 %v9877_v57  ;;  %v1550_v57 = vld [vmem:[%s9067_s3 + $0x48] sm:$0xff] }
 0x2b3   : > { %5762 = vmatpush1.bf16.msra.mxu0 %v9878_v25  ;;  %v5401_v25 = vpack.c.bf16 %v1550_v57, %v1549_v8  ;;  %v4344_v8 = vld [vmem:[%s9069_s5 + $0x50] sm:$0xff]  ;;  %v4345_v57 = vld [vmem:[%s9069_s5 + $0x58] sm:$0xff] }
 0x2b4   : > { %5764 = vmatprep.subr.bf16.mxu0 %v9879_v33  ;;  %v5404_v33 = vpack.c.bf16 %v1552_v31, %v1551_v9  ;;  %v4339_v31 = vld [vmem:[%s9068_s4] ss:$0 sm:$0xff] }
 0x2b7   : > { %5766 = vmatpush1.bf16.msra.mxu0 %v9776_v52  ;;  %v9881_v52 = vld [vmem:[#allocation43_spill] sm:$0xff] }
 0x2b8   : > { %3131 = vmatprep.subr.mxu0 %v6007_v32  ;;  %v1555_v32 = vld [vmem:[%s9067_s3 + $0x70] sm:$0xff] }
 0x2bb   : > { %3132 = vmatpush1.msra.mxu0 %v6008_v56  ;;  %v1557_v56 = vld [vmem:[%s9067_s3 + $0x80] sm:$0xff] }
 0x2bc   : > { %5768 = vmatprep.subr.bf16.mxu0 %v9782_v44  ;;  %4318 = vmatmul.mubr.msk.f32.vlgmr.msra.gmra.mrb[4].mxu0 %vm472_vm0, %v3031_v51  ;;  %v9883_v44 = vld [vmem:[#allocation150_spill] sm:$0xff]  ;;  %v1556_v51 = vld [vmem:[%s9067_s3 + $0x78] sm:$0xff] }
 0x2bd   : > { %5770 = vmatpush1.bf16.msra.mxu0 %v9880_v11  ;;  %3269 = vmatprep.mubr.f32.mxu0 %v3197_v47  ;;  %v5410_v47 = vpack.c.bf16 %v1556_v51, %v1555_v32  ;;  %v1558_v11 = vld [vmem:[%s9067_s3 + $0x88] sm:$0xff] }
 0x2be   : > { %5772 = vmatprep.subr.bf16.mxu0 %v9881_v52  ;;  %v5413_v52 = vpack.c.bf16 %v1558_v11, %v1557_v56  ;;  %v4349_v56 = vld [vmem:[%s9069_s5 + $0x70] sm:$0xff]  ;;  %v4350_v11 = vld [vmem:[%s9069_s5 + $0x78] sm:$0xff] }
 0x2c1   : > { %5774 = vmatpush1.bf16.msra.mxu0 %v9882_v2  ;;  %v9890_v2 = vld [vmem:[#allocation34_spill] sm:$0xff] }
 0x2c2   : > { %5776 = vmatprep.subr.bf16.mxu0 %v9789_v37  ;;  %v9887_v37 = vld [vmem:[#allocation161_spill] sm:$0xff] }
 0x2c5   : > { %5778 = vmatpush1.bf16.msra.mxu0 %v9791_v62  ;;  %v3180_v62 = vld [vmem:[%s6302_s23 + $0xf0] sm:$0xf0] }
 0x2c6   : > { %5780 = vmatprep.subr.bf16.mxu0 %v9792_v21  ;;  %v3183_v21 = vld [vmem:[%s6302_s23 + $0x108] sm:$0x3] }
 0x2c9   : > { %5782 = vmatpush1.bf16.msra.mxu0 %v9794_v38  ;;  %v9886_v38 = vld [vmem:[#allocation160_spill] sm:$0xff] }
 0x2ca   : > { %5784 = vmatprep.subr.bf16.mxu0 %v9795_v12  ;;  %v3192_v12 = vrot.slane %v3180_v62, 4  ;;  %v4322_v62 = vld [vmem:[%s9067_s3 + $0x130] sm:$0xff] }
 0x2cd   : > { %5786 = vmatpush1.bf16.msra.mxu0 %v9883_v44 }
 0x2ce   : > { %5788 = vmatprep.subr.bf16.mxu0 %v9800_v0  ;;  %v3193_v0 = vrot.slane %v3183_v21, 4  ;;  %v4323_v21 = vld [vmem:[%s9067_s3 + $0x138] sm:$0xff] }
 0x2d1   : > { %5790 = vmatpush1.bf16.msra.mxu0 %v9801_v15  ;;  %v3194_v15 = vsel %vm865_vm1, %v3192_v12, %v3193_v0  ;;  %v5859_v12 = vpack.c.bf16 %v4323_v21, %v4322_v62  ;;  %v4324_v0 = vld [vmem:[%s9067_s3 + $0x140] sm:$0xff]  ;;  %v3625_v21 = vld [vmem:[%s9069_s5 + $0x10] sm:$0xff] }
 0x2d2   : > { %5792 = vmatprep.subr.bf16.mxu0 %v9803_v39  ;;  %v3182_v39 = vld [vmem:[%s6302_s23 + $0x100] sm:$0xf0] }
 0x2d5   : > { %5794 = vmatpush1.bf16.msra.mxu0 %v9884_v5  ;;  %v4320_v5 = vld [vmem:[%s9067_s3 + $0x120] sm:$0xff] }
 0x2d6   : > { %5796 = vmatprep.subr.bf16.mxu0 %v9885_v20  ;;  %v4321_v20 = vld [vmem:[%s9067_s3 + $0x128] sm:$0xff] }
 0x2d9   : > { %5798 = vmatpush1.bf16.msra.mxu0 %v9809_v26  ;;  %v3185_v26 = vld [vmem:[%s6302_s23 + $0x118] sm:$0x3] }
 0x2da   : > { %5800 = vmatprep.subr.bf16.mxu0 %v9810_v55  ;;  %v9888_v55 = vld [vmem:[#allocation181_spill] sm:$0xff] }
 0x2dd   : > { %5802 = vmatpush1.bf16.msra.mxu0 %v9811_v59  ;;  %v3198_v59 = vrot.slane %v3182_v39, 4 }
 0x2de   : > { %5804 = vmatprep.subr.bf16.mxu0 %v9812_v24  ;;  %v3199_v24 = vrot.slane %v3185_v26, 4  ;;  %v4326_v26 = vld [vmem:[%s9067_s3 + $0x150] sm:$0xff] }
 0x2e1   : > { %5806 = vmatpush1.bf16.msra.mxu0 %v9814_v10  ;;  %v6009_v10 = vld [vmem:[%s9065_s1 + $0xe08] sm:$0xff] }
 0x2e2   : > { %5808 = vmatprep.subr.bf16.mxu0 %v9886_v38  ;;  %v5856_v38 = vpack.c.bf16 %v4321_v20, %v4320_v5  ;;  %v3623_v20 = vld [vmem:[%s9069_s5] sm:$0xff] }
 0x2e5   : > { %5810 = vmatpush1.bf16.msra.mxu0 %v9887_v37 }
 0x2e6   : > { %5812 = vmatprep.subr.bf16.mxu0 %v9818_v50  ;;  %v6010_v50 = vld [vmem:[%s9065_s1 + $0xe00] sm:$0xff] }
 0x2e9   : > { %5814 = vmatpush1.bf16.msra.mxu0 %v9819_v22  ;;  %v1527_v22 = vlaneseq }
 0x2ea   : > { %5816 = vmatprep.subr.bf16.mxu0 %v9820_v17 }
 0x2eb   : > { %v1528_v17 = vshrl.u32 %v1527_v22, 7  ;;  %v4331_v22 = vld [vmem:[%s9067_s3 + $0x178] sm:$0xff] }
 0x2ed   : > { %5818 = vmatpush1.bf16.msra.mxu0 %v9823_v29  ;;  %v1533_v29 = vsub.s32 1, %v1528_v17 }
 0x2ee   : > { %5820 = vmatprep.subr.bf16.mxu0 %v9824_v7  ;;  %v1525_v7 = vld [vmem:[%s9066_s2] sm:$0x3] }
 0x2f1   : > { %5822 = vmatpush1.bf16.msra.mxu0 %v9825_v6  ;;  %v1529_v6 = vsub.s32 0, %v1528_v17 }
 0x2f2   : > { %5824 = vmatprep.subr.bf16.mxu0 %v9826_v35  ;;  %v8820_v35 = vrot.slane %v1525_v7, %v1533_v29  ;;  %v4332_v29 = vld [vmem:[%s9067_s3 + $0x180] sm:$0xff] }
 0x2f5   : > { %5826 = vmatpush1.bf16.msra.mxu0 %v9827_v3  ;;  %v8822_v3 = vrot.slane %v1525_v7, %v1529_v6  ;;  %v4333_v7 = vld [vmem:[%s9067_s3 + $0x188] sm:$0xff] }
 0x2f6   : > { %5828 = vmatprep.subr.bf16.mxu0 %v9828_v23  ;;  %v5874_v6 = vpack.c.bf16 %v4333_v7, %v4332_v29 }
 0x2f7   : > { %v1537_v44 = vadd.f32 %v9890_v2, %v8822_v3  ;;  %v4351_v2 = vld [vmem:[%s9069_s5 + $0x80] sm:$0xff] }
 0x2f9   : > { %5830 = vmatpush1.bf16.msra.mxu0 %v9829_v53  ;;  %v1539_v37 = vmax.f32 %v1537_v44, 0.0  ;;  %v4352_v44 = vld [vmem:[%s9069_s5 + $0x88] sm:$0xff] }
 0x2fa   : > { %5832 = vmatprep.subr.bf16.mxu0 %v9830_v45  ;;  %v3200_v45 = vsel %vm865_vm1, %v3198_v59, %v3199_v24  ;;  %v4328_v24 = vld [vmem:[%s9067_s3 + $0x160] sm:$0xff]  ;;  %v5898_v5 = vpack.c.bf16 %v4352_v44, %v4351_v2 }
 0x2fc   : > { %3270 = vmatmul.mubr.f32.vlgmr.msra.gmra.mrb[4].mxu0 %v3194_v15  ;;  %v4325_v15 = vld [vmem:[%s9067_s3 + $0x148] sm:$0xff] }
 0x2fd   : > { %5834 = vmatpush1.bf16.msra.mxu0 %v9831_v63  ;;  %3340 = vmatprep.mubr.f32.mxu0 %v9513_v54  ;;  %v5862_v39 = vpack.c.bf16 %v4325_v15, %v4324_v0  ;;  %v3627_v15 = vld [vmem:[%s9069_s5 + $0x20] sm:$0xff] }
 0x2fe   : > { %5836 = vmatprep.subr.bf16.mxu0 %v9832_v48  ;;  %v1541_v48 = vld [vmem:[%s9067_s3] sm:$0xff] }
 0x301   : > { %5838 = vmatpush1.bf16.msra.mxu0 %v9833_v1  ;;  %v1542_v1 = vld [vmem:[%s9067_s3 + $0x8] sm:$0xff] }
 0x302   : > { %5840 = vmatprep.subr.bf16.mxu0 %v9834_v14  ;;  %v9889_v14 = vld [vmem:[#allocation2_spill] sm:$0xff] }
 0x305   : > { %5842 = vmatpush1.bf16.msra.mxu0 %v9835_v16  ;;  %v1538_v16 = vadd.f32 %v9889_v14, %v8820_v35 }
 0x306   : > { %5844 = vmatprep.subr.bf16.mxu0 %v9836_v30 }
 0x307   : > { %v1540_v60 = vmax.f32 %v1538_v16, 0.0 }
 0x309   : > { %5846 = vmatpush1.bf16.msra.mxu0 %v9837_v18 }
 0x30a   : > { %5848 = vmatprep.subr.bf16.mxu0 %v9838_v36  ;;  %v5389_v36 = vpack.c.bf16 %v1542_v1, %v1541_v48  ;;  %v4336_v48 = vld [vmem:[%s9067_s3 + $0x1a0] sm:$0xff]  ;;  %v4337_v1 = vld [vmem:[%s9067_s3 + $0x1a8] sm:$0xff] }
 0x30b   : > { %v5880_v14 = vpack.c.bf16 %v4337_v1, %v4336_v48 }
 0x30d   : > { %5850 = vmatpush1.bf16.msra.mxu0 %v9888_v55  ;;  %v4327_v55 = vld [vmem:[%s9067_s3 + $0x158] sm:$0xff] }
 0x30e   : > { %5852 = vmatprep.subr.bf16.mxu0 %v9840_v4  ;;  %v5865_v59 = vpack.c.bf16 %v4327_v55, %v4326_v26 }
 0x311   : > { %5854 = vmatpush1.bf16.msra.mxu0 %v9842_v41  ;;  %v1543_v41 = vld [vmem:[%s9067_s3 + $0x10] sm:$0xff] }
 0x312   : > { %3300 = vmatprep.subr.mxu0 %v6009_v10  ;;  %v5392_v46 = vpack.c.bf16 %v1544_v49, %v1543_v41  ;;  %v4329_v10 = vld [vmem:[%s9067_s3 + $0x168] sm:$0xff] }
 0x315   : > { %3301 = vmatpush1.msra.mxu0 %v6010_v50  ;;  %v4330_v50 = vld [vmem:[%s9067_s3 + $0x170] sm:$0xff] }
 0x316   : > { %4319 = vmatmul.mubr.msk.f32.vlgmr.msra.gmra.mrb[4].mxu0 %vm472_vm0, %v3200_v45  ;;  %v5868_v45 = vpack.c.bf16 %v4329_v10, %v4328_v24  ;;  %v5871_v17 = vpack.c.bf16 %v4331_v22, %v4330_v50  ;;  %v3455_v10 = vld [vmem:[%s9070_s6] sm:$0x1] }
 0x326   : > { %v2362_v23 = vpop.f32.mrb[4].mxu1 }
 0x327   : > { %v2369_v53 = vadd.f32 %v2362_v23, %v8822_v3  ;;  %v2364_v63 = vpop.f32.mrb[5].mxu1  ;;  %v4334_v23 = vld [vmem:[%s9067_s3 + $0x190] sm:$0xff] }
 0x328   : > { %v2370_v30 = vadd.f32 %v2364_v63, %v8820_v35 }
 0x329   : > { %v2371_v4 = vmax.f32 %v2369_v53, 0.0  ;;  %v4335_v53 = vld [vmem:[%s9067_s3 + $0x198] sm:$0xff] }
 0x32a   : > { %v2372_v18 = vmax.f32 %v2370_v30, 0.0  ;;  %v5877_v63 = vpack.c.bf16 %v4335_v53, %v4334_v23 }
 0x32c   : > { %4313 = vmatprep.mubr.msk.f32.mxu1 %vm2392_vm3, %v2372_v18 }
 0x32d   : > { %2461 = vmatmul.mubr.f32.vlgmr.msra.gmra.mrb[6].mxu1 %v2371_v4  ;;  %v4341_v4 = vld [vmem:[%s9069_s5 + $0x38] sm:$0xff] }
 0x32e   : > { %5390 = vmatpush1.bf16.msra.mxu1 %v5389_v36  ;;  %4314 = vmatprep.mubr.msk.f32.mxu1 %vm2392_vm3, %v1540_v60  ;;  %v4340_v36 = vld [vmem:[%s9069_s5 + $0x30] sm:$0xff] }
 0x32f   : > { %5391 = vmatprep.subr.bf16.mxu1 %v6020_v61  ;;  %v8966_v60 = vpack.c.bf16 %v4341_v4, %v4340_v36 }
 0x332   : > { %5393 = vmatpush1.bf16.msra.mxu1 %v5392_v46 }
 0x333   : > { %5394 = vmatprep.subr.bf16.mxu1 %v6020_v61 }
 0x336   : > { %5396 = vmatpush1.bf16.msra.mxu1 %v5395_v40 }
 0x337   : > { %5397 = vmatprep.subr.bf16.mxu1 %v6020_v61 }
 0x33a   : > { %5399 = vmatpush1.bf16.msra.mxu1 %v5398_v34 }
 0x33b   : > { %5400 = vmatprep.subr.bf16.mxu1 %v6020_v61 }
 0x33e   : > { %5402 = vmatpush1.bf16.msra.mxu1 %v5401_v25  ;;  %v5889_v25 = vpack.c.bf16 %v4345_v57, %v4344_v8 }
 0x33f   : > { %5403 = vmatprep.subr.bf16.mxu1 %v6020_v61 }
 0x342   : > { %5405 = vmatpush1.bf16.msra.mxu1 %v5404_v33 }
 0x343   : > { %5406 = vmatprep.subr.bf16.mxu1 %v6020_v61 }
 0x346   : > { %5408 = vmatpush1.bf16.msra.mxu1 %v5407_v27  ;;  %v4348_v27 = vld [vmem:[%s9069_s5 + $0x68] sm:$0xff] }
 0x347   : > { %5409 = vmatprep.subr.bf16.mxu1 %v6020_v61  ;;  %v5892_v51 = vpack.c.bf16 %v4348_v27, %v4347_v58 }
 0x34a   : > { %5411 = vmatpush1.bf16.msra.mxu1 %v5410_v47 }
 0x34b   : > { %5412 = vmatprep.subr.bf16.mxu1 %v6020_v61 }
 0x34e   : > { %5414 = vmatpush1.bf16.msra.mxu1 %v5413_v52  ;;  %v5895_v52 = vpack.c.bf16 %v4350_v11, %v4349_v56 }
 0x34f   : > { %5855 = vmatprep.subr.bf16.mxu1 %v6020_v61 }
 0x351   : > { %2534 = vmatmul.mubr.f32.vlgmr.msra.gmra.mrb[8].mxu1 %v1539_v37 }
 0x352   : > { %5857 = vmatpush1.bf16.msra.mxu1 %v5856_v38  ;;  %v3624_v38 = vld [vmem:[%s9069_s5 + $0x8] sm:$0xff] }
 0x353   : > { %5858 = vmatprep.subr.bf16.mxu1 %v6020_v61  ;;  %v5901_v37 = vpack.c.bf16 %v3624_v38, %v3623_v20 }
 0x356   : > { %5860 = vmatpush1.bf16.msra.mxu1 %v5859_v12  ;;  %v3626_v12 = vld [vmem:[%s9069_s5 + $0x18] sm:$0xff] }
 0x357   : > { %5861 = vmatprep.subr.bf16.mxu1 %v6020_v61  ;;  %v5904_v0 = vpack.c.bf16 %v3626_v12, %v3625_v21 }
 0x35a   : > { %5863 = vmatpush1.bf16.msra.mxu1 %v5862_v39  ;;  %v3628_v39 = vld [vmem:[%s9069_s5 + $0x28] sm:$0xff] }
 0x35b   : > { %5864 = vmatprep.subr.bf16.mxu1 %v6020_v61  ;;  %v5907_v26 = vpack.c.bf16 %v3628_v39, %v3627_v15 }
 0x35e   : > { %5866 = vmatpush1.bf16.msra.mxu1 %v5865_v59 }
 0x35f   : > { %5867 = vmatprep.subr.bf16.mxu1 %v6020_v61 }
 0x362   : > { %5869 = vmatpush1.bf16.msra.mxu1 %v5868_v45 }
 0x363   : > { %5870 = vmatprep.subr.bf16.mxu1 %v6020_v61 }
 0x366   : > { %5872 = vmatpush1.bf16.msra.mxu1 %v5871_v17 }
 0x367   : > { %5873 = vmatprep.subr.bf16.mxu1 %v6020_v61 }
 0x36a   : > { %5875 = vmatpush1.bf16.msra.mxu1 %v5874_v6 }
 0x36b   : > { %5876 = vmatprep.subr.bf16.mxu1 %v6020_v61 }
 0x36e   : > { %5878 = vmatpush1.bf16.msra.mxu1 %v5877_v63 }
 0x36f   : > { %5879 = vmatprep.subr.bf16.mxu1 %v6020_v61 }
 0x372   : > { %5881 = vmatpush1.bf16.msra.mxu1 %v5880_v14 }
 0x373   : > { %5882 = vmatprep.subr.bf16.mxu1 %v6020_v61 }
 0x3e9   : > { %v3342_v16 = vpop.f32.mrb[4].mxu0 }
 0x3ea   : > { %v3349_v30 = vadd.f32 %v3342_v16, %v8822_v3  ;;  %v3344_v18 = vpop.f32.mrb[5].mxu0  ;;  %v4343_v3 = vld [vmem:[%s9069_s5 + $0x48] sm:$0xff] }
 0x3eb   : > { %v3350_v41 = vadd.f32 %v3344_v18, %v8820_v35  ;;  %v5886_v42 = vpack.c.bf16 %v4343_v3, %v4342_v43 }
 0x3ec   : > { %v3351_v46 = vmax.f32 %v3349_v30, 0.0 }
 0x3ed   : > { %v3352_v49 = vmax.f32 %v3350_v41, 0.0 }
 0x3ef   : > { %4338 = vmatprep.mubr.msk.f32.mxu1 %vm2392_vm3, %v3352_v49 }
 0x3f0   : > { %3440 = vmatmul.mubr.f32.vlgmr.msra.gmra.mrb[10].mxu1 %v3351_v46 }
 0x3f1   : > { %5884 = vmatpush3.bf16.msra.mxu1 %v8966_v60  ;;  %4418 = vmatprep.mubr.msk.f32.mxu1 %vm6021_vm4, %v9513_v54 }
 0x3f2   : > { %5885 = vmatprep.subr.bf16.mxu1 %v6020_v61 }
 0x3f5   : > { %5887 = vmatpush3.bf16.msra.mxu1 %v5886_v42 }
 0x3f6   : > { %5888 = vmatprep.subr.bf16.mxu1 %v6020_v61 }
 0x3f9   : > { %5890 = vmatpush3.bf16.msra.mxu1 %v5889_v25 }
 0x3fa   : > { %5891 = vmatprep.subr.bf16.mxu1 %v6020_v61 }
 0x400   : > { %v2462_v35 = vpop.f32.mrb[6].mxu1 }
 0x401   : > { %v2464_v40 = vpop.f32.mrb[7].mxu1 }
 0x424   : > { %v2535_v28 = vpop.f32.mrb[8].mxu1 }
 0x425   : > { %v2536_v13 = vadd.f32 %v2535_v28, %v2462_v35  ;;  %v2537_v34 = vpop.f32.mrb[9].mxu1 }
 0x4c3   : > { %v3441_v9 = vpop.f32.mrb[10].mxu1 }
 0x4c4   : > { %v3445_v33 = vadd.f32 %v3441_v9, %v2536_v13  ;;  %v3443_v19 = vpop.f32.mrb[11].mxu1 }
 0x4c6   : > { %v3453_v32 = vadd.f32 %v4339_v31, %v3445_v33 }
 0x4c8   : > { %v3454_v47 = vmax.f32 %v3453_v32, 0.0 }
 0x4ca   : > { %4419 = vmatmul.mubr.msk.f32.vlgmr.msra.gmra.mrb[12].mxu1 %vm3463_vm5, %v3454_v47  ;;  %v3545_v62 = vrot.slane %v3454_v47, 1  ;;  %v3629_v55 = vrot.slane %v3454_v47, 2  ;;  %v3709_v59 = vrot.slane %v3454_v47, 3  ;;  %v3789_v24 = vrot.slane %v3454_v47, 4 }
 0x4cb   : > { %5893 = vmatpush3.bf16.msra.mxu1 %v5892_v51  ;;  %4433 = vmatprep.mubr.msk.f32.mxu1 %vm6021_vm4, %v9513_v54 }
 0x4cc   : > { %5894 = vmatprep.subr.bf16.mxu1 %v6020_v61 }
 0x4cf   : > { %5896 = vmatpush3.bf16.msra.mxu1 %v5895_v52 }
 0x4d0   : > { %5897 = vmatprep.subr.bf16.mxu1 %v6020_v61 }
 0x4d3   : > { %5899 = vmatpush3.bf16.msra.mxu1 %v5898_v5 }
 0x4d4   : > { %5900 = vmatprep.subr.bf16.mxu1 %v6020_v61 }
 0x4d6   : > { %4434 = vmatmul.mubr.msk.f32.vlgmr.msra.gmra.mrb[12].mxu1 %vm3463_vm5, %v3545_v62 }
 0x4d7   : > { %5902 = vmatpush3.bf16.msra.mxu1 %v5901_v37  ;;  %4448 = vmatprep.mubr.msk.f32.mxu1 %vm6021_vm4, %v9513_v54 }
 0x4d8   : > { %5903 = vmatprep.subr.bf16.mxu1 %v6020_v61 }
 0x4db   : > { %5905 = vmatpush3.bf16.msra.mxu1 %v5904_v0 }
 0x4dc   : > { %5906 = vmatprep.subr.bf16.mxu1 %v6020_v61 }
 0x4df   : > { %5908 = vmatpush3.bf16.msra.mxu1 %v5907_v26 }
 0x4e0   : > { %5909 = vmatprep.subr.bf16.mxu1 %v6020_v61 }
 0x4e2   : > { %4449 = vmatmul.mubr.msk.f32.vlgmr.msra.gmra.mrb[14].mxu1 %vm3463_vm5, %v3629_v55 }
 0x4e3   : > { %5911 = vmatpush3.bf16.msra.mxu1 %v8966_v60  ;;  %4463 = vmatprep.mubr.msk.f32.mxu1 %vm6021_vm4, %v9513_v54 }
 0x4e4   : > { %5912 = vmatprep.subr.bf16.mxu1 %v6020_v61 }
 0x4e7   : > { %5914 = vmatpush3.bf16.msra.mxu1 %v5886_v42 }
 0x4e8   : > { %5915 = vmatprep.subr.bf16.mxu1 %v6020_v61 }
 0x4eb   : > { %5917 = vmatpush3.bf16.msra.mxu1 %v5889_v25 }
 0x4ec   : > { %5918 = vmatprep.subr.bf16.mxu1 %v6020_v61 }
 0x4ee   : > { %4464 = vmatmul.mubr.msk.f32.vlgmr.msra.gmra.mrb[14].mxu1 %vm3463_vm5, %v3709_v59 }
 0x4ef   : > { %5920 = vmatpush3.bf16.msra.mxu1 %v5892_v51  ;;  %4478 = vmatprep.mubr.msk.f32.mxu1 %vm6021_vm4, %v9513_v54 }
 0x4f0   : > { %5921 = vmatprep.subr.bf16.mxu1 %v6020_v61 }
 0x4f3   : > { %5923 = vmatpush3.bf16.msra.mxu1 %v5895_v52 }
 0x4f4   : > { %5924 = vmatprep.subr.bf16.mxu1 %v6020_v61  ;;  %v3622_v61 = vld [vmem:[%s9070_s6] sm:$0x1] }
 0x4f7   : > { %5926 = vmatpush3.bf16.msra.mxu1 %v5898_v5 }
 0x4fa   : > { %4479 = vmatmul.mubr.msk.f32.vlgmr.msra.gmra.mrb[14].mxu1 %vm3463_vm5, %v3789_v24 }
 0x5a9   : > { %v3614_v45 = vpop.f32.mrb[12].mxu1 }
 0x5aa   : > { %v5933_v50 = vadd.f32 %v3614_v45, %v3455_v10  ;;  %v4435_v22 = vpop.f32.mrb[13].mxu1 }
 0x5ac   : > { %v3619_v54 = vmax.f32 %v5933_v50, 0.0 }
 0x5ae   : > { %3621 = vst.msk [vmem:[%s276_s10] sm:$0x1] %vm3620_vm6, %v3619_v54 }
 0x5cd   : > { %v3858_v17 = vpop.f32.mrb[14].mxu1 }
 0x5ce   : > { %v5934_v29 = vadd.f32 %v3858_v17, %v3622_v61  ;;  %v4480_v7 = vpop.f32.mrb[15].mxu1 }
 0x5d0   : > { %v3863_v6 = vmax.f32 %v5934_v29, 0.0 }
 0x5d2   : > { %3864 = vst.msk [vmem:[%s276_s10 + $0x1] sm:$0x1] %vm3620_vm6, %v3863_v6 }
 0x5d3 PF: > { %s17_s24 = sadd.s32 1, %s6017_s24  }
 0x5d4   : > { %p14_p4 = scmp.ge.s32.totalorder %s17_s24, 4  }
 0x5d6   :  { %16 = sbr.rel (!%p14_p4) target bundleno = 1 (0x1), region = 86 }

</bundles_post_ra>
